<compile_context>
chip_gen: v6e
topology: v6e:2x2x1
jax: 0.10.0
libtpu: 0.0.40
codegen_flags: <defaults>
</compile_context>

<pallas_src>
import functools

import numpy as np
import jax
import jax.numpy as jnp
from jax.experimental import pallas as pl
from jax.experimental.pallas import tpu as pltpu


# -----------------------------------------------------------------------------
# In-kernel helpers (trace-time Python, all ops are Mosaic-friendly)
# -----------------------------------------------------------------------------
def _mm(a, b):
    return jnp.dot(a, b, preferred_element_type=jnp.float32)


def _sel_mask(shape, fn):
    """0/1 f32 selection matrix of `shape`; fn(row_iota, col_iota) -> bool."""
    ii = jax.lax.broadcasted_iota(jnp.int32, shape, 0)
    jj = jax.lax.broadcasted_iota(jnp.int32, shape, 1)
    return jnp.where(fn(ii, jj), 1.0, 0.0)


def _conv3x3(x, m_ref, b_ref, pad):
    """3x3 stride-1 conv on a (H, Cin*W) activation using pre-banded weights.

    m_ref: (3, Cin*W_in, Cout*W_out), b_ref: (1, Cout*W_out).
    Row padding is folded into the (H_out, H_in) shift-selection matmul,
    column padding is folded into M at init time.
    """
    h_in = x.shape[0]
    h_out = h_in + 2 * pad - 2
    acc = jnp.zeros((h_out, m_ref.shape[-1]), jnp.float32)
    for dh in range(3):
        s = dh - pad
        rsel = _sel_mask((h_out, h_in), lambda ii, jj, s=s: jj == ii + s)
        acc = acc + _mm(_mm(rsel, x), m_ref[dh])
    return acc + b_ref[...]


def _maxpool2(x):
    """2x2/stride-2 max pool on (H, C*W) channel-major layout (W even)."""
    h, l = x.shape
    eh = _sel_mask((h // 2, h), lambda ii, jj: jj == 2 * ii)
    oh = _sel_mask((h // 2, h), lambda ii, jj: jj == 2 * ii + 1)
    xr = jnp.maximum(_mm(eh, x), _mm(oh, x))
    ec = _sel_mask((l, l // 2), lambda jj, kk: jj == 2 * kk)
    oc = _sel_mask((l, l // 2), lambda jj, kk: jj == 2 * kk + 1)
    return jnp.maximum(_mm(xr, ec), _mm(xr, oc))


def _upsample2(x):
    """Nearest-neighbor 2x upsample on (H, C*W) channel-major layout."""
    h, l = x.shape
    ph = _sel_mask((2 * h, h), lambda ii, jj: (ii == 2 * jj) | (ii == 2 * jj + 1))
    uw = _sel_mask((l, 2 * l), lambda jj, kk: (kk == 2 * jj) | (kk == 2 * jj + 1))
    return _mm(ph, _mm(x, uw))


# -----------------------------------------------------------------------------
# The single fused kernel (one image per grid step)
# -----------------------------------------------------------------------------
def _vae_kernel(x_ref, eps_ref,
                m_e0, b_e0, m_e1, b_e1, m_e2, b_e2, m_e3, b_e3,
                m_hd, b_hd, m_d0, b_d0, m_d1, b_d1, m_d2, b_d2,
                xhat_ref, mean_ref, logvar_ref):
    x = x_ref[0]                                    # (16, 16)   Cin=1

    # ---- Encoder -------------------------------------------------------------
    h = _conv3x3(x, m_e0, b_e0, pad=1)              # (16, 256)  C=16
    h = _maxpool2(h)                                # (8, 128)
    h = _conv3x3(h, m_e1, b_e1, pad=1)              # (8, 64)    C=8
    h = _maxpool2(h)                                # (4, 32)
    h = _conv3x3(h, m_e2, b_e2, pad=1)              # (4, 32)
    h = _maxpool2(h)                                # (2, 16)
    h = _conv3x3(h, m_e3, b_e3, pad=1)              # (2, 16)

    # ---- Latent head: mean & logvar fused into one Cout=16 conv --------------
    hd = _conv3x3(h, m_hd, b_hd, pad=1)             # (2, 32)
    mean = hd[:, 0:16]                              # (2, 16)
    logvar = hd[:, 16:32]                           # (2, 16)
    mean_ref[0] = mean
    logvar_ref[0] = logvar

    # ---- Reparameterization (exp on the EUP slot) -----------------------------
    z = mean + jnp.exp(0.5 * logvar) * eps_ref[0]   # (2, 16)

    # ---- Decoder --------------------------------------------------------------
    d = _upsample2(z)                               # (4, 32)
    d = _conv3x3(d, m_d0, b_d0, pad=1)              # (4, 32)    ConvT(8,8,p=1)
    d = _upsample2(d)                               # (8, 64)
    d = _conv3x3(d, m_d1, b_d1, pad=2)              # (10, 160)  ConvT(8,16,p=0)
    d = _upsample2(d)                               # (20, 320)
    d = _conv3x3(d, m_d2, b_d2, pad=1)              # (20, 20)   ConvT(16,1,p=1)

    xhat_ref[0] = 1.0 / (1.0 + jnp.exp(-d))         # sigmoid


# -----------------------------------------------------------------------------
# One-time (host-side) weight folding: conv -> banded matmul matrices
# -----------------------------------------------------------------------------
def _banded_conv_mats(w_oihw, b, w_in, pad):
    """Banded matrices for a 3x3/stride-1 conv in (H, C*W) channel-major layout.

    Returns M (3, Cin*W_in, Cout*W_out) and bias row (1, Cout*W_out) with
    M[dh][ci*W_in + wi, co*W_out + wo] = w[co, ci, dh, wi - wo + pad].
    """
    w_np = np.asarray(w_oihw, np.float32)           # (Cout, Cin, 3, 3)
    b_np = np.asarray(b, np.float32)
    cout, cin = w_np.shape[0], w_np.shape[1]
    w_out = w_in + 2 * pad - 2
    m = np.zeros((3, cin * w_in, cout * w_out), np.float32)
    for dh in range(3):
        for dw in range(3):
            for wo in range(w_out):
                wi = wo + dw - pad
                if 0 <= wi < w_in:
                    m[dh, wi::w_in, wo::w_out] = w_np[:, :, dh, dw].T
    bias_row = np.repeat(b_np, w_out)[None, :]
    return jnp.asarray(m), jnp.asarray(bias_row)


def _banded_convT_mats(wt_iohw, b, w_in, pad_t):
    """Stride-1 ConvTranspose2d == Conv2d with flipped/swapped weights, pad=2-p."""
    wt = np.asarray(wt_iohw, np.float32)            # (Cin, Cout, 3, 3)
    w_eq = np.transpose(wt[:, :, ::-1, ::-1], (1, 0, 2, 3))
    return _banded_conv_mats(w_eq, b, w_in, 2 - pad_t)


def prepare_params(params):
    """Fold all weight transforms once (outside the hot path)."""
    wm, bm = params["mean"]
    wl, bl = params["logvar"]
    w_hd = jnp.concatenate([wm, wl], axis=0)        # (16, 8, 3, 3)
    b_hd = jnp.concatenate([bm, bl], axis=0)        # (16,)
    prepped = [
        _banded_conv_mats(*params["enc0"], w_in=16, pad=1),
        _banded_conv_mats(*params["enc1"], w_in=8, pad=1),
        _banded_conv_mats(*params["enc2"], w_in=4, pad=1),
        _banded_conv_mats(*params["enc3"], w_in=2, pad=1),
        _banded_conv_mats(w_hd, b_hd, w_in=2, pad=1),
        _banded_convT_mats(*params["dec0"], w_in=4, pad_t=1),
        _banded_convT_mats(*params["dec1"], w_in=8, pad_t=0),
        _banded_convT_mats(*params["dec2"], w_in=20, pad_t=1),
    ]
    flat = []
    for m, brow in prepped:
        flat.extend([m, brow])
    return tuple(flat)


# -----------------------------------------------------------------------------
# Wrapper: one fused pallas_call, batch on the grid
# -----------------------------------------------------------------------------
def _full_vmem_spec(arr):
    zeros = (0,) * arr.ndim
    return pl.BlockSpec(arr.shape, lambda i, _z=zeros: _z)


def vae_forward(x_nchw, eps2d, flat_params):
    n = x_nchw.shape[0]
    x2d = x_nchw[:, 0, :, :]                        # (N, 16, 16)  Cin=1

    in_specs = [
        pl.BlockSpec((1, 16, 16), lambda i: (i, 0, 0)),   # x (per-image block)
        pl.BlockSpec((1, 2, 16), lambda i: (i, 0, 0)),    # eps
    ] + [_full_vmem_spec(a) for a in flat_params]

    out_shape = (
        jax.ShapeDtypeStruct((n, 20, 20), jnp.float32),   # x_hat (H, C*W), C=1
        jax.ShapeDtypeStruct((n, 2, 16), jnp.float32),    # mean  (H, C*W), C=8
        jax.ShapeDtypeStruct((n, 2, 16), jnp.float32),    # logvar
    )
    out_specs = (
        pl.BlockSpec((1, 20, 20), lambda i: (i, 0, 0)),
        pl.BlockSpec((1, 2, 16), lambda i: (i, 0, 0)),
        pl.BlockSpec((1, 2, 16), lambda i: (i, 0, 0)),
    )

    xhat2d, mean2d, logvar2d = pl.pallas_call(
        _vae_kernel,
        grid=(n,),
        in_specs=in_specs,
        out_specs=out_specs,
        out_shape=out_shape,
        compiler_params=pltpu.CompilerParams(
            dimension_semantics=("parallel",)),
    )(x2d, eps2d, *flat_params)

    # Channel-major (H, C*W) -> NCHW glue (tiny, once per output).
    x_hat = xhat2d[:, None, :, :]                                   # (N,1,20,20)
    mean = mean2d.reshape(n, 2, 8, 2).transpose(0, 2, 1, 3)         # (N,8,2,2)
    logvar = logvar2d.reshape(n, 2, 8, 2).transpose(0, 2, 1, 3)     # (N,8,2,2)
    return x_hat, mean, logvar


# -----------------------------------------------------------------------------
# Parameters (deterministic, PyTorch-default-style uniform init)
# -----------------------------------------------------------------------------
def _conv_params(key, cout, cin):
    kw, kb = jax.random.split(key)
    bound = 1.0 / (cin * 9) ** 0.5
    w = jax.random.uniform(kw, (cout, cin, 3, 3), jnp.float32, -bound, bound)
    b = jax.random.uniform(kb, (cout,), jnp.float32, -bound, bound)
    return w, b


def _convT_params(key, cin, cout):
    kw, kb = jax.random.split(key)
    bound = 1.0 / (cout * 9) ** 0.5
    w = jax.random.uniform(kw, (cin, cout, 3, 3), jnp.float32, -bound, bound)
    b = jax.random.uniform(kb, (cout,), jnp.float32, -bound, bound)
    return w, b


def init_params(key):
    ks = jax.random.split(key, 9)
    return {
        "enc0": _conv_params(ks[0], 16, 1),
        "enc1": _conv_params(ks[1], 8, 16),
        "enc2": _conv_params(ks[2], 8, 8),
        "enc3": _conv_params(ks[3], 8, 8),
        "mean": _conv_params(ks[4], 8, 8),
        "logvar": _conv_params(ks[5], 8, 8),
        "dec0": _convT_params(ks[6], 8, 8),    # ConvTranspose2d(8, 8, 3, padding=1)
        "dec1": _convT_params(ks[7], 8, 16),   # ConvTranspose2d(8, 16, 3)
        "dec2": _convT_params(ks[8], 16, 1),   # ConvTranspose2d(16, 1, 3, padding=1)
    }


# -----------------------------------------------------------------------------
# Pure-JAX reference (for correctness check only)
# -----------------------------------------------------------------------------
def _reference_forward(x, eps_nchw, params):
    hp = jax.lax.Precision.HIGHEST

    def conv(t, w, b, pad):
        out = jax.lax.conv_general_dilated(
            t, w, window_strides=(1, 1), padding=[(pad, pad), (pad, pad)],
            dimension_numbers=("NCHW", "OIHW", "NCHW"), precision=hp)
        return out + b[None, :, None, None]

    def convT(t, wt, b, pad_t):
        w_eq = jnp.transpose(jnp.flip(wt, (2, 3)), (1, 0, 2, 3))
        return conv(t, w_eq, b, 2 - pad_t)

    def pool(t):
        return jax.lax.reduce_window(t, -jnp.inf, jax.lax.max,
                                     (1, 1, 2, 2), (1, 1, 2, 2), "VALID")

    def up(t):
        return jnp.repeat(jnp.repeat(t, 2, axis=2), 2, axis=3)

    h = pool(conv(x, *params["enc0"], 1))
    h = pool(conv(h, *params["enc1"], 1))
    h = pool(conv(h, *params["enc2"], 1))
    h = conv(h, *params["enc3"], 1)
    mean = conv(h, *params["mean"], 1)
    logvar = conv(h, *params["logvar"], 1)
    z = mean + jnp.exp(0.5 * logvar) * eps_nchw
    d = convT(up(z), *params["dec0"], 1)
    d = convT(up(d), *params["dec1"], 0)
    d = convT(up(d), *params["dec2"], 1)
    return jax.nn.sigmoid(d), mean, logvar


if __name__ == "__main__":
    key = jax.random.PRNGKey(0)
    k_x, k_p, k_eps = jax.random.split(key, 3)

    x = jax.random.normal(k_x, (2, 1, 16, 16), jnp.float32)       # NCHW input
    params = init_params(k_p)
    flat_params = prepare_params(params)                          # one-time folding
    eps = jax.random.normal(k_eps, (2, 2, 16), jnp.float32)       # kernel-layout eps

    fwd = jax.jit(vae_forward)
    x_hat, mean, logvar = fwd(x, eps, flat_params)
    jax.block_until_ready((x_hat, mean, logvar))

    assert x_hat.shape == (2, 1, 20, 20), x_hat.shape
    assert mean.shape == (2, 8, 2, 2), mean.shape
    assert logvar.shape == (2, 8, 2, 2), logvar.shape
    assert x_hat.dtype == jnp.float32
    assert bool(jnp.all(jnp.isfinite(x_hat)))
    assert bool(jnp.all((x_hat >= 0.0) & (x_hat <= 1.0)))         # sigmoid output

    # Correctness vs. a pure-JAX reference using the same eps values.
    eps_nchw = eps.reshape(2, 2, 8, 2).transpose(0, 2, 1, 3)      # (N,8,2,2)
    xr, mr, lr = jax.jit(_reference_forward)(x, eps_nchw, params)
    for got, want in ((x_hat, xr), (mean, mr), (logvar, lr)):
        err = float(jnp.max(jnp.abs(got - want)))
        assert bool(jnp.allclose(got, want, rtol=2e-2, atol=2e-2)), err

    print("KERNEL_OK")
</pallas_src>

<mosaic_0001>
module attributes {stable_mosaic.version = 11 : i64} {
  func.func @_vae_kernel(%arg0: i32, %arg1: memref<1x16x16xf32, #tpu.memory_space<vmem>>, %arg2: memref<1x2x16xf32, #tpu.memory_space<vmem>>, %arg3: memref<3x16x256xf32, #tpu.memory_space<vmem>>, %arg4: memref<1x256xf32, #tpu.memory_space<vmem>>, %arg5: memref<3x128x64xf32, #tpu.memory_space<vmem>>, %arg6: memref<1x64xf32, #tpu.memory_space<vmem>>, %arg7: memref<3x32x32xf32, #tpu.memory_space<vmem>>, %arg8: memref<1x32xf32, #tpu.memory_space<vmem>>, %arg9: memref<3x16x16xf32, #tpu.memory_space<vmem>>, %arg10: memref<1x16xf32, #tpu.memory_space<vmem>>, %arg11: memref<3x16x32xf32, #tpu.memory_space<vmem>>, %arg12: memref<1x32xf32, #tpu.memory_space<vmem>>, %arg13: memref<3x32x32xf32, #tpu.memory_space<vmem>>, %arg14: memref<1x32xf32, #tpu.memory_space<vmem>>, %arg15: memref<3x64x160xf32, #tpu.memory_space<vmem>>, %arg16: memref<1x160xf32, #tpu.memory_space<vmem>>, %arg17: memref<3x320x20xf32, #tpu.memory_space<vmem>>, %arg18: memref<1x20xf32, #tpu.memory_space<vmem>>, %arg19: memref<1x20x20xf32, #tpu.memory_space<vmem>>, %arg20: memref<1x2x16xf32, #tpu.memory_space<vmem>>, %arg21: memref<1x2x16xf32, #tpu.memory_space<vmem>>) attributes {dimension_semantics = [#tpu.dimension_semantics<parallel>], iteration_bounds = array<i64: 2>, scalar_prefetch = 0 : i64, scratch_operands = 0 : i64, tpu.core_type = #tpu.core_type<tc>, window_params = [{transform_indices = @transform_0, window_bounds = array<i64: 1, 16, 16>}, {transform_indices = @transform_1, window_bounds = array<i64: 1, 2, 16>}, {pipeline_mode = #tpu.pipeline_mode<synchronous>, transform_indices = @transform_2, window_bounds = array<i64: 3, 16, 256>}, {pipeline_mode = #tpu.pipeline_mode<synchronous>, transform_indices = @transform_3, window_bounds = array<i64: 1, 256>}, {pipeline_mode = #tpu.pipeline_mode<synchronous>, transform_indices = @transform_4, window_bounds = array<i64: 3, 128, 64>}, {pipeline_mode = #tpu.pipeline_mode<synchronous>, transform_indices = @transform_5, window_bounds = array<i64: 1, 64>}, {pipeline_mode = #tpu.pipeline_mode<synchronous>, transform_indices = @transform_6, window_bounds = array<i64: 3, 32, 32>}, {pipeline_mode = #tpu.pipeline_mode<synchronous>, transform_indices = @transform_7, window_bounds = array<i64: 1, 32>}, {pipeline_mode = #tpu.pipeline_mode<synchronous>, transform_indices = @transform_8, window_bounds = array<i64: 3, 16, 16>}, {pipeline_mode = #tpu.pipeline_mode<synchronous>, transform_indices = @transform_9, window_bounds = array<i64: 1, 16>}, {pipeline_mode = #tpu.pipeline_mode<synchronous>, transform_indices = @transform_10, window_bounds = array<i64: 3, 16, 32>}, {pipeline_mode = #tpu.pipeline_mode<synchronous>, transform_indices = @transform_11, window_bounds = array<i64: 1, 32>}, {pipeline_mode = #tpu.pipeline_mode<synchronous>, transform_indices = @transform_12, window_bounds = array<i64: 3, 32, 32>}, {pipeline_mode = #tpu.pipeline_mode<synchronous>, transform_indices = @transform_13, window_bounds = array<i64: 1, 32>}, {pipeline_mode = #tpu.pipeline_mode<synchronous>, transform_indices = @transform_14, window_bounds = array<i64: 3, 64, 160>}, {pipeline_mode = #tpu.pipeline_mode<synchronous>, transform_indices = @transform_15, window_bounds = array<i64: 1, 160>}, {pipeline_mode = #tpu.pipeline_mode<synchronous>, transform_indices = @transform_16, window_bounds = array<i64: 3, 320, 20>}, {pipeline_mode = #tpu.pipeline_mode<synchronous>, transform_indices = @transform_17, window_bounds = array<i64: 1, 20>}, {transform_indices = @transform_18, window_bounds = array<i64: 1, 20, 20>}, {transform_indices = @transform_19, window_bounds = array<i64: 1, 2, 16>}, {transform_indices = @transform_20, window_bounds = array<i64: 1, 2, 16>}]} {
    %c0 = arith.constant 0 : index
    %c0_0 = arith.constant 0 : index
    %c0_1 = arith.constant 0 : index
    %0 = vector.load %arg1[%c0, %c0_0, %c0_1] : memref<1x16x16xf32, #tpu.memory_space<vmem>>, vector<1x16x16xf32>
    %1 = vector.shape_cast %0 : vector<1x16x16xf32> to vector<16x16xf32>
    %cst = arith.constant 0.000000e+00 : f32
    %2 = vector.broadcast %cst : f32 to vector<16x256xf32>
    %3 = tpu.iota {dimensions = array<i32: 0>} : vector<16x16xi32>
    %4 = tpu.iota {dimensions = array<i32: 1>} : vector<16x16xi32>
    %c-1_i32 = arith.constant -1 : i32
    %5 = vector.broadcast %c-1_i32 : i32 to vector<16x16xi32>
    %6 = arith.addi %3, %5 : vector<16x16xi32>
    %7 = arith.cmpi eq, %4, %6 : vector<16x16xi32>
    %cst_2 = arith.constant 1.000000e+00 : f32
    %cst_3 = arith.constant 0.000000e+00 : f32
    %8 = vector.broadcast %cst_2 : f32 to vector<16x16xf32>
    %9 = vector.broadcast %cst_3 : f32 to vector<16x16xf32>
    %10 = arith.select %7, %8, %9 : vector<16x16xi1>, vector<16x16xf32>
    %cst_4 = arith.constant dense<0.000000e+00> : vector<16x16xf32>
    %11 = tpu.matmul %10, %1, %cst_4 {dimension_numbers = #tpu.dot_dimension_numbers<[1], [0], [0], [1], [0, 0, 1, 1], [], []>} : vector<16x16xf32>, vector<16x16xf32>, vector<16x16xf32> -> vector<16x16xf32>
    %c0_5 = arith.constant 0 : index
    %c0_6 = arith.constant 0 : index
    %c0_7 = arith.constant 0 : index
    %12 = vector.load %arg3[%c0_5, %c0_6, %c0_7] : memref<3x16x256xf32, #tpu.memory_space<vmem>>, vector<1x16x256xf32>
    %13 = vector.shape_cast %12 : vector<1x16x256xf32> to vector<16x256xf32>
    %cst_8 = arith.constant dense<0.000000e+00> : vector<16x256xf32>
    %14 = tpu.matmul %11, %13, %cst_8 {dimension_numbers = #tpu.dot_dimension_numbers<[1], [0], [0], [1], [0, 0, 1, 1], [], []>} : vector<16x16xf32>, vector<16x256xf32>, vector<16x256xf32> -> vector<16x256xf32>
    %15 = arith.addf %2, %14 : vector<16x256xf32>
    %16 = tpu.iota {dimensions = array<i32: 0>} : vector<16x16xi32>
    %17 = tpu.iota {dimensions = array<i32: 1>} : vector<16x16xi32>
    %c0_i32 = arith.constant 0 : i32
    %18 = vector.broadcast %c0_i32 : i32 to vector<16x16xi32>
    %19 = arith.addi %16, %18 : vector<16x16xi32>
    %20 = arith.cmpi eq, %17, %19 : vector<16x16xi32>
    %cst_9 = arith.constant 1.000000e+00 : f32
    %cst_10 = arith.constant 0.000000e+00 : f32
    %21 = vector.broadcast %cst_9 : f32 to vector<16x16xf32>
    %22 = vector.broadcast %cst_10 : f32 to vector<16x16xf32>
    %23 = arith.select %20, %21, %22 : vector<16x16xi1>, vector<16x16xf32>
    %cst_11 = arith.constant dense<0.000000e+00> : vector<16x16xf32>
    %24 = tpu.matmul %23, %1, %cst_11 {dimension_numbers = #tpu.dot_dimension_numbers<[1], [0], [0], [1], [0, 0, 1, 1], [], []>} : vector<16x16xf32>, vector<16x16xf32>, vector<16x16xf32> -> vector<16x16xf32>
    %c1 = arith.constant 1 : index
    %c0_12 = arith.constant 0 : index
    %c0_13 = arith.constant 0 : index
    %25 = vector.load %arg3[%c1, %c0_12, %c0_13] : memref<3x16x256xf32, #tpu.memory_space<vmem>>, vector<1x16x256xf32>
    %26 = vector.shape_cast %25 : vector<1x16x256xf32> to vector<16x256xf32>
    %cst_14 = arith.constant dense<0.000000e+00> : vector<16x256xf32>
    %27 = tpu.matmul %24, %26, %cst_14 {dimension_numbers = #tpu.dot_dimension_numbers<[1], [0], [0], [1], [0, 0, 1, 1], [], []>} : vector<16x16xf32>, vector<16x256xf32>, vector<16x256xf32> -> vector<16x256xf32>
    %28 = arith.addf %15, %27 : vector<16x256xf32>
    %29 = tpu.iota {dimensions = array<i32: 0>} : vector<16x16xi32>
    %30 = tpu.iota {dimensions = array<i32: 1>} : vector<16x16xi32>
    %c1_i32 = arith.constant 1 : i32
    %31 = vector.broadcast %c1_i32 : i32 to vector<16x16xi32>
    %32 = arith.addi %29, %31 : vector<16x16xi32>
    %33 = arith.cmpi eq, %30, %32 : vector<16x16xi32>
    %cst_15 = arith.constant 1.000000e+00 : f32
    %cst_16 = arith.constant 0.000000e+00 : f32
    %34 = vector.broadcast %cst_15 : f32 to vector<16x16xf32>
    %35 = vector.broadcast %cst_16 : f32 to vector<16x16xf32>
    %36 = arith.select %33, %34, %35 : vector<16x16xi1>, vector<16x16xf32>
    %cst_17 = arith.constant dense<0.000000e+00> : vector<16x16xf32>
    %37 = tpu.matmul %36, %1, %cst_17 {dimension_numbers = #tpu.dot_dimension_numbers<[1], [0], [0], [1], [0, 0, 1, 1], [], []>} : vector<16x16xf32>, vector<16x16xf32>, vector<16x16xf32> -> vector<16x16xf32>
    %c2 = arith.constant 2 : index
    %c0_18 = arith.constant 0 : index
    %c0_19 = arith.constant 0 : index
    %38 = vector.load %arg3[%c2, %c0_18, %c0_19] : memref<3x16x256xf32, #tpu.memory_space<vmem>>, vector<1x16x256xf32>
    %39 = vector.shape_cast %38 : vector<1x16x256xf32> to vector<16x256xf32>
    %cst_20 = arith.constant dense<0.000000e+00> : vector<16x256xf32>
    %40 = tpu.matmul %37, %39, %cst_20 {dimension_numbers = #tpu.dot_dimension_numbers<[1], [0], [0], [1], [0, 0, 1, 1], [], []>} : vector<16x16xf32>, vector<16x256xf32>, vector<16x256xf32> -> vector<16x256xf32>
    %41 = arith.addf %28, %40 : vector<16x256xf32>
    %c0_21 = arith.constant 0 : index
    %c0_22 = arith.constant 0 : index
    %42 = vector.load %arg4[%c0_21, %c0_22] : memref<1x256xf32, #tpu.memory_space<vmem>>, vector<1x256xf32>
    %43 = vector.broadcast %42 : vector<1x256xf32> to vector<16x256xf32>
    %44 = arith.addf %41, %43 : vector<16x256xf32>
    %45 = tpu.iota {dimensions = array<i32: 0>} : vector<8x16xi32>
    %46 = tpu.iota {dimensions = array<i32: 1>} : vector<8x16xi32>
    %c2_i32 = arith.constant 2 : i32
    %47 = vector.broadcast %c2_i32 : i32 to vector<8x16xi32>
    %48 = arith.muli %47, %45 : vector<8x16xi32>
    %49 = arith.cmpi eq, %46, %48 : vector<8x16xi32>
    %cst_23 = arith.constant 1.000000e+00 : f32
    %cst_24 = arith.constant 0.000000e+00 : f32
    %50 = vector.broadcast %cst_23 : f32 to vector<8x16xf32>
    %51 = vector.broadcast %cst_24 : f32 to vector<8x16xf32>
    %52 = arith.select %49, %50, %51 : vector<8x16xi1>, vector<8x16xf32>
    %53 = tpu.iota {dimensions = array<i32: 0>} : vector<8x16xi32>
    %54 = tpu.iota {dimensions = array<i32: 1>} : vector<8x16xi32>
    %c2_i32_25 = arith.constant 2 : i32
    %55 = vector.broadcast %c2_i32_25 : i32 to vector<8x16xi32>
    %56 = arith.muli %55, %53 : vector<8x16xi32>
    %c1_i32_26 = arith.constant 1 : i32
    %57 = vector.broadcast %c1_i32_26 : i32 to vector<8x16xi32>
    %58 = arith.addi %56, %57 : vector<8x16xi32>
    %59 = arith.cmpi eq, %54, %58 : vector<8x16xi32>
    %cst_27 = arith.constant 1.000000e+00 : f32
    %cst_28 = arith.constant 0.000000e+00 : f32
    %60 = vector.broadcast %cst_27 : f32 to vector<8x16xf32>
    %61 = vector.broadcast %cst_28 : f32 to vector<8x16xf32>
    %62 = arith.select %59, %60, %61 : vector<8x16xi1>, vector<8x16xf32>
    %cst_29 = arith.constant dense<0.000000e+00> : vector<8x256xf32>
    %63 = tpu.matmul %52, %44, %cst_29 {dimension_numbers = #tpu.dot_dimension_numbers<[1], [0], [0], [1], [0, 0, 1, 1], [], []>} : vector<8x16xf32>, vector<16x256xf32>, vector<8x256xf32> -> vector<8x256xf32>
    %cst_30 = arith.constant dense<0.000000e+00> : vector<8x256xf32>
    %64 = tpu.matmul %62, %44, %cst_30 {dimension_numbers = #tpu.dot_dimension_numbers<[1], [0], [0], [1], [0, 0, 1, 1], [], []>} : vector<8x16xf32>, vector<16x256xf32>, vector<8x256xf32> -> vector<8x256xf32>
    %65 = arith.maximumf %63, %64 : vector<8x256xf32>
    %66 = tpu.iota {dimensions = array<i32: 0>} : vector<256x128xi32>
    %67 = tpu.iota {dimensions = array<i32: 1>} : vector<256x128xi32>
    %c2_i32_31 = arith.constant 2 : i32
    %68 = vector.broadcast %c2_i32_31 : i32 to vector<256x128xi32>
    %69 = arith.muli %68, %67 : vector<256x128xi32>
    %70 = arith.cmpi eq, %66, %69 : vector<256x128xi32>
    %cst_32 = arith.constant 1.000000e+00 : f32
    %cst_33 = arith.constant 0.000000e+00 : f32
    %71 = vector.broadcast %cst_32 : f32 to vector<256x128xf32>
    %72 = vector.broadcast %cst_33 : f32 to vector<256x128xf32>
    %73 = arith.select %70, %71, %72 : vector<256x128xi1>, vector<256x128xf32>
    %74 = tpu.iota {dimensions = array<i32: 0>} : vector<256x128xi32>
    %75 = tpu.iota {dimensions = array<i32: 1>} : vector<256x128xi32>
    %c2_i32_34 = arith.constant 2 : i32
    %76 = vector.broadcast %c2_i32_34 : i32 to vector<256x128xi32>
    %77 = arith.muli %76, %75 : vector<256x128xi32>
    %c1_i32_35 = arith.constant 1 : i32
    %78 = vector.broadcast %c1_i32_35 : i32 to vector<256x128xi32>
    %79 = arith.addi %77, %78 : vector<256x128xi32>
    %80 = arith.cmpi eq, %74, %79 : vector<256x128xi32>
    %cst_36 = arith.constant 1.000000e+00 : f32
    %cst_37 = arith.constant 0.000000e+00 : f32
    %81 = vector.broadcast %cst_36 : f32 to vector<256x128xf32>
    %82 = vector.broadcast %cst_37 : f32 to vector<256x128xf32>
    %83 = arith.select %80, %81, %82 : vector<256x128xi1>, vector<256x128xf32>
    %cst_38 = arith.constant dense<0.000000e+00> : vector<8x128xf32>
    %84 = tpu.matmul %65, %73, %cst_38 {dimension_numbers = #tpu.dot_dimension_numbers<[1], [0], [0], [1], [0, 0, 1, 1], [], []>} : vector<8x256xf32>, vector<256x128xf32>, vector<8x128xf32> -> vector<8x128xf32>
    %cst_39 = arith.constant dense<0.000000e+00> : vector<8x128xf32>
    %85 = tpu.matmul %65, %83, %cst_39 {dimension_numbers = #tpu.dot_dimension_numbers<[1], [0], [0], [1], [0, 0, 1, 1], [], []>} : vector<8x256xf32>, vector<256x128xf32>, vector<8x128xf32> -> vector<8x128xf32>
    %86 = arith.maximumf %84, %85 : vector<8x128xf32>
    %cst_40 = arith.constant 0.000000e+00 : f32
    %87 = vector.broadcast %cst_40 : f32 to vector<8x64xf32>
    %88 = tpu.iota {dimensions = array<i32: 0>} : vector<8x8xi32>
    %89 = tpu.iota {dimensions = array<i32: 1>} : vector<8x8xi32>
    %c-1_i32_41 = arith.constant -1 : i32
    %90 = vector.broadcast %c-1_i32_41 : i32 to vector<8x8xi32>
    %91 = arith.addi %88, %90 : vector<8x8xi32>
    %92 = arith.cmpi eq, %89, %91 : vector<8x8xi32>
    %cst_42 = arith.constant 1.000000e+00 : f32
    %cst_43 = arith.constant 0.000000e+00 : f32
    %93 = vector.broadcast %cst_42 : f32 to vector<8x8xf32>
    %94 = vector.broadcast %cst_43 : f32 to vector<8x8xf32>
    %95 = arith.select %92, %93, %94 : vector<8x8xi1>, vector<8x8xf32>
    %cst_44 = arith.constant dense<0.000000e+00> : vector<8x128xf32>
    %96 = tpu.matmul %95, %86, %cst_44 {dimension_numbers = #tpu.dot_dimension_numbers<[1], [0], [0], [1], [0, 0, 1, 1], [], []>} : vector<8x8xf32>, vector<8x128xf32>, vector<8x128xf32> -> vector<8x128xf32>
    %c0_45 = arith.constant 0 : index
    %c0_46 = arith.constant 0 : index
    %c0_47 = arith.constant 0 : index
    %97 = vector.load %arg5[%c0_45, %c0_46, %c0_47] : memref<3x128x64xf32, #tpu.memory_space<vmem>>, vector<1x128x64xf32>
    %98 = vector.shape_cast %97 : vector<1x128x64xf32> to vector<128x64xf32>
    %cst_48 = arith.constant dense<0.000000e+00> : vector<8x64xf32>
    %99 = tpu.matmul %96, %98, %cst_48 {dimension_numbers = #tpu.dot_dimension_numbers<[1], [0], [0], [1], [0, 0, 1, 1], [], []>} : vector<8x128xf32>, vector<128x64xf32>, vector<8x64xf32> -> vector<8x64xf32>
    %100 = arith.addf %87, %99 : vector<8x64xf32>
    %101 = tpu.iota {dimensions = array<i32: 0>} : vector<8x8xi32>
    %102 = tpu.iota {dimensions = array<i32: 1>} : vector<8x8xi32>
    %c0_i32_49 = arith.constant 0 : i32
    %103 = vector.broadcast %c0_i32_49 : i32 to vector<8x8xi32>
    %104 = arith.addi %101, %103 : vector<8x8xi32>
    %105 = arith.cmpi eq, %102, %104 : vector<8x8xi32>
    %cst_50 = arith.constant 1.000000e+00 : f32
    %cst_51 = arith.constant 0.000000e+00 : f32
    %106 = vector.broadcast %cst_50 : f32 to vector<8x8xf32>
    %107 = vector.broadcast %cst_51 : f32 to vector<8x8xf32>
    %108 = arith.select %105, %106, %107 : vector<8x8xi1>, vector<8x8xf32>
    %cst_52 = arith.constant dense<0.000000e+00> : vector<8x128xf32>
    %109 = tpu.matmul %108, %86, %cst_52 {dimension_numbers = #tpu.dot_dimension_numbers<[1], [0], [0], [1], [0, 0, 1, 1], [], []>} : vector<8x8xf32>, vector<8x128xf32>, vector<8x128xf32> -> vector<8x128xf32>
    %c1_53 = arith.constant 1 : index
    %c0_54 = arith.constant 0 : index
    %c0_55 = arith.constant 0 : index
    %110 = vector.load %arg5[%c1_53, %c0_54, %c0_55] : memref<3x128x64xf32, #tpu.memory_space<vmem>>, vector<1x128x64xf32>
    %111 = vector.shape_cast %110 : vector<1x128x64xf32> to vector<128x64xf32>
    %cst_56 = arith.constant dense<0.000000e+00> : vector<8x64xf32>
    %112 = tpu.matmul %109, %111, %cst_56 {dimension_numbers = #tpu.dot_dimension_numbers<[1], [0], [0], [1], [0, 0, 1, 1], [], []>} : vector<8x128xf32>, vector<128x64xf32>, vector<8x64xf32> -> vector<8x64xf32>
    %113 = arith.addf %100, %112 : vector<8x64xf32>
    %114 = tpu.iota {dimensions = array<i32: 0>} : vector<8x8xi32>
    %115 = tpu.iota {dimensions = array<i32: 1>} : vector<8x8xi32>
    %c1_i32_57 = arith.constant 1 : i32
    %116 = vector.broadcast %c1_i32_57 : i32 to vector<8x8xi32>
    %117 = arith.addi %114, %116 : vector<8x8xi32>
    %118 = arith.cmpi eq, %115, %117 : vector<8x8xi32>
    %cst_58 = arith.constant 1.000000e+00 : f32
    %cst_59 = arith.constant 0.000000e+00 : f32
    %119 = vector.broadcast %cst_58 : f32 to vector<8x8xf32>
    %120 = vector.broadcast %cst_59 : f32 to vector<8x8xf32>
    %121 = arith.select %118, %119, %120 : vector<8x8xi1>, vector<8x8xf32>
    %cst_60 = arith.constant dense<0.000000e+00> : vector<8x128xf32>
    %122 = tpu.matmul %121, %86, %cst_60 {dimension_numbers = #tpu.dot_dimension_numbers<[1], [0], [0], [1], [0, 0, 1, 1], [], []>} : vector<8x8xf32>, vector<8x128xf32>, vector<8x128xf32> -> vector<8x128xf32>
    %c2_61 = arith.constant 2 : index
    %c0_62 = arith.constant 0 : index
    %c0_63 = arith.constant 0 : index
    %123 = vector.load %arg5[%c2_61, %c0_62, %c0_63] : memref<3x128x64xf32, #tpu.memory_space<vmem>>, vector<1x128x64xf32>
    %124 = vector.shape_cast %123 : vector<1x128x64xf32> to vector<128x64xf32>
    %cst_64 = arith.constant dense<0.000000e+00> : vector<8x64xf32>
    %125 = tpu.matmul %122, %124, %cst_64 {dimension_numbers = #tpu.dot_dimension_numbers<[1], [0], [0], [1], [0, 0, 1, 1], [], []>} : vector<8x128xf32>, vector<128x64xf32>, vector<8x64xf32> -> vector<8x64xf32>
    %126 = arith.addf %113, %125 : vector<8x64xf32>
    %c0_65 = arith.constant 0 : index
    %c0_66 = arith.constant 0 : index
    %127 = vector.load %arg6[%c0_65, %c0_66] : memref<1x64xf32, #tpu.memory_space<vmem>>, vector<1x64xf32>
    %128 = vector.broadcast %127 : vector<1x64xf32> to vector<8x64xf32>
    %129 = arith.addf %126, %128 : vector<8x64xf32>
    %130 = tpu.iota {dimensions = array<i32: 0>} : vector<4x8xi32>
    %131 = tpu.iota {dimensions = array<i32: 1>} : vector<4x8xi32>
    %c2_i32_67 = arith.constant 2 : i32
    %132 = vector.broadcast %c2_i32_67 : i32 to vector<4x8xi32>
    %133 = arith.muli %132, %130 : vector<4x8xi32>
    %134 = arith.cmpi eq, %131, %133 : vector<4x8xi32>
    %cst_68 = arith.constant 1.000000e+00 : f32
    %cst_69 = arith.constant 0.000000e+00 : f32
    %135 = vector.broadcast %cst_68 : f32 to vector<4x8xf32>
    %136 = vector.broadcast %cst_69 : f32 to vector<4x8xf32>
    %137 = arith.select %134, %135, %136 : vector<4x8xi1>, vector<4x8xf32>
    %138 = tpu.iota {dimensions = array<i32: 0>} : vector<4x8xi32>
    %139 = tpu.iota {dimensions = array<i32: 1>} : vector<4x8xi32>
    %c2_i32_70 = arith.constant 2 : i32
    %140 = vector.broadcast %c2_i32_70 : i32 to vector<4x8xi32>
    %141 = arith.muli %140, %138 : vector<4x8xi32>
    %c1_i32_71 = arith.constant 1 : i32
    %142 = vector.broadcast %c1_i32_71 : i32 to vector<4x8xi32>
    %143 = arith.addi %141, %142 : vector<4x8xi32>
    %144 = arith.cmpi eq, %139, %143 : vector<4x8xi32>
    %cst_72 = arith.constant 1.000000e+00 : f32
    %cst_73 = arith.constant 0.000000e+00 : f32
    %145 = vector.broadcast %cst_72 : f32 to vector<4x8xf32>
    %146 = vector.broadcast %cst_73 : f32 to vector<4x8xf32>
    %147 = arith.select %144, %145, %146 : vector<4x8xi1>, vector<4x8xf32>
    %cst_74 = arith.constant dense<0.000000e+00> : vector<4x64xf32>
    %148 = tpu.matmul %137, %129, %cst_74 {dimension_numbers = #tpu.dot_dimension_numbers<[1], [0], [0], [1], [0, 0, 1, 1], [], []>} : vector<4x8xf32>, vector<8x64xf32>, vector<4x64xf32> -> vector<4x64xf32>
    %cst_75 = arith.constant dense<0.000000e+00> : vector<4x64xf32>
    %149 = tpu.matmul %147, %129, %cst_75 {dimension_numbers = #tpu.dot_dimension_numbers<[1], [0], [0], [1], [0, 0, 1, 1], [], []>} : vector<4x8xf32>, vector<8x64xf32>, vector<4x64xf32> -> vector<4x64xf32>
    %150 = arith.maximumf %148, %149 : vector<4x64xf32>
    %151 = tpu.iota {dimensions = array<i32: 0>} : vector<64x32xi32>
    %152 = tpu.iota {dimensions = array<i32: 1>} : vector<64x32xi32>
    %c2_i32_76 = arith.constant 2 : i32
    %153 = vector.broadcast %c2_i32_76 : i32 to vector<64x32xi32>
    %154 = arith.muli %153, %152 : vector<64x32xi32>
    %155 = arith.cmpi eq, %151, %154 : vector<64x32xi32>
    %cst_77 = arith.constant 1.000000e+00 : f32
    %cst_78 = arith.constant 0.000000e+00 : f32
    %156 = vector.broadcast %cst_77 : f32 to vector<64x32xf32>
    %157 = vector.broadcast %cst_78 : f32 to vector<64x32xf32>
    %158 = arith.select %155, %156, %157 : vector<64x32xi1>, vector<64x32xf32>
    %159 = tpu.iota {dimensions = array<i32: 0>} : vector<64x32xi32>
    %160 = tpu.iota {dimensions = array<i32: 1>} : vector<64x32xi32>
    %c2_i32_79 = arith.constant 2 : i32
    %161 = vector.broadcast %c2_i32_79 : i32 to vector<64x32xi32>
    %162 = arith.muli %161, %160 : vector<64x32xi32>
    %c1_i32_80 = arith.constant 1 : i32
    %163 = vector.broadcast %c1_i32_80 : i32 to vector<64x32xi32>
    %164 = arith.addi %162, %163 : vector<64x32xi32>
    %165 = arith.cmpi eq, %159, %164 : vector<64x32xi32>
    %cst_81 = arith.constant 1.000000e+00 : f32
    %cst_82 = arith.constant 0.000000e+00 : f32
    %166 = vector.broadcast %cst_81 : f32 to vector<64x32xf32>
    %167 = vector.broadcast %cst_82 : f32 to vector<64x32xf32>
    %168 = arith.select %165, %166, %167 : vector<64x32xi1>, vector<64x32xf32>
    %cst_83 = arith.constant dense<0.000000e+00> : vector<4x32xf32>
    %169 = tpu.matmul %150, %158, %cst_83 {dimension_numbers = #tpu.dot_dimension_numbers<[1], [0], [0], [1], [0, 0, 1, 1], [], []>} : vector<4x64xf32>, vector<64x32xf32>, vector<4x32xf32> -> vector<4x32xf32>
    %cst_84 = arith.constant dense<0.000000e+00> : vector<4x32xf32>
    %170 = tpu.matmul %150, %168, %cst_84 {dimension_numbers = #tpu.dot_dimension_numbers<[1], [0], [0], [1], [0, 0, 1, 1], [], []>} : vector<4x64xf32>, vector<64x32xf32>, vector<4x32xf32> -> vector<4x32xf32>
    %171 = arith.maximumf %169, %170 : vector<4x32xf32>
    %cst_85 = arith.constant 0.000000e+00 : f32
    %172 = vector.broadcast %cst_85 : f32 to vector<4x32xf32>
    %173 = tpu.iota {dimensions = array<i32: 0>} : vector<4x4xi32>
    %174 = tpu.iota {dimensions = array<i32: 1>} : vector<4x4xi32>
    %c-1_i32_86 = arith.constant -1 : i32
    %175 = vector.broadcast %c-1_i32_86 : i32 to vector<4x4xi32>
    %176 = arith.addi %173, %175 : vector<4x4xi32>
    %177 = arith.cmpi eq, %174, %176 : vector<4x4xi32>
    %cst_87 = arith.constant 1.000000e+00 : f32
    %cst_88 = arith.constant 0.000000e+00 : f32
    %178 = vector.broadcast %cst_87 : f32 to vector<4x4xf32>
    %179 = vector.broadcast %cst_88 : f32 to vector<4x4xf32>
    %180 = arith.select %177, %178, %179 : vector<4x4xi1>, vector<4x4xf32>
    %cst_89 = arith.constant dense<0.000000e+00> : vector<4x32xf32>
    %181 = tpu.matmul %180, %171, %cst_89 {dimension_numbers = #tpu.dot_dimension_numbers<[1], [0], [0], [1], [0, 0, 1, 1], [], []>} : vector<4x4xf32>, vector<4x32xf32>, vector<4x32xf32> -> vector<4x32xf32>
    %c0_90 = arith.constant 0 : index
    %c0_91 = arith.constant 0 : index
    %c0_92 = arith.constant 0 : index
    %182 = vector.load %arg7[%c0_90, %c0_91, %c0_92] : memref<3x32x32xf32, #tpu.memory_space<vmem>>, vector<1x32x32xf32>
    %183 = vector.shape_cast %182 : vector<1x32x32xf32> to vector<32x32xf32>
    %cst_93 = arith.constant dense<0.000000e+00> : vector<4x32xf32>
    %184 = tpu.matmul %181, %183, %cst_93 {dimension_numbers = #tpu.dot_dimension_numbers<[1], [0], [0], [1], [0, 0, 1, 1], [], []>} : vector<4x32xf32>, vector<32x32xf32>, vector<4x32xf32> -> vector<4x32xf32>
    %185 = arith.addf %172, %184 : vector<4x32xf32>
    %186 = tpu.iota {dimensions = array<i32: 0>} : vector<4x4xi32>
    %187 = tpu.iota {dimensions = array<i32: 1>} : vector<4x4xi32>
    %c0_i32_94 = arith.constant 0 : i32
    %188 = vector.broadcast %c0_i32_94 : i32 to vector<4x4xi32>
    %189 = arith.addi %186, %188 : vector<4x4xi32>
    %190 = arith.cmpi eq, %187, %189 : vector<4x4xi32>
    %cst_95 = arith.constant 1.000000e+00 : f32
    %cst_96 = arith.constant 0.000000e+00 : f32
    %191 = vector.broadcast %cst_95 : f32 to vector<4x4xf32>
    %192 = vector.broadcast %cst_96 : f32 to vector<4x4xf32>
    %193 = arith.select %190, %191, %192 : vector<4x4xi1>, vector<4x4xf32>
    %cst_97 = arith.constant dense<0.000000e+00> : vector<4x32xf32>
    %194 = tpu.matmul %193, %171, %cst_97 {dimension_numbers = #tpu.dot_dimension_numbers<[1], [0], [0], [1], [0, 0, 1, 1], [], []>} : vector<4x4xf32>, vector<4x32xf32>, vector<4x32xf32> -> vector<4x32xf32>
    %c1_98 = arith.constant 1 : index
    %c0_99 = arith.constant 0 : index
    %c0_100 = arith.constant 0 : index
    %195 = vector.load %arg7[%c1_98, %c0_99, %c0_100] : memref<3x32x32xf32, #tpu.memory_space<vmem>>, vector<1x32x32xf32>
    %196 = vector.shape_cast %195 : vector<1x32x32xf32> to vector<32x32xf32>
    %cst_101 = arith.constant dense<0.000000e+00> : vector<4x32xf32>
    %197 = tpu.matmul %194, %196, %cst_101 {dimension_numbers = #tpu.dot_dimension_numbers<[1], [0], [0], [1], [0, 0, 1, 1], [], []>} : vector<4x32xf32>, vector<32x32xf32>, vector<4x32xf32> -> vector<4x32xf32>
    %198 = arith.addf %185, %197 : vector<4x32xf32>
    %199 = tpu.iota {dimensions = array<i32: 0>} : vector<4x4xi32>
    %200 = tpu.iota {dimensions = array<i32: 1>} : vector<4x4xi32>
    %c1_i32_102 = arith.constant 1 : i32
    %201 = vector.broadcast %c1_i32_102 : i32 to vector<4x4xi32>
    %202 = arith.addi %199, %201 : vector<4x4xi32>
    %203 = arith.cmpi eq, %200, %202 : vector<4x4xi32>
    %cst_103 = arith.constant 1.000000e+00 : f32
    %cst_104 = arith.constant 0.000000e+00 : f32
    %204 = vector.broadcast %cst_103 : f32 to vector<4x4xf32>
    %205 = vector.broadcast %cst_104 : f32 to vector<4x4xf32>
    %206 = arith.select %203, %204, %205 : vector<4x4xi1>, vector<4x4xf32>
    %cst_105 = arith.constant dense<0.000000e+00> : vector<4x32xf32>
    %207 = tpu.matmul %206, %171, %cst_105 {dimension_numbers = #tpu.dot_dimension_numbers<[1], [0], [0], [1], [0, 0, 1, 1], [], []>} : vector<4x4xf32>, vector<4x32xf32>, vector<4x32xf32> -> vector<4x32xf32>
    %c2_106 = arith.constant 2 : index
    %c0_107 = arith.constant 0 : index
    %c0_108 = arith.constant 0 : index
    %208 = vector.load %arg7[%c2_106, %c0_107, %c0_108] : memref<3x32x32xf32, #tpu.memory_space<vmem>>, vector<1x32x32xf32>
    %209 = vector.shape_cast %208 : vector<1x32x32xf32> to vector<32x32xf32>
    %cst_109 = arith.constant dense<0.000000e+00> : vector<4x32xf32>
    %210 = tpu.matmul %207, %209, %cst_109 {dimension_numbers = #tpu.dot_dimension_numbers<[1], [0], [0], [1], [0, 0, 1, 1], [], []>} : vector<4x32xf32>, vector<32x32xf32>, vector<4x32xf32> -> vector<4x32xf32>
    %211 = arith.addf %198, %210 : vector<4x32xf32>
    %c0_110 = arith.constant 0 : index
    %c0_111 = arith.constant 0 : index
    %212 = vector.load %arg8[%c0_110, %c0_111] : memref<1x32xf32, #tpu.memory_space<vmem>>, vector<1x32xf32>
    %213 = vector.broadcast %212 : vector<1x32xf32> to vector<4x32xf32>
    %214 = arith.addf %211, %213 : vector<4x32xf32>
    %215 = tpu.iota {dimensions = array<i32: 0>} : vector<2x4xi32>
    %216 = tpu.iota {dimensions = array<i32: 1>} : vector<2x4xi32>
    %c2_i32_112 = arith.constant 2 : i32
    %217 = vector.broadcast %c2_i32_112 : i32 to vector<2x4xi32>
    %218 = arith.muli %217, %215 : vector<2x4xi32>
    %219 = arith.cmpi eq, %216, %218 : vector<2x4xi32>
    %cst_113 = arith.constant 1.000000e+00 : f32
    %cst_114 = arith.constant 0.000000e+00 : f32
    %220 = vector.broadcast %cst_113 : f32 to vector<2x4xf32>
    %221 = vector.broadcast %cst_114 : f32 to vector<2x4xf32>
    %222 = arith.select %219, %220, %221 : vector<2x4xi1>, vector<2x4xf32>
    %223 = tpu.iota {dimensions = array<i32: 0>} : vector<2x4xi32>
    %224 = tpu.iota {dimensions = array<i32: 1>} : vector<2x4xi32>
    %c2_i32_115 = arith.constant 2 : i32
    %225 = vector.broadcast %c2_i32_115 : i32 to vector<2x4xi32>
    %226 = arith.muli %225, %223 : vector<2x4xi32>
    %c1_i32_116 = arith.constant 1 : i32
    %227 = vector.broadcast %c1_i32_116 : i32 to vector<2x4xi32>
    %228 = arith.addi %226, %227 : vector<2x4xi32>
    %229 = arith.cmpi eq, %224, %228 : vector<2x4xi32>
    %cst_117 = arith.constant 1.000000e+00 : f32
    %cst_118 = arith.constant 0.000000e+00 : f32
    %230 = vector.broadcast %cst_117 : f32 to vector<2x4xf32>
    %231 = vector.broadcast %cst_118 : f32 to vector<2x4xf32>
    %232 = arith.select %229, %230, %231 : vector<2x4xi1>, vector<2x4xf32>
    %cst_119 = arith.constant dense<0.000000e+00> : vector<2x32xf32>
    %233 = tpu.matmul %222, %214, %cst_119 {dimension_numbers = #tpu.dot_dimension_numbers<[1], [0], [0], [1], [0, 0, 1, 1], [], []>} : vector<2x4xf32>, vector<4x32xf32>, vector<2x32xf32> -> vector<2x32xf32>
    %cst_120 = arith.constant dense<0.000000e+00> : vector<2x32xf32>
    %234 = tpu.matmul %232, %214, %cst_120 {dimension_numbers = #tpu.dot_dimension_numbers<[1], [0], [0], [1], [0, 0, 1, 1], [], []>} : vector<2x4xf32>, vector<4x32xf32>, vector<2x32xf32> -> vector<2x32xf32>
    %235 = arith.maximumf %233, %234 : vector<2x32xf32>
    %236 = tpu.iota {dimensions = array<i32: 0>} : vector<32x16xi32>
    %237 = tpu.iota {dimensions = array<i32: 1>} : vector<32x16xi32>
    %c2_i32_121 = arith.constant 2 : i32
    %238 = vector.broadcast %c2_i32_121 : i32 to vector<32x16xi32>
    %239 = arith.muli %238, %237 : vector<32x16xi32>
    %240 = arith.cmpi eq, %236, %239 : vector<32x16xi32>
    %cst_122 = arith.constant 1.000000e+00 : f32
    %cst_123 = arith.constant 0.000000e+00 : f32
    %241 = vector.broadcast %cst_122 : f32 to vector<32x16xf32>
    %242 = vector.broadcast %cst_123 : f32 to vector<32x16xf32>
    %243 = arith.select %240, %241, %242 : vector<32x16xi1>, vector<32x16xf32>
    %244 = tpu.iota {dimensions = array<i32: 0>} : vector<32x16xi32>
    %245 = tpu.iota {dimensions = array<i32: 1>} : vector<32x16xi32>
    %c2_i32_124 = arith.constant 2 : i32
    %246 = vector.broadcast %c2_i32_124 : i32 to vector<32x16xi32>
    %247 = arith.muli %246, %245 : vector<32x16xi32>
    %c1_i32_125 = arith.constant 1 : i32
    %248 = vector.broadcast %c1_i32_125 : i32 to vector<32x16xi32>
    %249 = arith.addi %247, %248 : vector<32x16xi32>
    %250 = arith.cmpi eq, %244, %249 : vector<32x16xi32>
    %cst_126 = arith.constant 1.000000e+00 : f32
    %cst_127 = arith.constant 0.000000e+00 : f32
    %251 = vector.broadcast %cst_126 : f32 to vector<32x16xf32>
    %252 = vector.broadcast %cst_127 : f32 to vector<32x16xf32>
    %253 = arith.select %250, %251, %252 : vector<32x16xi1>, vector<32x16xf32>
    %cst_128 = arith.constant dense<0.000000e+00> : vector<2x16xf32>
    %254 = tpu.matmul %235, %243, %cst_128 {dimension_numbers = #tpu.dot_dimension_numbers<[1], [0], [0], [1], [0, 0, 1, 1], [], []>} : vector<2x32xf32>, vector<32x16xf32>, vector<2x16xf32> -> vector<2x16xf32>
    %cst_129 = arith.constant dense<0.000000e+00> : vector<2x16xf32>
    %255 = tpu.matmul %235, %253, %cst_129 {dimension_numbers = #tpu.dot_dimension_numbers<[1], [0], [0], [1], [0, 0, 1, 1], [], []>} : vector<2x32xf32>, vector<32x16xf32>, vector<2x16xf32> -> vector<2x16xf32>
    %256 = arith.maximumf %254, %255 : vector<2x16xf32>
    %cst_130 = arith.constant 0.000000e+00 : f32
    %257 = vector.broadcast %cst_130 : f32 to vector<2x16xf32>
    %258 = tpu.iota {dimensions = array<i32: 0>} : vector<2x2xi32>
    %259 = tpu.iota {dimensions = array<i32: 1>} : vector<2x2xi32>
    %c-1_i32_131 = arith.constant -1 : i32
    %260 = vector.broadcast %c-1_i32_131 : i32 to vector<2x2xi32>
    %261 = arith.addi %258, %260 : vector<2x2xi32>
    %262 = arith.cmpi eq, %259, %261 : vector<2x2xi32>
    %cst_132 = arith.constant 1.000000e+00 : f32
    %cst_133 = arith.constant 0.000000e+00 : f32
    %263 = vector.broadcast %cst_132 : f32 to vector<2x2xf32>
    %264 = vector.broadcast %cst_133 : f32 to vector<2x2xf32>
    %265 = arith.select %262, %263, %264 : vector<2x2xi1>, vector<2x2xf32>
    %cst_134 = arith.constant dense<0.000000e+00> : vector<2x16xf32>
    %266 = tpu.matmul %265, %256, %cst_134 {dimension_numbers = #tpu.dot_dimension_numbers<[1], [0], [0], [1], [0, 0, 1, 1], [], []>} : vector<2x2xf32>, vector<2x16xf32>, vector<2x16xf32> -> vector<2x16xf32>
    %c0_135 = arith.constant 0 : index
    %c0_136 = arith.constant 0 : index
    %c0_137 = arith.constant 0 : index
    %267 = vector.load %arg9[%c0_135, %c0_136, %c0_137] : memref<3x16x16xf32, #tpu.memory_space<vmem>>, vector<1x16x16xf32>
    %268 = vector.shape_cast %267 : vector<1x16x16xf32> to vector<16x16xf32>
    %cst_138 = arith.constant dense<0.000000e+00> : vector<2x16xf32>
    %269 = tpu.matmul %266, %268, %cst_138 {dimension_numbers = #tpu.dot_dimension_numbers<[1], [0], [0], [1], [0, 0, 1, 1], [], []>} : vector<2x16xf32>, vector<16x16xf32>, vector<2x16xf32> -> vector<2x16xf32>
    %270 = arith.addf %257, %269 : vector<2x16xf32>
    %271 = tpu.iota {dimensions = array<i32: 0>} : vector<2x2xi32>
    %272 = tpu.iota {dimensions = array<i32: 1>} : vector<2x2xi32>
    %c0_i32_139 = arith.constant 0 : i32
    %273 = vector.broadcast %c0_i32_139 : i32 to vector<2x2xi32>
    %274 = arith.addi %271, %273 : vector<2x2xi32>
    %275 = arith.cmpi eq, %272, %274 : vector<2x2xi32>
    %cst_140 = arith.constant 1.000000e+00 : f32
    %cst_141 = arith.constant 0.000000e+00 : f32
    %276 = vector.broadcast %cst_140 : f32 to vector<2x2xf32>
    %277 = vector.broadcast %cst_141 : f32 to vector<2x2xf32>
    %278 = arith.select %275, %276, %277 : vector<2x2xi1>, vector<2x2xf32>
    %cst_142 = arith.constant dense<0.000000e+00> : vector<2x16xf32>
    %279 = tpu.matmul %278, %256, %cst_142 {dimension_numbers = #tpu.dot_dimension_numbers<[1], [0], [0], [1], [0, 0, 1, 1], [], []>} : vector<2x2xf32>, vector<2x16xf32>, vector<2x16xf32> -> vector<2x16xf32>
    %c1_143 = arith.constant 1 : index
    %c0_144 = arith.constant 0 : index
    %c0_145 = arith.constant 0 : index
    %280 = vector.load %arg9[%c1_143, %c0_144, %c0_145] : memref<3x16x16xf32, #tpu.memory_space<vmem>>, vector<1x16x16xf32>
    %281 = vector.shape_cast %280 : vector<1x16x16xf32> to vector<16x16xf32>
    %cst_146 = arith.constant dense<0.000000e+00> : vector<2x16xf32>
    %282 = tpu.matmul %279, %281, %cst_146 {dimension_numbers = #tpu.dot_dimension_numbers<[1], [0], [0], [1], [0, 0, 1, 1], [], []>} : vector<2x16xf32>, vector<16x16xf32>, vector<2x16xf32> -> vector<2x16xf32>
    %283 = arith.addf %270, %282 : vector<2x16xf32>
    %284 = tpu.iota {dimensions = array<i32: 0>} : vector<2x2xi32>
    %285 = tpu.iota {dimensions = array<i32: 1>} : vector<2x2xi32>
    %c1_i32_147 = arith.constant 1 : i32
    %286 = vector.broadcast %c1_i32_147 : i32 to vector<2x2xi32>
    %287 = arith.addi %284, %286 : vector<2x2xi32>
    %288 = arith.cmpi eq, %285, %287 : vector<2x2xi32>
    %cst_148 = arith.constant 1.000000e+00 : f32
    %cst_149 = arith.constant 0.000000e+00 : f32
    %289 = vector.broadcast %cst_148 : f32 to vector<2x2xf32>
    %290 = vector.broadcast %cst_149 : f32 to vector<2x2xf32>
    %291 = arith.select %288, %289, %290 : vector<2x2xi1>, vector<2x2xf32>
    %cst_150 = arith.constant dense<0.000000e+00> : vector<2x16xf32>
    %292 = tpu.matmul %291, %256, %cst_150 {dimension_numbers = #tpu.dot_dimension_numbers<[1], [0], [0], [1], [0, 0, 1, 1], [], []>} : vector<2x2xf32>, vector<2x16xf32>, vector<2x16xf32> -> vector<2x16xf32>
    %c2_151 = arith.constant 2 : index
    %c0_152 = arith.constant 0 : index
    %c0_153 = arith.constant 0 : index
    %293 = vector.load %arg9[%c2_151, %c0_152, %c0_153] : memref<3x16x16xf32, #tpu.memory_space<vmem>>, vector<1x16x16xf32>
    %294 = vector.shape_cast %293 : vector<1x16x16xf32> to vector<16x16xf32>
    %cst_154 = arith.constant dense<0.000000e+00> : vector<2x16xf32>
    %295 = tpu.matmul %292, %294, %cst_154 {dimension_numbers = #tpu.dot_dimension_numbers<[1], [0], [0], [1], [0, 0, 1, 1], [], []>} : vector<2x16xf32>, vector<16x16xf32>, vector<2x16xf32> -> vector<2x16xf32>
    %296 = arith.addf %283, %295 : vector<2x16xf32>
    %c0_155 = arith.constant 0 : index
    %c0_156 = arith.constant 0 : index
    %297 = vector.load %arg10[%c0_155, %c0_156] : memref<1x16xf32, #tpu.memory_space<vmem>>, vector<1x16xf32>
    %298 = vector.broadcast %297 : vector<1x16xf32> to vector<2x16xf32>
    %299 = arith.addf %296, %298 : vector<2x16xf32>
    %cst_157 = arith.constant 0.000000e+00 : f32
    %300 = vector.broadcast %cst_157 : f32 to vector<2x32xf32>
    %301 = tpu.iota {dimensions = array<i32: 0>} : vector<2x2xi32>
    %302 = tpu.iota {dimensions = array<i32: 1>} : vector<2x2xi32>
    %c-1_i32_158 = arith.constant -1 : i32
    %303 = vector.broadcast %c-1_i32_158 : i32 to vector<2x2xi32>
    %304 = arith.addi %301, %303 : vector<2x2xi32>
    %305 = arith.cmpi eq, %302, %304 : vector<2x2xi32>
    %cst_159 = arith.constant 1.000000e+00 : f32
    %cst_160 = arith.constant 0.000000e+00 : f32
    %306 = vector.broadcast %cst_159 : f32 to vector<2x2xf32>
    %307 = vector.broadcast %cst_160 : f32 to vector<2x2xf32>
    %308 = arith.select %305, %306, %307 : vector<2x2xi1>, vector<2x2xf32>
    %cst_161 = arith.constant dense<0.000000e+00> : vector<2x16xf32>
    %309 = tpu.matmul %308, %299, %cst_161 {dimension_numbers = #tpu.dot_dimension_numbers<[1], [0], [0], [1], [0, 0, 1, 1], [], []>} : vector<2x2xf32>, vector<2x16xf32>, vector<2x16xf32> -> vector<2x16xf32>
    %c0_162 = arith.constant 0 : index
    %c0_163 = arith.constant 0 : index
    %c0_164 = arith.constant 0 : index
    %310 = vector.load %arg11[%c0_162, %c0_163, %c0_164] : memref<3x16x32xf32, #tpu.memory_space<vmem>>, vector<1x16x32xf32>
    %311 = vector.shape_cast %310 : vector<1x16x32xf32> to vector<16x32xf32>
    %cst_165 = arith.constant dense<0.000000e+00> : vector<2x32xf32>
    %312 = tpu.matmul %309, %311, %cst_165 {dimension_numbers = #tpu.dot_dimension_numbers<[1], [0], [0], [1], [0, 0, 1, 1], [], []>} : vector<2x16xf32>, vector<16x32xf32>, vector<2x32xf32> -> vector<2x32xf32>
    %313 = arith.addf %300, %312 : vector<2x32xf32>
    %314 = tpu.iota {dimensions = array<i32: 0>} : vector<2x2xi32>
    %315 = tpu.iota {dimensions = array<i32: 1>} : vector<2x2xi32>
    %c0_i32_166 = arith.constant 0 : i32
    %316 = vector.broadcast %c0_i32_166 : i32 to vector<2x2xi32>
    %317 = arith.addi %314, %316 : vector<2x2xi32>
    %318 = arith.cmpi eq, %315, %317 : vector<2x2xi32>
    %cst_167 = arith.constant 1.000000e+00 : f32
    %cst_168 = arith.constant 0.000000e+00 : f32
    %319 = vector.broadcast %cst_167 : f32 to vector<2x2xf32>
    %320 = vector.broadcast %cst_168 : f32 to vector<2x2xf32>
    %321 = arith.select %318, %319, %320 : vector<2x2xi1>, vector<2x2xf32>
    %cst_169 = arith.constant dense<0.000000e+00> : vector<2x16xf32>
    %322 = tpu.matmul %321, %299, %cst_169 {dimension_numbers = #tpu.dot_dimension_numbers<[1], [0], [0], [1], [0, 0, 1, 1], [], []>} : vector<2x2xf32>, vector<2x16xf32>, vector<2x16xf32> -> vector<2x16xf32>
    %c1_170 = arith.constant 1 : index
    %c0_171 = arith.constant 0 : index
    %c0_172 = arith.constant 0 : index
    %323 = vector.load %arg11[%c1_170, %c0_171, %c0_172] : memref<3x16x32xf32, #tpu.memory_space<vmem>>, vector<1x16x32xf32>
    %324 = vector.shape_cast %323 : vector<1x16x32xf32> to vector<16x32xf32>
    %cst_173 = arith.constant dense<0.000000e+00> : vector<2x32xf32>
    %325 = tpu.matmul %322, %324, %cst_173 {dimension_numbers = #tpu.dot_dimension_numbers<[1], [0], [0], [1], [0, 0, 1, 1], [], []>} : vector<2x16xf32>, vector<16x32xf32>, vector<2x32xf32> -> vector<2x32xf32>
    %326 = arith.addf %313, %325 : vector<2x32xf32>
    %327 = tpu.iota {dimensions = array<i32: 0>} : vector<2x2xi32>
    %328 = tpu.iota {dimensions = array<i32: 1>} : vector<2x2xi32>
    %c1_i32_174 = arith.constant 1 : i32
    %329 = vector.broadcast %c1_i32_174 : i32 to vector<2x2xi32>
    %330 = arith.addi %327, %329 : vector<2x2xi32>
    %331 = arith.cmpi eq, %328, %330 : vector<2x2xi32>
    %cst_175 = arith.constant 1.000000e+00 : f32
    %cst_176 = arith.constant 0.000000e+00 : f32
    %332 = vector.broadcast %cst_175 : f32 to vector<2x2xf32>
    %333 = vector.broadcast %cst_176 : f32 to vector<2x2xf32>
    %334 = arith.select %331, %332, %333 : vector<2x2xi1>, vector<2x2xf32>
    %cst_177 = arith.constant dense<0.000000e+00> : vector<2x16xf32>
    %335 = tpu.matmul %334, %299, %cst_177 {dimension_numbers = #tpu.dot_dimension_numbers<[1], [0], [0], [1], [0, 0, 1, 1], [], []>} : vector<2x2xf32>, vector<2x16xf32>, vector<2x16xf32> -> vector<2x16xf32>
    %c2_178 = arith.constant 2 : index
    %c0_179 = arith.constant 0 : index
    %c0_180 = arith.constant 0 : index
    %336 = vector.load %arg11[%c2_178, %c0_179, %c0_180] : memref<3x16x32xf32, #tpu.memory_space<vmem>>, vector<1x16x32xf32>
    %337 = vector.shape_cast %336 : vector<1x16x32xf32> to vector<16x32xf32>
    %cst_181 = arith.constant dense<0.000000e+00> : vector<2x32xf32>
    %338 = tpu.matmul %335, %337, %cst_181 {dimension_numbers = #tpu.dot_dimension_numbers<[1], [0], [0], [1], [0, 0, 1, 1], [], []>} : vector<2x16xf32>, vector<16x32xf32>, vector<2x32xf32> -> vector<2x32xf32>
    %339 = arith.addf %326, %338 : vector<2x32xf32>
    %c0_182 = arith.constant 0 : index
    %c0_183 = arith.constant 0 : index
    %340 = vector.load %arg12[%c0_182, %c0_183] : memref<1x32xf32, #tpu.memory_space<vmem>>, vector<1x32xf32>
    %341 = vector.broadcast %340 : vector<1x32xf32> to vector<2x32xf32>
    %342 = arith.addf %339, %341 : vector<2x32xf32>
    %343 = vector.extract_strided_slice %342 {offsets = [0, 0], sizes = [2, 16], strides = [1, 1]} : vector<2x32xf32> to vector<2x16xf32>
    %344 = vector.extract_strided_slice %342 {offsets = [0, 16], sizes = [2, 16], strides = [1, 1]} : vector<2x32xf32> to vector<2x16xf32>
    %c0_184 = arith.constant 0 : index
    %c0_185 = arith.constant 0 : index
    %c0_186 = arith.constant 0 : index
    %345 = vector.load %arg20[%c0_184, %c0_185, %c0_186] : memref<1x2x16xf32, #tpu.memory_space<vmem>>, vector<1x2x16xf32>
    %346 = vector.shape_cast %345 : vector<1x2x16xf32> to vector<2x16xf32>
    %347 = vector.shape_cast %343 : vector<2x16xf32> to vector<1x2x16xf32>
    tpu.vector_store %arg20[%c0_184, %c0_185, %c0_186], %347 {strides = array<i32>} : memref<1x2x16xf32, #tpu.memory_space<vmem>>, vector<1x2x16xf32>,
    %c0_187 = arith.constant 0 : index
    %c0_188 = arith.constant 0 : index
    %c0_189 = arith.constant 0 : index
    %348 = vector.load %arg21[%c0_187, %c0_188, %c0_189] : memref<1x2x16xf32, #tpu.memory_space<vmem>>, vector<1x2x16xf32>
    %349 = vector.shape_cast %348 : vector<1x2x16xf32> to vector<2x16xf32>
    %350 = vector.shape_cast %344 : vector<2x16xf32> to vector<1x2x16xf32>
    tpu.vector_store %arg21[%c0_187, %c0_188, %c0_189], %350 {strides = array<i32>} : memref<1x2x16xf32, #tpu.memory_space<vmem>>, vector<1x2x16xf32>,
    %cst_190 = arith.constant 5.000000e-01 : f32
    %351 = vector.broadcast %cst_190 : f32 to vector<2x16xf32>
    %352 = arith.mulf %351, %344 : vector<2x16xf32>
    %353 = math.exp %352 : vector<2x16xf32>
    %c0_191 = arith.constant 0 : index
    %c0_192 = arith.constant 0 : index
    %c0_193 = arith.constant 0 : index
    %354 = vector.load %arg2[%c0_191, %c0_192, %c0_193] : memref<1x2x16xf32, #tpu.memory_space<vmem>>, vector<1x2x16xf32>
    %355 = vector.shape_cast %354 : vector<1x2x16xf32> to vector<2x16xf32>
    %356 = arith.mulf %353, %355 : vector<2x16xf32>
    %357 = arith.addf %343, %356 : vector<2x16xf32>
    %358 = tpu.iota {dimensions = array<i32: 0>} : vector<4x2xi32>
    %359 = tpu.iota {dimensions = array<i32: 1>} : vector<4x2xi32>
    %c2_i32_194 = arith.constant 2 : i32
    %360 = vector.broadcast %c2_i32_194 : i32 to vector<4x2xi32>
    %361 = arith.muli %360, %359 : vector<4x2xi32>
    %362 = arith.cmpi eq, %358, %361 : vector<4x2xi32>
    %c2_i32_195 = arith.constant 2 : i32
    %363 = vector.broadcast %c2_i32_195 : i32 to vector<4x2xi32>
    %364 = arith.muli %363, %359 : vector<4x2xi32>
    %c1_i32_196 = arith.constant 1 : i32
    %365 = vector.broadcast %c1_i32_196 : i32 to vector<4x2xi32>
    %366 = arith.addi %364, %365 : vector<4x2xi32>
    %367 = arith.cmpi eq, %358, %366 : vector<4x2xi32>
    %368 = arith.ori %362, %367 : vector<4x2xi1>
    %cst_197 = arith.constant 1.000000e+00 : f32
    %cst_198 = arith.constant 0.000000e+00 : f32
    %369 = vector.broadcast %cst_197 : f32 to vector<4x2xf32>
    %370 = vector.broadcast %cst_198 : f32 to vector<4x2xf32>
    %371 = arith.select %368, %369, %370 : vector<4x2xi1>, vector<4x2xf32>
    %372 = tpu.iota {dimensions = array<i32: 0>} : vector<16x32xi32>
    %373 = tpu.iota {dimensions = array<i32: 1>} : vector<16x32xi32>
    %c2_i32_199 = arith.constant 2 : i32
    %374 = vector.broadcast %c2_i32_199 : i32 to vector<16x32xi32>
    %375 = arith.muli %374, %372 : vector<16x32xi32>
    %376 = arith.cmpi eq, %373, %375 : vector<16x32xi32>
    %c2_i32_200 = arith.constant 2 : i32
    %377 = vector.broadcast %c2_i32_200 : i32 to vector<16x32xi32>
    %378 = arith.muli %377, %372 : vector<16x32xi32>
    %c1_i32_201 = arith.constant 1 : i32
    %379 = vector.broadcast %c1_i32_201 : i32 to vector<16x32xi32>
    %380 = arith.addi %378, %379 : vector<16x32xi32>
    %381 = arith.cmpi eq, %373, %380 : vector<16x32xi32>
    %382 = arith.ori %376, %381 : vector<16x32xi1>
    %cst_202 = arith.constant 1.000000e+00 : f32
    %cst_203 = arith.constant 0.000000e+00 : f32
    %383 = vector.broadcast %cst_202 : f32 to vector<16x32xf32>
    %384 = vector.broadcast %cst_203 : f32 to vector<16x32xf32>
    %385 = arith.select %382, %383, %384 : vector<16x32xi1>, vector<16x32xf32>
    %cst_204 = arith.constant dense<0.000000e+00> : vector<2x32xf32>
    %386 = tpu.matmul %357, %385, %cst_204 {dimension_numbers = #tpu.dot_dimension_numbers<[1], [0], [0], [1], [0, 0, 1, 1], [], []>} : vector<2x16xf32>, vector<16x32xf32>, vector<2x32xf32> -> vector<2x32xf32>
    %cst_205 = arith.constant dense<0.000000e+00> : vector<4x32xf32>
    %387 = tpu.matmul %371, %386, %cst_205 {dimension_numbers = #tpu.dot_dimension_numbers<[1], [0], [0], [1], [0, 0, 1, 1], [], []>} : vector<4x2xf32>, vector<2x32xf32>, vector<4x32xf32> -> vector<4x32xf32>
    %cst_206 = arith.constant 0.000000e+00 : f32
    %388 = vector.broadcast %cst_206 : f32 to vector<4x32xf32>
    %389 = tpu.iota {dimensions = array<i32: 0>} : vector<4x4xi32>
    %390 = tpu.iota {dimensions = array<i32: 1>} : vector<4x4xi32>
    %c-1_i32_207 = arith.constant -1 : i32
    %391 = vector.broadcast %c-1_i32_207 : i32 to vector<4x4xi32>
    %392 = arith.addi %389, %391 : vector<4x4xi32>
    %393 = arith.cmpi eq, %390, %392 : vector<4x4xi32>
    %cst_208 = arith.constant 1.000000e+00 : f32
    %cst_209 = arith.constant 0.000000e+00 : f32
    %394 = vector.broadcast %cst_208 : f32 to vector<4x4xf32>
    %395 = vector.broadcast %cst_209 : f32 to vector<4x4xf32>
    %396 = arith.select %393, %394, %395 : vector<4x4xi1>, vector<4x4xf32>
    %cst_210 = arith.constant dense<0.000000e+00> : vector<4x32xf32>
    %397 = tpu.matmul %396, %387, %cst_210 {dimension_numbers = #tpu.dot_dimension_numbers<[1], [0], [0], [1], [0, 0, 1, 1], [], []>} : vector<4x4xf32>, vector<4x32xf32>, vector<4x32xf32> -> vector<4x32xf32>
    %c0_211 = arith.constant 0 : index
    %c0_212 = arith.constant 0 : index
    %c0_213 = arith.constant 0 : index
    %398 = vector.load %arg13[%c0_211, %c0_212, %c0_213] : memref<3x32x32xf32, #tpu.memory_space<vmem>>, vector<1x32x32xf32>
    %399 = vector.shape_cast %398 : vector<1x32x32xf32> to vector<32x32xf32>
    %cst_214 = arith.constant dense<0.000000e+00> : vector<4x32xf32>
    %400 = tpu.matmul %397, %399, %cst_214 {dimension_numbers = #tpu.dot_dimension_numbers<[1], [0], [0], [1], [0, 0, 1, 1], [], []>} : vector<4x32xf32>, vector<32x32xf32>, vector<4x32xf32> -> vector<4x32xf32>
    %401 = arith.addf %388, %400 : vector<4x32xf32>
    %402 = tpu.iota {dimensions = array<i32: 0>} : vector<4x4xi32>
    %403 = tpu.iota {dimensions = array<i32: 1>} : vector<4x4xi32>
    %c0_i32_215 = arith.constant 0 : i32
    %404 = vector.broadcast %c0_i32_215 : i32 to vector<4x4xi32>
    %405 = arith.addi %402, %404 : vector<4x4xi32>
    %406 = arith.cmpi eq, %403, %405 : vector<4x4xi32>
    %cst_216 = arith.constant 1.000000e+00 : f32
    %cst_217 = arith.constant 0.000000e+00 : f32
    %407 = vector.broadcast %cst_216 : f32 to vector<4x4xf32>
    %408 = vector.broadcast %cst_217 : f32 to vector<4x4xf32>
    %409 = arith.select %406, %407, %408 : vector<4x4xi1>, vector<4x4xf32>
    %cst_218 = arith.constant dense<0.000000e+00> : vector<4x32xf32>
    %410 = tpu.matmul %409, %387, %cst_218 {dimension_numbers = #tpu.dot_dimension_numbers<[1], [0], [0], [1], [0, 0, 1, 1], [], []>} : vector<4x4xf32>, vector<4x32xf32>, vector<4x32xf32> -> vector<4x32xf32>
    %c1_219 = arith.constant 1 : index
    %c0_220 = arith.constant 0 : index
    %c0_221 = arith.constant 0 : index
    %411 = vector.load %arg13[%c1_219, %c0_220, %c0_221] : memref<3x32x32xf32, #tpu.memory_space<vmem>>, vector<1x32x32xf32>
    %412 = vector.shape_cast %411 : vector<1x32x32xf32> to vector<32x32xf32>
    %cst_222 = arith.constant dense<0.000000e+00> : vector<4x32xf32>
    %413 = tpu.matmul %410, %412, %cst_222 {dimension_numbers = #tpu.dot_dimension_numbers<[1], [0], [0], [1], [0, 0, 1, 1], [], []>} : vector<4x32xf32>, vector<32x32xf32>, vector<4x32xf32> -> vector<4x32xf32>
    %414 = arith.addf %401, %413 : vector<4x32xf32>
    %415 = tpu.iota {dimensions = array<i32: 0>} : vector<4x4xi32>
    %416 = tpu.iota {dimensions = array<i32: 1>} : vector<4x4xi32>
    %c1_i32_223 = arith.constant 1 : i32
    %417 = vector.broadcast %c1_i32_223 : i32 to vector<4x4xi32>
    %418 = arith.addi %415, %417 : vector<4x4xi32>
    %419 = arith.cmpi eq, %416, %418 : vector<4x4xi32>
    %cst_224 = arith.constant 1.000000e+00 : f32
    %cst_225 = arith.constant 0.000000e+00 : f32
    %420 = vector.broadcast %cst_224 : f32 to vector<4x4xf32>
    %421 = vector.broadcast %cst_225 : f32 to vector<4x4xf32>
    %422 = arith.select %419, %420, %421 : vector<4x4xi1>, vector<4x4xf32>
    %cst_226 = arith.constant dense<0.000000e+00> : vector<4x32xf32>
    %423 = tpu.matmul %422, %387, %cst_226 {dimension_numbers = #tpu.dot_dimension_numbers<[1], [0], [0], [1], [0, 0, 1, 1], [], []>} : vector<4x4xf32>, vector<4x32xf32>, vector<4x32xf32> -> vector<4x32xf32>
    %c2_227 = arith.constant 2 : index
    %c0_228 = arith.constant 0 : index
    %c0_229 = arith.constant 0 : index
    %424 = vector.load %arg13[%c2_227, %c0_228, %c0_229] : memref<3x32x32xf32, #tpu.memory_space<vmem>>, vector<1x32x32xf32>
    %425 = vector.shape_cast %424 : vector<1x32x32xf32> to vector<32x32xf32>
    %cst_230 = arith.constant dense<0.000000e+00> : vector<4x32xf32>
    %426 = tpu.matmul %423, %425, %cst_230 {dimension_numbers = #tpu.dot_dimension_numbers<[1], [0], [0], [1], [0, 0, 1, 1], [], []>} : vector<4x32xf32>, vector<32x32xf32>, vector<4x32xf32> -> vector<4x32xf32>
    %427 = arith.addf %414, %426 : vector<4x32xf32>
    %c0_231 = arith.constant 0 : index
    %c0_232 = arith.constant 0 : index
    %428 = vector.load %arg14[%c0_231, %c0_232] : memref<1x32xf32, #tpu.memory_space<vmem>>, vector<1x32xf32>
    %429 = vector.broadcast %428 : vector<1x32xf32> to vector<4x32xf32>
    %430 = arith.addf %427, %429 : vector<4x32xf32>
    %431 = tpu.iota {dimensions = array<i32: 0>} : vector<8x4xi32>
    %432 = tpu.iota {dimensions = array<i32: 1>} : vector<8x4xi32>
    %c2_i32_233 = arith.constant 2 : i32
    %433 = vector.broadcast %c2_i32_233 : i32 to vector<8x4xi32>
    %434 = arith.muli %433, %432 : vector<8x4xi32>
    %435 = arith.cmpi eq, %431, %434 : vector<8x4xi32>
    %c2_i32_234 = arith.constant 2 : i32
    %436 = vector.broadcast %c2_i32_234 : i32 to vector<8x4xi32>
    %437 = arith.muli %436, %432 : vector<8x4xi32>
    %c1_i32_235 = arith.constant 1 : i32
    %438 = vector.broadcast %c1_i32_235 : i32 to vector<8x4xi32>
    %439 = arith.addi %437, %438 : vector<8x4xi32>
    %440 = arith.cmpi eq, %431, %439 : vector<8x4xi32>
    %441 = arith.ori %435, %440 : vector<8x4xi1>
    %cst_236 = arith.constant 1.000000e+00 : f32
    %cst_237 = arith.constant 0.000000e+00 : f32
    %442 = vector.broadcast %cst_236 : f32 to vector<8x4xf32>
    %443 = vector.broadcast %cst_237 : f32 to vector<8x4xf32>
    %444 = arith.select %441, %442, %443 : vector<8x4xi1>, vector<8x4xf32>
    %445 = tpu.iota {dimensions = array<i32: 0>} : vector<32x64xi32>
    %446 = tpu.iota {dimensions = array<i32: 1>} : vector<32x64xi32>
    %c2_i32_238 = arith.constant 2 : i32
    %447 = vector.broadcast %c2_i32_238 : i32 to vector<32x64xi32>
    %448 = arith.muli %447, %445 : vector<32x64xi32>
    %449 = arith.cmpi eq, %446, %448 : vector<32x64xi32>
    %c2_i32_239 = arith.constant 2 : i32
    %450 = vector.broadcast %c2_i32_239 : i32 to vector<32x64xi32>
    %451 = arith.muli %450, %445 : vector<32x64xi32>
    %c1_i32_240 = arith.constant 1 : i32
    %452 = vector.broadcast %c1_i32_240 : i32 to vector<32x64xi32>
    %453 = arith.addi %451, %452 : vector<32x64xi32>
    %454 = arith.cmpi eq, %446, %453 : vector<32x64xi32>
    %455 = arith.ori %449, %454 : vector<32x64xi1>
    %cst_241 = arith.constant 1.000000e+00 : f32
    %cst_242 = arith.constant 0.000000e+00 : f32
    %456 = vector.broadcast %cst_241 : f32 to vector<32x64xf32>
    %457 = vector.broadcast %cst_242 : f32 to vector<32x64xf32>
    %458 = arith.select %455, %456, %457 : vector<32x64xi1>, vector<32x64xf32>
    %cst_243 = arith.constant dense<0.000000e+00> : vector<4x64xf32>
    %459 = tpu.matmul %430, %458, %cst_243 {dimension_numbers = #tpu.dot_dimension_numbers<[1], [0], [0], [1], [0, 0, 1, 1], [], []>} : vector<4x32xf32>, vector<32x64xf32>, vector<4x64xf32> -> vector<4x64xf32>
    %cst_244 = arith.constant dense<0.000000e+00> : vector<8x64xf32>
    %460 = tpu.matmul %444, %459, %cst_244 {dimension_numbers = #tpu.dot_dimension_numbers<[1], [0], [0], [1], [0, 0, 1, 1], [], []>} : vector<8x4xf32>, vector<4x64xf32>, vector<8x64xf32> -> vector<8x64xf32>
    %cst_245 = arith.constant 0.000000e+00 : f32
    %461 = vector.broadcast %cst_245 : f32 to vector<10x160xf32>
    %462 = tpu.iota {dimensions = array<i32: 0>} : vector<10x8xi32>
    %463 = tpu.iota {dimensions = array<i32: 1>} : vector<10x8xi32>
    %c-2_i32 = arith.constant -2 : i32
    %464 = vector.broadcast %c-2_i32 : i32 to vector<10x8xi32>
    %465 = arith.addi %462, %464 : vector<10x8xi32>
    %466 = arith.cmpi eq, %463, %465 : vector<10x8xi32>
    %cst_246 = arith.constant 1.000000e+00 : f32
    %cst_247 = arith.constant 0.000000e+00 : f32
    %467 = vector.broadcast %cst_246 : f32 to vector<10x8xf32>
    %468 = vector.broadcast %cst_247 : f32 to vector<10x8xf32>
    %469 = arith.select %466, %467, %468 : vector<10x8xi1>, vector<10x8xf32>
    %cst_248 = arith.constant dense<0.000000e+00> : vector<10x64xf32>
    %470 = tpu.matmul %469, %460, %cst_248 {dimension_numbers = #tpu.dot_dimension_numbers<[1], [0], [0], [1], [0, 0, 1, 1], [], []>} : vector<10x8xf32>, vector<8x64xf32>, vector<10x64xf32> -> vector<10x64xf32>
    %c0_249 = arith.constant 0 : index
    %c0_250 = arith.constant 0 : index
    %c0_251 = arith.constant 0 : index
    %471 = vector.load %arg15[%c0_249, %c0_250, %c0_251] : memref<3x64x160xf32, #tpu.memory_space<vmem>>, vector<1x64x160xf32>
    %472 = vector.shape_cast %471 : vector<1x64x160xf32> to vector<64x160xf32>
    %cst_252 = arith.constant dense<0.000000e+00> : vector<10x160xf32>
    %473 = tpu.matmul %470, %472, %cst_252 {dimension_numbers = #tpu.dot_dimension_numbers<[1], [0], [0], [1], [0, 0, 1, 1], [], []>} : vector<10x64xf32>, vector<64x160xf32>, vector<10x160xf32> -> vector<10x160xf32>
    %474 = arith.addf %461, %473 : vector<10x160xf32>
    %475 = tpu.iota {dimensions = array<i32: 0>} : vector<10x8xi32>
    %476 = tpu.iota {dimensions = array<i32: 1>} : vector<10x8xi32>
    %c-1_i32_253 = arith.constant -1 : i32
    %477 = vector.broadcast %c-1_i32_253 : i32 to vector<10x8xi32>
    %478 = arith.addi %475, %477 : vector<10x8xi32>
    %479 = arith.cmpi eq, %476, %478 : vector<10x8xi32>
    %cst_254 = arith.constant 1.000000e+00 : f32
    %cst_255 = arith.constant 0.000000e+00 : f32
    %480 = vector.broadcast %cst_254 : f32 to vector<10x8xf32>
    %481 = vector.broadcast %cst_255 : f32 to vector<10x8xf32>
    %482 = arith.select %479, %480, %481 : vector<10x8xi1>, vector<10x8xf32>
    %cst_256 = arith.constant dense<0.000000e+00> : vector<10x64xf32>
    %483 = tpu.matmul %482, %460, %cst_256 {dimension_numbers = #tpu.dot_dimension_numbers<[1], [0], [0], [1], [0, 0, 1, 1], [], []>} : vector<10x8xf32>, vector<8x64xf32>, vector<10x64xf32> -> vector<10x64xf32>
    %c1_257 = arith.constant 1 : index
    %c0_258 = arith.constant 0 : index
    %c0_259 = arith.constant 0 : index
    %484 = vector.load %arg15[%c1_257, %c0_258, %c0_259] : memref<3x64x160xf32, #tpu.memory_space<vmem>>, vector<1x64x160xf32>
    %485 = vector.shape_cast %484 : vector<1x64x160xf32> to vector<64x160xf32>
    %cst_260 = arith.constant dense<0.000000e+00> : vector<10x160xf32>
    %486 = tpu.matmul %483, %485, %cst_260 {dimension_numbers = #tpu.dot_dimension_numbers<[1], [0], [0], [1], [0, 0, 1, 1], [], []>} : vector<10x64xf32>, vector<64x160xf32>, vector<10x160xf32> -> vector<10x160xf32>
    %487 = arith.addf %474, %486 : vector<10x160xf32>
    %488 = tpu.iota {dimensions = array<i32: 0>} : vector<10x8xi32>
    %489 = tpu.iota {dimensions = array<i32: 1>} : vector<10x8xi32>
    %c0_i32_261 = arith.constant 0 : i32
    %490 = vector.broadcast %c0_i32_261 : i32 to vector<10x8xi32>
    %491 = arith.addi %488, %490 : vector<10x8xi32>
    %492 = arith.cmpi eq, %489, %491 : vector<10x8xi32>
    %cst_262 = arith.constant 1.000000e+00 : f32
    %cst_263 = arith.constant 0.000000e+00 : f32
    %493 = vector.broadcast %cst_262 : f32 to vector<10x8xf32>
    %494 = vector.broadcast %cst_263 : f32 to vector<10x8xf32>
    %495 = arith.select %492, %493, %494 : vector<10x8xi1>, vector<10x8xf32>
    %cst_264 = arith.constant dense<0.000000e+00> : vector<10x64xf32>
    %496 = tpu.matmul %495, %460, %cst_264 {dimension_numbers = #tpu.dot_dimension_numbers<[1], [0], [0], [1], [0, 0, 1, 1], [], []>} : vector<10x8xf32>, vector<8x64xf32>, vector<10x64xf32> -> vector<10x64xf32>
    %c2_265 = arith.constant 2 : index
    %c0_266 = arith.constant 0 : index
    %c0_267 = arith.constant 0 : index
    %497 = vector.load %arg15[%c2_265, %c0_266, %c0_267] : memref<3x64x160xf32, #tpu.memory_space<vmem>>, vector<1x64x160xf32>
    %498 = vector.shape_cast %497 : vector<1x64x160xf32> to vector<64x160xf32>
    %cst_268 = arith.constant dense<0.000000e+00> : vector<10x160xf32>
    %499 = tpu.matmul %496, %498, %cst_268 {dimension_numbers = #tpu.dot_dimension_numbers<[1], [0], [0], [1], [0, 0, 1, 1], [], []>} : vector<10x64xf32>, vector<64x160xf32>, vector<10x160xf32> -> vector<10x160xf32>
    %500 = arith.addf %487, %499 : vector<10x160xf32>
    %c0_269 = arith.constant 0 : index
    %c0_270 = arith.constant 0 : index
    %501 = vector.load %arg16[%c0_269, %c0_270] : memref<1x160xf32, #tpu.memory_space<vmem>>, vector<1x160xf32>
    %502 = vector.broadcast %501 : vector<1x160xf32> to vector<10x160xf32>
    %503 = arith.addf %500, %502 : vector<10x160xf32>
    %504 = tpu.iota {dimensions = array<i32: 0>} : vector<20x10xi32>
    %505 = tpu.iota {dimensions = array<i32: 1>} : vector<20x10xi32>
    %c2_i32_271 = arith.constant 2 : i32
    %506 = vector.broadcast %c2_i32_271 : i32 to vector<20x10xi32>
    %507 = arith.muli %506, %505 : vector<20x10xi32>
    %508 = arith.cmpi eq, %504, %507 : vector<20x10xi32>
    %c2_i32_272 = arith.constant 2 : i32
    %509 = vector.broadcast %c2_i32_272 : i32 to vector<20x10xi32>
    %510 = arith.muli %509, %505 : vector<20x10xi32>
    %c1_i32_273 = arith.constant 1 : i32
    %511 = vector.broadcast %c1_i32_273 : i32 to vector<20x10xi32>
    %512 = arith.addi %510, %511 : vector<20x10xi32>
    %513 = arith.cmpi eq, %504, %512 : vector<20x10xi32>
    %514 = arith.ori %508, %513 : vector<20x10xi1>
    %cst_274 = arith.constant 1.000000e+00 : f32
    %cst_275 = arith.constant 0.000000e+00 : f32
    %515 = vector.broadcast %cst_274 : f32 to vector<20x10xf32>
    %516 = vector.broadcast %cst_275 : f32 to vector<20x10xf32>
    %517 = arith.select %514, %515, %516 : vector<20x10xi1>, vector<20x10xf32>
    %518 = tpu.iota {dimensions = array<i32: 0>} : vector<160x320xi32>
    %519 = tpu.iota {dimensions = array<i32: 1>} : vector<160x320xi32>
    %c2_i32_276 = arith.constant 2 : i32
    %520 = vector.broadcast %c2_i32_276 : i32 to vector<160x320xi32>
    %521 = arith.muli %520, %518 : vector<160x320xi32>
    %522 = arith.cmpi eq, %519, %521 : vector<160x320xi32>
    %c2_i32_277 = arith.constant 2 : i32
    %523 = vector.broadcast %c2_i32_277 : i32 to vector<160x320xi32>
    %524 = arith.muli %523, %518 : vector<160x320xi32>
    %c1_i32_278 = arith.constant 1 : i32
    %525 = vector.broadcast %c1_i32_278 : i32 to vector<160x320xi32>
    %526 = arith.addi %524, %525 : vector<160x320xi32>
    %527 = arith.cmpi eq, %519, %526 : vector<160x320xi32>
    %528 = arith.ori %522, %527 : vector<160x320xi1>
    %cst_279 = arith.constant 1.000000e+00 : f32
    %cst_280 = arith.constant 0.000000e+00 : f32
    %529 = vector.broadcast %cst_279 : f32 to vector<160x320xf32>
    %530 = vector.broadcast %cst_280 : f32 to vector<160x320xf32>
    %531 = arith.select %528, %529, %530 : vector<160x320xi1>, vector<160x320xf32>
    %cst_281 = arith.constant dense<0.000000e+00> : vector<10x320xf32>
    %532 = tpu.matmul %503, %531, %cst_281 {dimension_numbers = #tpu.dot_dimension_numbers<[1], [0], [0], [1], [0, 0, 1, 1], [], []>} : vector<10x160xf32>, vector<160x320xf32>, vector<10x320xf32> -> vector<10x320xf32>
    %cst_282 = arith.constant dense<0.000000e+00> : vector<20x320xf32>
    %533 = tpu.matmul %517, %532, %cst_282 {dimension_numbers = #tpu.dot_dimension_numbers<[1], [0], [0], [1], [0, 0, 1, 1], [], []>} : vector<20x10xf32>, vector<10x320xf32>, vector<20x320xf32> -> vector<20x320xf32>
    %cst_283 = arith.constant 0.000000e+00 : f32
    %534 = vector.broadcast %cst_283 : f32 to vector<20x20xf32>
    %535 = tpu.iota {dimensions = array<i32: 0>} : vector<20x20xi32>
    %536 = tpu.iota {dimensions = array<i32: 1>} : vector<20x20xi32>
    %c-1_i32_284 = arith.constant -1 : i32
    %537 = vector.broadcast %c-1_i32_284 : i32 to vector<20x20xi32>
    %538 = arith.addi %535, %537 : vector<20x20xi32>
    %539 = arith.cmpi eq, %536, %538 : vector<20x20xi32>
    %cst_285 = arith.constant 1.000000e+00 : f32
    %cst_286 = arith.constant 0.000000e+00 : f32
    %540 = vector.broadcast %cst_285 : f32 to vector<20x20xf32>
    %541 = vector.broadcast %cst_286 : f32 to vector<20x20xf32>
    %542 = arith.select %539, %540, %541 : vector<20x20xi1>, vector<20x20xf32>
    %cst_287 = arith.constant dense<0.000000e+00> : vector<20x320xf32>
    %543 = tpu.matmul %542, %533, %cst_287 {dimension_numbers = #tpu.dot_dimension_numbers<[1], [0], [0], [1], [0, 0, 1, 1], [], []>} : vector<20x20xf32>, vector<20x320xf32>, vector<20x320xf32> -> vector<20x320xf32>
    %c0_288 = arith.constant 0 : index
    %c0_289 = arith.constant 0 : index
    %c0_290 = arith.constant 0 : index
    %544 = vector.load %arg17[%c0_288, %c0_289, %c0_290] : memref<3x320x20xf32, #tpu.memory_space<vmem>>, vector<1x320x20xf32>
    %545 = vector.shape_cast %544 : vector<1x320x20xf32> to vector<320x20xf32>
    %cst_291 = arith.constant dense<0.000000e+00> : vector<20x20xf32>
    %546 = tpu.matmul %543, %545, %cst_291 {dimension_numbers = #tpu.dot_dimension_numbers<[1], [0], [0], [1], [0, 0, 1, 1], [], []>} : vector<20x320xf32>, vector<320x20xf32>, vector<20x20xf32> -> vector<20x20xf32>
    %547 = arith.addf %534, %546 : vector<20x20xf32>
    %548 = tpu.iota {dimensions = array<i32: 0>} : vector<20x20xi32>
    %549 = tpu.iota {dimensions = array<i32: 1>} : vector<20x20xi32>
    %c0_i32_292 = arith.constant 0 : i32
    %550 = vector.broadcast %c0_i32_292 : i32 to vector<20x20xi32>
    %551 = arith.addi %548, %550 : vector<20x20xi32>
    %552 = arith.cmpi eq, %549, %551 : vector<20x20xi32>
    %cst_293 = arith.constant 1.000000e+00 : f32
    %cst_294 = arith.constant 0.000000e+00 : f32
    %553 = vector.broadcast %cst_293 : f32 to vector<20x20xf32>
    %554 = vector.broadcast %cst_294 : f32 to vector<20x20xf32>
    %555 = arith.select %552, %553, %554 : vector<20x20xi1>, vector<20x20xf32>
    %cst_295 = arith.constant dense<0.000000e+00> : vector<20x320xf32>
    %556 = tpu.matmul %555, %533, %cst_295 {dimension_numbers = #tpu.dot_dimension_numbers<[1], [0], [0], [1], [0, 0, 1, 1], [], []>} : vector<20x20xf32>, vector<20x320xf32>, vector<20x320xf32> -> vector<20x320xf32>
    %c1_296 = arith.constant 1 : index
    %c0_297 = arith.constant 0 : index
    %c0_298 = arith.constant 0 : index
    %557 = vector.load %arg17[%c1_296, %c0_297, %c0_298] : memref<3x320x20xf32, #tpu.memory_space<vmem>>, vector<1x320x20xf32>
    %558 = vector.shape_cast %557 : vector<1x320x20xf32> to vector<320x20xf32>
    %cst_299 = arith.constant dense<0.000000e+00> : vector<20x20xf32>
    %559 = tpu.matmul %556, %558, %cst_299 {dimension_numbers = #tpu.dot_dimension_numbers<[1], [0], [0], [1], [0, 0, 1, 1], [], []>} : vector<20x320xf32>, vector<320x20xf32>, vector<20x20xf32> -> vector<20x20xf32>
    %560 = arith.addf %547, %559 : vector<20x20xf32>
    %561 = tpu.iota {dimensions = array<i32: 0>} : vector<20x20xi32>
    %562 = tpu.iota {dimensions = array<i32: 1>} : vector<20x20xi32>
    %c1_i32_300 = arith.constant 1 : i32
    %563 = vector.broadcast %c1_i32_300 : i32 to vector<20x20xi32>
    %564 = arith.addi %561, %563 : vector<20x20xi32>
    %565 = arith.cmpi eq, %562, %564 : vector<20x20xi32>
    %cst_301 = arith.constant 1.000000e+00 : f32
    %cst_302 = arith.constant 0.000000e+00 : f32
    %566 = vector.broadcast %cst_301 : f32 to vector<20x20xf32>
    %567 = vector.broadcast %cst_302 : f32 to vector<20x20xf32>
    %568 = arith.select %565, %566, %567 : vector<20x20xi1>, vector<20x20xf32>
    %cst_303 = arith.constant dense<0.000000e+00> : vector<20x320xf32>
    %569 = tpu.matmul %568, %533, %cst_303 {dimension_numbers = #tpu.dot_dimension_numbers<[1], [0], [0], [1], [0, 0, 1, 1], [], []>} : vector<20x20xf32>, vector<20x320xf32>, vector<20x320xf32> -> vector<20x320xf32>
    %c2_304 = arith.constant 2 : index
    %c0_305 = arith.constant 0 : index
    %c0_306 = arith.constant 0 : index
    %570 = vector.load %arg17[%c2_304, %c0_305, %c0_306] : memref<3x320x20xf32, #tpu.memory_space<vmem>>, vector<1x320x20xf32>
    %571 = vector.shape_cast %570 : vector<1x320x20xf32> to vector<320x20xf32>
    %cst_307 = arith.constant dense<0.000000e+00> : vector<20x20xf32>
    %572 = tpu.matmul %569, %571, %cst_307 {dimension_numbers = #tpu.dot_dimension_numbers<[1], [0], [0], [1], [0, 0, 1, 1], [], []>} : vector<20x320xf32>, vector<320x20xf32>, vector<20x20xf32> -> vector<20x20xf32>
    %573 = arith.addf %560, %572 : vector<20x20xf32>
    %c0_308 = arith.constant 0 : index
    %c0_309 = arith.constant 0 : index
    %574 = vector.load %arg18[%c0_308, %c0_309] : memref<1x20xf32, #tpu.memory_space<vmem>>, vector<1x20xf32>
    %575 = vector.broadcast %574 : vector<1x20xf32> to vector<20x20xf32>
    %576 = arith.addf %573, %575 : vector<20x20xf32>
    %cst_310 = arith.constant 0.000000e+00 : f32
    %577 = vector.broadcast %cst_310 : f32 to vector<20x20xf32>
    %578 = arith.subf %577, %576 : vector<20x20xf32>
    %579 = math.exp %578 : vector<20x20xf32>
    %cst_311 = arith.constant 1.000000e+00 : f32
    %580 = vector.broadcast %cst_311 : f32 to vector<20x20xf32>
    %581 = arith.addf %580, %579 : vector<20x20xf32>
    %cst_312 = arith.constant 1.000000e+00 : f32
    %582 = vector.broadcast %cst_312 : f32 to vector<20x20xf32>
    %583 = arith.divf %582, %581 : vector<20x20xf32>
    %c0_313 = arith.constant 0 : index
    %c0_314 = arith.constant 0 : index
    %c0_315 = arith.constant 0 : index
    %584 = vector.load %arg19[%c0_313, %c0_314, %c0_315] : memref<1x20x20xf32, #tpu.memory_space<vmem>>, vector<1x20x20xf32>
    %585 = vector.shape_cast %584 : vector<1x20x20xf32> to vector<20x20xf32>
    %586 = vector.shape_cast %583 : vector<20x20xf32> to vector<1x20x20xf32>
    tpu.vector_store %arg19[%c0_313, %c0_314, %c0_315], %586 {strides = array<i32>} : memref<1x20x20xf32, #tpu.memory_space<vmem>>, vector<1x20x20xf32>,
    return
  }
  func.func @transform_0(%arg0: i32) -> (i32, i32, i32) {
    %c0_i32 = arith.constant 0 : i32
    %c0_i32_0 = arith.constant 0 : i32
    %c0_i32_1 = arith.constant 0 : i32
    return %arg0, %c0_i32, %c0_i32_0 : i32, i32, i32
  }
  func.func @transform_1(%arg0: i32) -> (i32, i32, i32) {
    %c0_i32 = arith.constant 0 : i32
    %c0_i32_0 = arith.constant 0 : i32
    %c0_i32_1 = arith.constant 0 : i32
    return %arg0, %c0_i32, %c0_i32_0 : i32, i32, i32
  }
  func.func @transform_2(%arg0: i32) -> (i32, i32, i32) {
    %c0_i32 = arith.constant 0 : i32
    %c0_i32_0 = arith.constant 0 : i32
    %c0_i32_1 = arith.constant 0 : i32
    %c0_i32_2 = arith.constant 0 : i32
    return %c0_i32, %c0_i32_0, %c0_i32_1 : i32, i32, i32
  }
  func.func @transform_3(%arg0: i32) -> (i32, i32) {
    %c0_i32 = arith.constant 0 : i32
    %c0_i32_0 = arith.constant 0 : i32
    %c0_i32_1 = arith.constant 0 : i32
    return %c0_i32, %c0_i32_0 : i32, i32
  }
  func.func @transform_4(%arg0: i32) -> (i32, i32, i32) {
    %c0_i32 = arith.constant 0 : i32
    %c0_i32_0 = arith.constant 0 : i32
    %c0_i32_1 = arith.constant 0 : i32
    %c0_i32_2 = arith.constant 0 : i32
    return %c0_i32, %c0_i32_0, %c0_i32_1 : i32, i32, i32
  }
  func.func @transform_5(%arg0: i32) -> (i32, i32) {
    %c0_i32 = arith.constant 0 : i32
    %c0_i32_0 = arith.constant 0 : i32
    %c0_i32_1 = arith.constant 0 : i32
    return %c0_i32, %c0_i32_0 : i32, i32
  }
  func.func @transform_6(%arg0: i32) -> (i32, i32, i32) {
    %c0_i32 = arith.constant 0 : i32
    %c0_i32_0 = arith.constant 0 : i32
    %c0_i32_1 = arith.constant 0 : i32
    %c0_i32_2 = arith.constant 0 : i32
    return %c0_i32, %c0_i32_0, %c0_i32_1 : i32, i32, i32
  }
  func.func @transform_7(%arg0: i32) -> (i32, i32) {
    %c0_i32 = arith.constant 0 : i32
    %c0_i32_0 = arith.constant 0 : i32
    %c0_i32_1 = arith.constant 0 : i32
    return %c0_i32, %c0_i32_0 : i32, i32
  }
  func.func @transform_8(%arg0: i32) -> (i32, i32, i32) {
    %c0_i32 = arith.constant 0 : i32
    %c0_i32_0 = arith.constant 0 : i32
    %c0_i32_1 = arith.constant 0 : i32
    %c0_i32_2 = arith.constant 0 : i32
    return %c0_i32, %c0_i32_0, %c0_i32_1 : i32, i32, i32
  }
  func.func @transform_9(%arg0: i32) -> (i32, i32) {
    %c0_i32 = arith.constant 0 : i32
    %c0_i32_0 = arith.constant 0 : i32
    %c0_i32_1 = arith.constant 0 : i32
    return %c0_i32, %c0_i32_0 : i32, i32
  }
  func.func @transform_10(%arg0: i32) -> (i32, i32, i32) {
    %c0_i32 = arith.constant 0 : i32
    %c0_i32_0 = arith.constant 0 : i32
    %c0_i32_1 = arith.constant 0 : i32
    %c0_i32_2 = arith.constant 0 : i32
    return %c0_i32, %c0_i32_0, %c0_i32_1 : i32, i32, i32
  }
  func.func @transform_11(%arg0: i32) -> (i32, i32) {
    %c0_i32 = arith.constant 0 : i32
    %c0_i32_0 = arith.constant 0 : i32
    %c0_i32_1 = arith.constant 0 : i32
    return %c0_i32, %c0_i32_0 : i32, i32
  }
  func.func @transform_12(%arg0: i32) -> (i32, i32, i32) {
    %c0_i32 = arith.constant 0 : i32
    %c0_i32_0 = arith.constant 0 : i32
    %c0_i32_1 = arith.constant 0 : i32
    %c0_i32_2 = arith.constant 0 : i32
    return %c0_i32, %c0_i32_0, %c0_i32_1 : i32, i32, i32
  }
  func.func @transform_13(%arg0: i32) -> (i32, i32) {
    %c0_i32 = arith.constant 0 : i32
    %c0_i32_0 = arith.constant 0 : i32
    %c0_i32_1 = arith.constant 0 : i32
    return %c0_i32, %c0_i32_0 : i32, i32
  }
  func.func @transform_14(%arg0: i32) -> (i32, i32, i32) {
    %c0_i32 = arith.constant 0 : i32
    %c0_i32_0 = arith.constant 0 : i32
    %c0_i32_1 = arith.constant 0 : i32
    %c0_i32_2 = arith.constant 0 : i32
    return %c0_i32, %c0_i32_0, %c0_i32_1 : i32, i32, i32
  }
  func.func @transform_15(%arg0: i32) -> (i32, i32) {
    %c0_i32 = arith.constant 0 : i32
    %c0_i32_0 = arith.constant 0 : i32
    %c0_i32_1 = arith.constant 0 : i32
    return %c0_i32, %c0_i32_0 : i32, i32
  }
  func.func @transform_16(%arg0: i32) -> (i32, i32, i32) {
    %c0_i32 = arith.constant 0 : i32
    %c0_i32_0 = arith.constant 0 : i32
    %c0_i32_1 = arith.constant 0 : i32
    %c0_i32_2 = arith.constant 0 : i32
    return %c0_i32, %c0_i32_0, %c0_i32_1 : i32, i32, i32
  }
  func.func @transform_17(%arg0: i32) -> (i32, i32) {
    %c0_i32 = arith.constant 0 : i32
    %c0_i32_0 = arith.constant 0 : i32
    %c0_i32_1 = arith.constant 0 : i32
    return %c0_i32, %c0_i32_0 : i32, i32
  }
  func.func @transform_18(%arg0: i32) -> (i32, i32, i32) {
    %c0_i32 = arith.constant 0 : i32
    %c0_i32_0 = arith.constant 0 : i32
    %c0_i32_1 = arith.constant 0 : i32
    return %arg0, %c0_i32, %c0_i32_0 : i32, i32, i32
  }
  func.func @transform_19(%arg0: i32) -> (i32, i32, i32) {
    %c0_i32 = arith.constant 0 : i32
    %c0_i32_0 = arith.constant 0 : i32
    %c0_i32_1 = arith.constant 0 : i32
    return %arg0, %c0_i32, %c0_i32_0 : i32, i32, i32
  }
  func.func @transform_20(%arg0: i32) -> (i32, i32, i32) {
    %c0_i32 = arith.constant 0 : i32
    %c0_i32_0 = arith.constant 0 : i32
    %c0_i32_1 = arith.constant 0 : i32
    return %arg0, %c0_i32, %c0_i32_0 : i32, i32, i32
  }
}

</mosaic_0001>

<bundles_post_ra>
// kernel: vae_forward.1
= control target key start
LH: loop header
LB: loop body
LE: loop exit
PB: predicated region body
PF: predicated region fallthrough
CT: control target
= control target key end

     0   :  { %s11404_s0 = inlined_call_operand.vmem [shape: f32[2,16,16], index: 0, kind: input, shape index: {}]   ;;  %s11405_s1 = inlined_call_operand.vmem [shape: f32[2,2,16], index: 1, kind: input, shape index: {}]   ;;  %s11406_s2 = inlined_call_operand.vmem [shape: f32[3,16,256], index: 2, kind: input, shape index: {}]   ;;  %s11407_s3 = inlined_call_operand.vmem [shape: f32[1,256], index: 3, kind: input, shape index: {}]   ;;  %s11408_s4 = inlined_call_operand.vmem [shape: f32[3,128,64], index: 4, kind: input, shape index: {}]   ;;  %s11409_s5 = inlined_call_operand.vmem [shape: f32[1,64], index: 5, kind: input, shape index: {}]   ;;  %s11410_s6 = inlined_call_operand.vmem [shape: f32[3,32,32], index: 6, kind: input, shape index: {}]   ;;  %s11411_s7 = inlined_call_operand.vmem [shape: f32[1,32], index: 7, kind: input, shape index: {}]   ;;  %s11412_s8 = inlined_call_operand.vmem [shape: f32[3,16,16], index: 8, kind: input, shape index: {}]   ;;  %s11413_s9 = inlined_call_operand.vmem [shape: f32[1,16], index: 9, kind: input, shape index: {}]   ;;  %s11414_s10 = inlined_call_operand.vmem [shape: f32[3,16,32], index: 10, kind: input, shape index: {}]   ;;  %s11415_s11 = inlined_call_operand.vmem [shape: f32[1,32], index: 11, kind: input, shape index: {}]   ;;  %s11416_s12 = inlined_call_operand.vmem [shape: f32[3,32,32], index: 12, kind: input, shape index: {}]   ;;  %s11417_s13 = inlined_call_operand.vmem [shape: f32[1,32], index: 13, kind: input, shape index: {}]   ;;  %s11418_s14 = inlined_call_operand.vmem [shape: f32[3,64,160], index: 14, kind: input, shape index: {}]   ;;  %s11419_s15 = inlined_call_operand.vmem [shape: f32[1,160], index: 15, kind: input, shape index: {}]   ;;  %s11420_s16 = inlined_call_operand.vmem [shape: f32[3,320,20], index: 16, kind: input, shape index: {}]   ;;  %s11421_s17 = inlined_call_operand.vmem [shape: f32[1,20], index: 17, kind: input, shape index: {}]   ;;  %s11422_s18 = inlined_call_operand.vmem [shape: f32[2,20,20], index: 18, kind: output, shape index: {0}]   ;;  %s11423_s19 = inlined_call_operand.vmem [shape: f32[2,2,16], index: 19, kind: output, shape index: {1}]   ;;  %s11424_s20 = inlined_call_operand.vmem [shape: f32[2,2,16], index: 20, kind: output, shape index: {2}]  }
   0x1   :  { %11444 = sst [smem:[#allocation2_spill]] %s11404_s0 }
   0x2   :  { %11445 = sst [smem:[#allocation3_spill]] %s11405_s1  ;;  %s9028_s1 = smov 0  }
   0x3   :  { %11446 = sst [smem:[#allocation4_spill]] %s11406_s2 }
   0x4   :  { %11447 = sst [smem:[#allocation5_spill]] %s11407_s3 }
   0x5   :  { %11448 = sst [smem:[#allocation6_spill]] %s11408_s4 }
   0x6 LB: > { %s7390_s22 = sadd.s32 4294967295, %s8916_s1   ;;  %p7394_p0 = scmp.ge.s32.totalorder %s8916_s1, 1  ;;  %s8916_s1 = sphi %s9028_s1, %s31_s1  }
   0x7   : > { %p576_p1 = scmp.lt.s32.totalorder %s8916_s1, 3 }
   0x9   : > { %p577_p2 = pnand %p7394_p0, %p576_p1 }
   0xa   : > { %p646_p3 = scmp.lt.s32.totalorder (!%p577_p2), %s7390_s22, 1  ;;  %s11449_s25 = sld [smem:[#allocation2_spill]] (!%p577_p2) }
   0xb   : > { %580 = sbr.rel (%p577_p2) target bundleno = 7398 (0x1ce6), region = 92  ;;  %s11450_s28 = sld [smem:[#allocation4_spill]] (!%p577_p2) }
   0xc   : > { %s11451_s4 = sld [smem:[#allocation5_spill]] (!%p577_p2)  ;;  %s8921_s30 = smov (!%p577_p2), 16  }
   0xd   : > { %s11452_s0 = sld [smem:[#allocation6_spill]] (!%p577_p2)  ;;  %s8922_s26 = smov (!%p577_p2), 112  }
  0x10   : > { %v670_v0 = vlaneseq  ;;  %v8918_v1 = vmov 0.0   ;;  %s11544_s22 = smov (!%p646_p3, %s7390_s22), 1  ;;  %vm11429_vm0 = vcmask 130048   ;;  %v8919_v44 = vmov 1.0  }
  0x11   : > { %927 = vmatprep.mubr.f32.mxu0 %v8918_v1  ;;  %s7869_s23 = sshll.u32 %s11544_s22, 4  ;;  %v766_v13 = vld [vmem:[%s11450_s28 + $0x18] sm:$0xff]  ;;  %v765_v14 = vld [vmem:[%s11450_s28 + $0x10] sm:$0xff]  ;;  %v764_v15 = vld [vmem:[%s11450_s28 + $0x8] sm:$0xff] }
  0x12   : > { %v9039_v2 = vshrl.u32 %v670_v0, 7  ;;  %v9041_v3 = vand.u32 127, %v670_v0  ;;  %s650_s3 = scalar_lea.vmem %s11449_s25, %s7869_s23  ;;  %v763_v16 = vld [vmem:[%s11450_s28] sm:$0xff]  ;;  %v7408_v17 = vld [vmem:[%s11450_s28 + $0x38] sm:$0xff]  ;;  %v7407_v18 = vld [vmem:[%s11450_s28 + $0x30] sm:$0xff]  ;;  %s8882_s23 = smul.u32 24, %s11544_s22 }
  0x13   : > { %v669_v6 = vld [vmem:[%s650_s3 + $0x8] sm:$0xff]  ;;  %v668_v7 = vld [vmem:[%s650_s3] sm:$0xff]  ;;  %891 = vmatprep.subr.mxu0 %v7408_v17  ;;  %v7418_v29 = vld [vmem:[%s11450_s28 + $0x58] sm:$0xff]  ;;  %s10081_s3 = sshll.u32 %s11544_s22, 1 }
  0x14   : > { %v675_v4 = vadd.s32 4294967295, %v9039_v2  ;;  %v9046_v5 = vadd.s32 8, %v9039_v2  ;;  %vm767_vm2 = vcmp.eq.s32.totalorder %v9041_v3, %v9039_v2  ;;  %8317 = vmatprep.subr.mxu1 %v669_v6  ;;  %892 = vmatpush1.msra.mxu0 %v7407_v18  ;;  %v7406_v19 = vld [vmem:[%s11450_s28 + $0x28] sm:$0xff]  ;;  %v7405_v20 = vld [vmem:[%s11450_s28 + $0x20] sm:$0xff]  ;;  %v1023_v23 = vadd.s32 1, %v9039_v2  ;;  %v7417_v30 = vld [vmem:[%s11450_s28 + $0x50] sm:$0xff]  ;;  %s663_s25 = scalar_lea.vmem %s11423_s19, %s10081_s3 }
  0x15   : > { %8318 = vmatpush3.msra.mxu1 %v669_v6  ;;  %v9065_v11 = vsel %vm767_vm2, 1.0, %v8918_v1  ;;  %893 = vmatprep.subr.mxu0 %v7406_v19  ;;  %v7416_v31 = vld [vmem:[%s11450_s28 + $0x48] sm:$0xff]  ;;  %v7415_v32 = vld [vmem:[%s11450_s28 + $0x40] sm:$0xff]  ;;  %v9149_v39 = vadd.s32 248, %v9039_v2  ;;  %v9152_v40 = vmul.u32 2, %v9041_v3  ;;  %v9155_v41 = vadd.s32 120, %v9039_v2 }
  0x16   : > { %vm677_vm1 = vcmp.eq.s32.totalorder %v9041_v3, %v675_v4  ;;  %v676_v8 = vadd.s32 4294967295, %v9046_v5  ;;  %8319 = vmatprep.subr.mxu1 %v668_v7  ;;  %vm768_vm4 = vcmp.eq.s32.totalorder %v9041_v3, %v9046_v5  ;;  %894 = vmatpush1.msra.mxu0 %v7405_v20  ;;  %v1024_v25 = vadd.s32 1, %v9046_v5  ;;  %v1202_v19 = vld [vmem:[%s11451_s4] sm:$0x3]  ;;  %s11461_s4 = sld [smem:[#allocation3_spill]] }
  0x17   : > { %v9056_v9 = vsel %vm677_vm1, 1.0, %v8918_v1  ;;  %8320 = vmatpush3.msra.mxu1 %v668_v7  ;;  %v9074_v12 = vsel %vm768_vm4, 1.0, %v8918_v1  ;;  %8331 = vmatprep.subr.mxu0 %v669_v6  ;;  %vm1025_vm5 = vcmp.eq.s32.totalorder %v9041_v3, %v1023_v23  ;;  %v9158_v42 = vadd.s32 240, %v9039_v2 }
  0x18   : > { %8321 = vmatprep.mubr.msk.f32.mxu1 %vm11429_vm0, %v9056_v9  ;;  %vm678_vm3 = vcmp.eq.s32.totalorder %v9041_v3, %v676_v8  ;;  %8324 = vmatprep.subr.mxu1 %v669_v6  ;;  %v9112_v27 = vsel %vm1025_vm5, 1.0, %v8918_v1  ;;  %vm1026_vm6 = vcmp.eq.s32.totalorder %v9041_v3, %v1024_v25  ;;  %vm1436_vm7 = vcmp.eq.s32.totalorder %v9149_v39, %v9152_v40 }
  0x19   : > { %v9062_v10 = vsel %vm678_vm3, 1.0, %v8918_v1  ;;  %v9120_v28 = vsel %vm1026_vm6, 1.0, %v8918_v1  ;;  %vm1420_vm8 = vcmp.eq.s32.totalorder %v9155_v41, %v9152_v40  ;;  %v9165_v43 = vadd.s32 112, %v9039_v2 }
  0x1a   : > { %8322 = vmatmul.mubr.msk.f32.vlgmr.msra.gmra.mxu1 %vm11429_vm0, %v9062_v10  ;;  %vm1435_vm9 = vcmp.eq.s32.totalorder %v9158_v42, %v9152_v40  ;;  %v9171_v45 = vadd.s32 232, %v9039_v2  ;;  %v9180_v46 = vadd.s32 104, %v9039_v2  ;;  %v9184_v47 = vadd.s32 224, %v9039_v2 }
  0x1b   : > { %8325 = vmatpush3.msra.mxu1 %v669_v6  ;;  %8328 = vmatprep.mubr.msk.f32.mxu1 %vm11429_vm0, %v9065_v11  ;;  %vm1419_vm10 = vcmp.eq.s32.totalorder %v9165_v43, %v9152_v40  ;;  %v9187_v48 = vadd.s32 96, %v9039_v2  ;;  %v9193_v49 = vadd.s32 216, %v9039_v2  ;;  %v9204_v50 = vadd.s32 88, %v9039_v2 }
  0x1c   : > { %8326 = vmatprep.subr.mxu1 %v668_v7  ;;  %vm1434_vm11 = vcmp.eq.s32.totalorder %v9171_v45, %v9152_v40  ;;  %vm1418_vm12 = vcmp.eq.s32.totalorder %v9180_v46, %v9152_v40  ;;  %vm1433_vm13 = vcmp.eq.s32.totalorder %v9184_v47, %v9152_v40  ;;  %v9207_v51 = vadd.s32 208, %v9039_v2  ;;  %s654_s29 = scalar_lea.vmem %s11461_s4, %s10081_s3 }
  0x1d   : > { %8327 = vmatpush3.msra.mxu1 %v668_v7  ;;  %vm1417_vm14 = vcmp.eq.s32.totalorder %v9187_v48, %v9152_v40  ;;  %vm1432_vm15 = vcmp.eq.s32.totalorder %v9193_v49, %v9152_v40  ;;  %v9211_v52 = vadd.s32 80, %v9039_v2  ;;  %vm1416_vm1 = vcmp.eq.s32.totalorder %v9204_v50, %v9152_v40 }
  0x1e   : > { %8329 = vmatmul.mubr.msk.f32.vlgmr.msra.gmra.mxu1 %vm11429_vm0, %v9074_v12  ;;  %974 = vmatprep.subr.mxu1 %v766_v13  ;;  %vm1431_vm2 = vcmp.eq.s32.totalorder %v9207_v51, %v9152_v40  ;;  %v9222_v53 = vadd.s32 200, %v9039_v2  ;;  %v9225_v54 = vadd.s32 72, %v9039_v2  ;;  %v9229_v55 = vadd.s32 192, %v9039_v2 }
  0x1f   : > { %1010 = vmatprep.mubr.f32.mxu1 %v8918_v1  ;;  %975 = vmatpush1.msra.mxu1 %v765_v14  ;;  %vm1415_vm3 = vcmp.eq.s32.totalorder %v9211_v52, %v9152_v40  ;;  %v9240_v56 = vadd.s32 64, %v9039_v2  ;;  %v9243_v57 = vadd.s32 184, %v9039_v2  ;;  %v9247_v58 = vadd.s32 56, %v9039_v2 }
  0x20   : > { %976 = vmatprep.subr.mxu1 %v764_v15  ;;  %vm1430_vm4 = vcmp.eq.s32.totalorder %v9222_v53, %v9152_v40  ;;  %vm1414_vm5 = vcmp.eq.s32.totalorder %v9225_v54, %v9152_v40  ;;  %vm1429_vm6 = vcmp.eq.s32.totalorder %v9229_v55, %v9152_v40  ;;  %v9258_v59 = vadd.s32 176, %v9039_v2 }
  0x21   : > { %977 = vmatpush1.msra.mxu1 %v763_v16  ;;  %v9261_v60 = vadd.s32 48, %v9039_v2  ;;  %v9265_v61 = vadd.s32 168, %v9039_v2  ;;  %v9279_v62 = vadd.s32 40, %v9039_v2  ;;  %v1210_v13 = vsub.s32 1, %v9039_v2 }
  0x22   : > { %1149 = vmatprep.subr.mxu1 %v7418_v29  ;;  %v1206_v15 = vsub.s32 0, %v9039_v2  ;;  %v9301_v20 = vmul.u32 2, %v9039_v2 }
  0x23   : > { %v1211_v25 = vrot.slane %v1202_v19, %v1210_v13 }
  0xda   : > { %v8323_v21 = vpop.f32.mrf.mxu1 }
  0xdc   : > { %v754_v22 = vpop.f32.mrf.mxu1 }
  0xdd   : > { %7411 = vmatmul.mubr.msk.f32.vlgmr.msra.gmra.mxu1 %vm11429_vm0, %v754_v22 }
  0xde   : > { %v8330_v24 = vpop.f32.mrf.mxu1  ;;  %1016 = vmatprep.mubr.f32.mxu1 %v8918_v1  ;;  %1150 = vmatpush1.msra.mxu1 %v7417_v30  ;;  %v1207_v30 = vrot.slane %v1202_v19, %v1206_v15  ;;  %v7497_v19 = vld [vmem:[%s11452_s0 + $0xc0] sm:$0xff] }
  0xdf   : > { %1151 = vmatprep.subr.mxu1 %v7416_v31 }
  0xe0   : > { %v843_v26 = vpop.f32.mrf.mxu1  ;;  %1152 = vmatpush1.msra.mxu1 %v7415_v32  ;;  %v9311_v32 = vadd.s32 1, %v9301_v20 }
  0xe1   : > { %7409 = vmatmul.mubr.msk.f32.vlgmr.msra.gmra.mxu0 %vm11429_vm0, %v843_v26  ;;  %7412 = vmatmul.mubr.msk.f32.gmra.mxu1 %vm11429_vm0, %v8323_v21 }
  0xe2   : > { %933 = vmatprep.mubr.f32.mxu0 %v8918_v1  ;;  %8332 = vmatpush3.msra.mxu0 %v669_v6 }
  0xe3   : > { %8333 = vmatprep.subr.mxu0 %v668_v7  ;;  %1185 = vmatprep.mubr.f32.mxu1 %v8918_v1 }
  0xe4   : > { %8334 = vmatpush3.msra.mxu0 %v668_v7  ;;  %7882 = vmatprep.subr.msk.mxu1 %vm1436_vm7, %v8919_v44  ;;  %vm1413_vm7 = vcmp.eq.s32.totalorder %v9240_v56, %v9152_v40 }
  0xe5   : > { %7410 = vmatmul.mubr.msk.f32.gmra.mxu0 %vm11429_vm0, %v8330_v24 }
  0xe6   : > { %8335 = vmatprep.mubr.msk.f32.mxu0 %vm11429_vm0, %v9112_v27 }
  0xe9   : > { %8336 = vmatmul.mubr.msk.f32.vlgmr.msra.gmra.mxu0 %vm11429_vm0, %v9120_v28 }
  0xea   : > { %1291 = vmatprep.mubr.f32.mxu0 %v8918_v1 }
 0x19d   : > { %v1012_v63 = vpop.f32.mrf.mxu1 }
 0x19f   : > { %v1014_v0 = vpop.f32.mrf.mxu1 }
 0x1a1   : > { %v9137_v33 = vpop.f32.mrf.mxu0  ;;  %v1018_v4 = vpop.f32.mrf.mxu1 }
 0x1a2   : > { %v1013_v21 = vadd.f32 %v1012_v63, %v9137_v33 }
 0x1a3   : > { %v9139_v34 = vpop.f32.mrf.mxu0  ;;  %v1020_v6 = vpop.f32.mrf.mxu1 }
 0x1a4   : > { %v1015_v17 = vadd.f32 %v1014_v0, %v9139_v34 }
 0x1a5   : > { %v9141_v35 = vpop.f32.mrf.mxu0 }
 0x1a6   : > { %v1019_v14 = vadd.f32 %v1018_v4, %v9141_v35 }
 0x1a7   : > { %v9143_v36 = vpop.f32.mrf.mxu0 }
 0x1a8   : > { %v1021_v18 = vadd.f32 %v1020_v6, %v9143_v36  ;;  %v7504_v6 = vld [vmem:[%s11452_s0 + $0xf8] sm:$0xff] }
 0x1a9   : > { %v8337_v37 = vpop.f32.mrf.mxu0 }
 0x1ab   : > { %v1101_v38 = vpop.f32.mrf.mxu0 }
 0x1ac   : > { %7419 = vmatmul.mubr.msk.f32.vlgmr.msra.gmra.mxu1 %vm11429_vm0, %v1101_v38 }
 0x1ad   : > { %1191 = vmatprep.mubr.f32.mxu1 %v8918_v1  ;;  %7883 = vmatpush3.msk.msra.mxu1 %vm1420_vm8, %v8919_v44  ;;  %vm1428_vm8 = vcmp.eq.s32.totalorder %v9243_v57, %v9152_v40 }
 0x1ae   : > { %7884 = vmatprep.subr.msk.mxu1 %vm1435_vm9, %v8919_v44  ;;  %vm1412_vm9 = vcmp.eq.s32.totalorder %v9247_v58, %v9152_v40 }
 0x1af   : > { %7885 = vmatpush3.msk.msra.mxu1 %vm1419_vm10, %v8919_v44  ;;  %vm1427_vm10 = vcmp.eq.s32.totalorder %v9258_v59, %v9152_v40 }
 0x1b0   : > { %7420 = vmatmul.mubr.msk.f32.gmra.mxu1 %vm11429_vm0, %v8337_v37  ;;  %7886 = vmatprep.subr.msk.mxu1 %vm1434_vm11, %v8919_v44  ;;  %vm1411_vm11 = vcmp.eq.s32.totalorder %v9261_v60, %v9152_v40  ;;  %v9320_v37 = vadd.s32 1, %v9152_v40 }
 0x1b1   : > { %7887 = vmatpush3.msk.msra.mxu1 %vm1418_vm12, %v8919_v44  ;;  %vm1426_vm12 = vcmp.eq.s32.totalorder %v9265_v61, %v9152_v40 }
 0x1b2   : > { %7888 = vmatprep.subr.msk.mxu1 %vm1433_vm13, %v8919_v44  ;;  %vm1410_vm13 = vcmp.eq.s32.totalorder %v9279_v62, %v9152_v40 }
 0x1b3   : > { %7889 = vmatpush3.msk.msra.mxu1 %vm1417_vm14, %v8919_v44  ;;  %vm11427_vm14 = vcmp.eq.s32.totalorder %v9041_v3, %v9301_v20 }
 0x1b4   : > { %7890 = vmatprep.subr.msk.mxu1 %vm1432_vm15, %v8919_v44  ;;  %v9317_v36 = vsel %vm11427_vm14, 1.0, %v8918_v1  ;;  %vm11428_vm15 = vcmp.eq.s32.totalorder %v9041_v3, %v9311_v32 }
 0x1b5   : > { %7891 = vmatpush3.msk.msra.mxu1 %vm1416_vm1, %v8919_v44  ;;  %v9331_v38 = vsel %vm11428_vm15, 1.0, %v8918_v1  ;;  %vm1501_vm1 = vcmp.eq.s32.totalorder %v9149_v39, %v9320_v37  ;;  %v1392_v39 = vadd.s32 160, %v9039_v2  ;;  %vm11433_vm15 = vcmp.eq.s32.totalorder %v9046_v5, %v9152_v40 }
 0x1b6   : > { %7892 = vmatprep.subr.msk.mxu1 %vm1431_vm2, %v8919_v44  ;;  %vm1485_vm2 = vcmp.eq.s32.totalorder %v9155_v41, %v9320_v37 }
 0x1b7   : > { %7893 = vmatpush3.msk.msra.mxu1 %vm1415_vm3, %v8919_v44  ;;  %vm1500_vm3 = vcmp.eq.s32.totalorder %v9158_v42, %v9320_v37  ;;  %v9412_v42 = vadd.s32 32, %v9039_v2 }
 0x1b8   : > { %7894 = vmatprep.subr.msk.mxu1 %vm1430_vm4, %v8919_v44  ;;  %vm1484_vm4 = vcmp.eq.s32.totalorder %v9165_v43, %v9320_v37 }
 0x1b9   : > { %7895 = vmatpush3.msk.msra.mxu1 %vm1414_vm5, %v8919_v44  ;;  %vm1499_vm5 = vcmp.eq.s32.totalorder %v9171_v45, %v9320_v37  ;;  %v9417_v45 = vadd.s32 152, %v9039_v2 }
 0x1ba   : > { %7896 = vmatprep.subr.msk.mxu1 %vm1429_vm6, %v8919_v44  ;;  %vm1483_vm6 = vcmp.eq.s32.totalorder %v9180_v46, %v9320_v37 }
 0x1bb   : > { %7897 = vmatpush3.msk.msra.mxu1 %vm1413_vm7, %v8919_v44  ;;  %vm1498_vm7 = vcmp.eq.s32.totalorder %v9184_v47, %v9320_v37  ;;  %v9426_v47 = vadd.s32 24, %v9039_v2 }
 0x1bc   : > { %7898 = vmatprep.subr.msk.mxu1 %vm1428_vm8, %v8919_v44  ;;  %vm1482_vm8 = vcmp.eq.s32.totalorder %v9187_v48, %v9320_v37 }
 0x1bd   : > { %7899 = vmatpush3.msk.msra.mxu1 %vm1412_vm9, %v8919_v44 }
 0x1be   : > { %7900 = vmatprep.subr.msk.mxu1 %vm1427_vm10, %v8919_v44  ;;  %vm1497_vm10 = vcmp.eq.s32.totalorder %v9193_v49, %v9320_v37  ;;  %v9441_v49 = vadd.s32 144, %v9039_v2 }
 0x1bf   : > { %7901 = vmatpush3.msk.msra.mxu1 %vm1411_vm11, %v8919_v44 }
 0x1c0   : > { %7902 = vmatprep.subr.msk.mxu1 %vm1426_vm12, %v8919_v44  ;;  %vm1481_vm12 = vcmp.eq.s32.totalorder %v9204_v50, %v9320_v37 }
 0x1c1   : > { %7903 = vmatpush3.msk.msra.mxu1 %vm1410_vm13, %v8919_v44 }
 0x26c   : > { %v1187_v7 = vpop.f32.mrf.mxu1 }
 0x26d   : > { %v1198_v29 = vadd.f32 %v1187_v7, %v1013_v21  ;;  %v7503_v7 = vld [vmem:[%s11452_s0 + $0xf0] sm:$0xff]  ;;  %v7496_v21 = vld [vmem:[%s11452_s0 + $0xb8] sm:$0xff] }
 0x26e   : > { %v1189_v8 = vpop.f32.mrf.mxu1 }
 0x26f   : > { %v1199_v24 = vadd.f32 %v1189_v8, %v1015_v17  ;;  %v1214_v35 = vadd.f32 %v1207_v30, %v1198_v29  ;;  %v7502_v8 = vld [vmem:[%s11452_s0 + $0xe8] sm:$0xff]  ;;  %v7499_v17 = vld [vmem:[%s11452_s0 + $0xd0] sm:$0xff] }
 0x270   : > { %v1193_v16 = vpop.f32.mrf.mxu1 }
 0x271   : > { %v1200_v22 = vadd.f32 %v1193_v16, %v1019_v14  ;;  %v1215_v33 = vadd.f32 %v1211_v25, %v1199_v24  ;;  %v7501_v14 = vld [vmem:[%s11452_s0 + $0xe0] sm:$0xff]  ;;  %v7500_v16 = vld [vmem:[%s11452_s0 + $0xd8] sm:$0xff] }
 0x272   : > { %v1195_v23 = vpop.f32.mrf.mxu1  ;;  %v7493_v24 = vld [vmem:[%s11452_s0 + $0xa0] sm:$0xff] }
 0x273   : > { %v1201_v26 = vadd.f32 %v1195_v23, %v1021_v18  ;;  %v1216_v34 = vadd.f32 %v1207_v30, %v1200_v22  ;;  %v7498_v18 = vld [vmem:[%s11452_s0 + $0xc8] sm:$0xff]  ;;  %v7495_v22 = vld [vmem:[%s11452_s0 + $0xb0] sm:$0xff] }
 0x274   : > { %v7494_v23 = vld [vmem:[%s11452_s0 + $0xa8] sm:$0xff] }
 0x275   : > { %v1217_v31 = vadd.f32 %v1211_v25, %v1201_v26  ;;  %v7492_v25 = vld [vmem:[%s11452_s0 + $0x98] sm:$0xff]  ;;  %v7491_v26 = vld [vmem:[%s11452_s0 + $0x90] sm:$0xff] }
 0x277   : > { %1255 = vmatprep.subr.mxu0 %v1217_v31 }
 0x278   : > { %1256 = vmatpush1.msra.mxu0 %v1216_v34 }
 0x279   : > { %1257 = vmatprep.subr.mxu0 %v1215_v33 }
 0x27a   : > { %1258 = vmatpush1.msra.mxu0 %v1214_v35 }
 0x27b   : > { %7421 = vmatmul.mubr.msk.f32.vlgmr.msra.gmra.mxu0 %vm11429_vm0, %v9317_v36  ;;  %1329 = vmatprep.subr.mxu0 %v1217_v31 }
 0x27c   : > { %1330 = vmatpush1.msra.mxu0 %v1216_v34  ;;  %1365 = vmatprep.mubr.f32.mxu0 %v8918_v1 }
 0x27d   : > { %1331 = vmatprep.subr.mxu0 %v1215_v33 }
 0x27e   : > { %1332 = vmatpush1.msra.mxu0 %v1214_v35 }
 0x27f   : > { %7422 = vmatmul.mubr.msk.f32.vlgmr.msra.gmra.mxu0 %vm11429_vm0, %v9331_v38  ;;  %7917 = vmatprep.subr.msk.mxu0 %vm1501_vm1, %v8919_v44  ;;  %vm1496_vm1 = vcmp.eq.s32.totalorder %v9207_v51, %v9320_v37  ;;  %v9450_v51 = vadd.s32 16, %v9039_v2  ;;  %vm11435_vm0 = vcmp.eq.s32.totalorder %v9046_v5, %v9320_v37 }
 0x280   : > { %7918 = vmatpush3.msk.msra.mxu0 %vm1485_vm2, %v8919_v44  ;;  %vm1480_vm2 = vcmp.eq.s32.totalorder %v9211_v52, %v9320_v37 }
 0x281   : > { %7919 = vmatprep.subr.msk.mxu0 %vm1500_vm3, %v8919_v44  ;;  %vm1495_vm3 = vcmp.eq.s32.totalorder %v9222_v53, %v9320_v37  ;;  %v9465_v53 = vadd.s32 136, %v9039_v2  ;;  %vm11430_vm14 = vcmp.eq.s32.totalorder %v9450_v51, %v9320_v37 }
 0x282   : > { %7920 = vmatpush3.msk.msra.mxu0 %vm1484_vm4, %v8919_v44  ;;  %vm1479_vm4 = vcmp.eq.s32.totalorder %v9225_v54, %v9320_v37 }
 0x283   : > { %7921 = vmatprep.subr.msk.mxu0 %vm1499_vm5, %v8919_v44  ;;  %vm1494_vm5 = vcmp.eq.s32.totalorder %v9229_v55, %v9320_v37  ;;  %v9486_v55 = vadd.s32 128, %v9039_v2 }
 0x284   : > { %7922 = vmatpush3.msk.msra.mxu0 %vm1483_vm6, %v8919_v44  ;;  %vm1478_vm6 = vcmp.eq.s32.totalorder %v9240_v56, %v9320_v37 }
 0x285   : > { %7923 = vmatprep.subr.msk.mxu0 %vm1498_vm7, %v8919_v44  ;;  %vm1493_vm7 = vcmp.eq.s32.totalorder %v9243_v57, %v9320_v37 }
 0x286   : > { %7924 = vmatpush3.msk.msra.mxu0 %vm1482_vm8, %v8919_v44  ;;  %vm1477_vm8 = vcmp.eq.s32.totalorder %v9247_v58, %v9320_v37 }
 0x287   : > { %7925 = vmatprep.subr.msk.mxu0 %vm1497_vm10, %v8919_v44  ;;  %vm1492_vm10 = vcmp.eq.s32.totalorder %v9258_v59, %v9320_v37 }
 0x288   : > { %7926 = vmatpush3.msk.msra.mxu0 %vm1481_vm12, %v8919_v44  ;;  %vm1476_vm12 = vcmp.eq.s32.totalorder %v9261_v60, %v9320_v37 }
 0x289   : > { %7927 = vmatprep.subr.msk.mxu0 %vm1496_vm1, %v8919_v44  ;;  %vm1491_vm1 = vcmp.eq.s32.totalorder %v9265_v61, %v9320_v37 }
 0x28a   : > { %7928 = vmatpush3.msk.msra.mxu0 %vm1480_vm2, %v8919_v44  ;;  %vm1475_vm2 = vcmp.eq.s32.totalorder %v9279_v62, %v9320_v37 }
 0x28b   : > { %7929 = vmatprep.subr.msk.mxu0 %vm1495_vm3, %v8919_v44  ;;  %vm1425_vm3 = vcmp.eq.s32.totalorder %v1392_v39, %v9152_v40 }
 0x28c   : > { %7930 = vmatpush3.msk.msra.mxu0 %vm1479_vm4, %v8919_v44  ;;  %vm1490_vm4 = vcmp.eq.s32.totalorder %v1392_v39, %v9320_v37  ;;  %7904 = vmatprep.subr.msk.mxu1 %vm1425_vm3, %v8919_v44  ;;  %vm11431_vm3 = vcmp.eq.s32.totalorder %v9426_v47, %v9320_v37 }
 0x28d   : > { %7931 = vmatprep.subr.msk.mxu0 %vm1494_vm5, %v8919_v44  ;;  %vm1409_vm5 = vcmp.eq.s32.totalorder %v9412_v42, %v9152_v40 }
 0x28e   : > { %7932 = vmatpush3.msk.msra.mxu0 %vm1478_vm6, %v8919_v44  ;;  %vm1474_vm6 = vcmp.eq.s32.totalorder %v9412_v42, %v9320_v37  ;;  %7905 = vmatpush3.msk.msra.mxu1 %vm1409_vm5, %v8919_v44 }
 0x28f   : > { %7933 = vmatprep.subr.msk.mxu0 %vm1493_vm7, %v8919_v44  ;;  %vm1424_vm7 = vcmp.eq.s32.totalorder %v9417_v45, %v9152_v40 }
 0x290   : > { %7934 = vmatpush3.msk.msra.mxu0 %vm1477_vm8, %v8919_v44  ;;  %7906 = vmatprep.subr.msk.mxu1 %vm1424_vm7, %v8919_v44  ;;  %vm1488_vm7 = vcmp.eq.s32.totalorder %v9441_v49, %v9320_v37 }
 0x291   : > { %7935 = vmatprep.subr.msk.mxu0 %vm1492_vm10, %v8919_v44  ;;  %vm1489_vm10 = vcmp.eq.s32.totalorder %v9417_v45, %v9320_v37 }
 0x292   : > { %7936 = vmatpush3.msk.msra.mxu0 %vm1476_vm12, %v8919_v44 }
 0x293   : > { %7937 = vmatprep.subr.msk.mxu0 %vm1491_vm1, %v8919_v44  ;;  %vm1408_vm1 = vcmp.eq.s32.totalorder %v9426_v47, %v9152_v40 }
 0x294   : > { %7938 = vmatpush3.msk.msra.mxu0 %vm1475_vm2, %v8919_v44  ;;  %7907 = vmatpush3.msk.msra.mxu1 %vm1408_vm1, %v8919_v44 }
 0x295   : > { %7939 = vmatprep.subr.msk.mxu0 %vm1490_vm4, %v8919_v44  ;;  %vm1423_vm4 = vcmp.eq.s32.totalorder %v9441_v49, %v9152_v40 }
 0x296   : > { %7940 = vmatpush3.msk.msra.mxu0 %vm1474_vm6, %v8919_v44  ;;  %7908 = vmatprep.subr.msk.mxu1 %vm1423_vm4, %v8919_v44  ;;  %vm1422_vm4 = vcmp.eq.s32.totalorder %v9465_v53, %v9152_v40 }
 0x297   : > { %7941 = vmatprep.subr.msk.mxu0 %vm1489_vm10, %v8919_v44  ;;  %vm11432_vm10 = vcmp.eq.s32.totalorder %v9450_v51, %v9152_v40 }
 0x298   : > { %7942 = vmatpush3.msk.msra.mxu0 %vm11431_vm3, %v8919_v44  ;;  %7909 = vmatpush3.msk.msra.mxu1 %vm11432_vm10, %v8919_v44  ;;  %vm1470_vm3 = vcmp.eq.s32.totalorder %v9039_v2, %v9320_v37 }
 0x299   : > { %7943 = vmatprep.subr.msk.mxu0 %vm1488_vm7, %v8919_v44  ;;  %vm1487_vm7 = vcmp.eq.s32.totalorder %v9465_v53, %v9320_v37  ;;  %7910 = vmatprep.subr.msk.mxu1 %vm1422_vm4, %v8919_v44  ;;  %vm1421_vm4 = vcmp.eq.s32.totalorder %v9486_v55, %v9152_v40 }
 0x29a   : > { %7944 = vmatpush3.msk.msra.mxu0 %vm11430_vm14, %v8919_v44  ;;  %7911 = vmatpush3.msk.msra.mxu1 %vm11433_vm15, %v8919_v44  ;;  %vm1405_vm14 = vcmp.eq.s32.totalorder %v9039_v2, %v9152_v40 }
 0x29b   : > { %7945 = vmatprep.subr.msk.mxu0 %vm1487_vm7, %v8919_v44  ;;  %vm1486_vm7 = vcmp.eq.s32.totalorder %v9486_v55, %v9320_v37  ;;  %7912 = vmatprep.subr.msk.mxu1 %vm1421_vm4, %v8919_v44  ;;  %vm11437_vm4 = vmmov 0  }
 0x29c   : > { %7946 = vmatpush3.msk.msra.mxu0 %vm11435_vm0, %v8919_v44  ;;  %7913 = vmatpush3.msk.msra.mxu1 %vm1405_vm14, %v8919_v44 }
 0x29d   : > { %7947 = vmatprep.subr.msk.mxu0 %vm1486_vm7, %v8919_v44  ;;  %8338 = vmatprep.subr.mxu1 %v8918_v1  ;;  %vm1675_vm7 = vcmask 64512  }
 0x29e   : > { %7948 = vmatpush3.msk.msra.mxu0 %vm1470_vm3, %v8919_v44 }
 0x29f   : > { %8348 = vmatprep.subr.mxu0 %v8918_v1 }
 0x33b   : > { %v1293_v57 = vpop.f32.mrf.mxu0 }
 0x33d   : > { %v1295_v59 = vpop.f32.mrf.mxu0 }
 0x33f   : > { %v1367_v61 = vpop.f32.mrf.mxu0 }
 0x340   : > { %v1372_v4 = vmax.f32 %v1293_v57, %v1367_v61  ;;  %v1763_v57 = vld [vmem:[%s11452_s0 + $0x78] sm:$0xff]  ;;  %v1761_v61 = vld [vmem:[%s11452_s0 + $0x68] sm:$0xff] }
 0x341   : > { %v1369_v63 = vpop.f32.mrf.mxu0 }
 0x342   : > { %v1373_v0 = vmax.f32 %v1295_v59, %v1369_v63  ;;  %v1762_v59 = vld [vmem:[%s11452_s0 + $0x70] sm:$0xff]  ;;  %v1760_v63 = vld [vmem:[%s11452_s0 + $0x60] sm:$0xff] }
 0x344   : > { %1598 = vmatprep.mubr.f32.mxu1 %v1373_v0  ;;  %1668 = vmatprep.mubr.f32.mxu0 %v1373_v0  ;;  %v1759_v0 = vld [vmem:[%s11452_s0 + $0x58] sm:$0xff] }
 0x345   : > { %1599 = vmatmul.mubr.f32.vlgmr.msra.gmra.mxu1 %v1372_v4  ;;  %1669 = vmatmul.mubr.f32.vlgmr.msra.gmra.mxu0 %v1372_v4  ;;  %v1758_v4 = vld [vmem:[%s11452_s0 + $0x50] sm:$0xff] }
 0x346   : > { %8340 = vmatprep.mubr.msk.f32.mxu1 %vm11437_vm4, %v8918_v1  ;;  %8380 = vmatprep.mubr.msk.f32.mxu0 %vm11437_vm4, %v8918_v1 }
 0x347   : > { %8349 = vmatpush3.msra.mxu0 %v7504_v6  ;;  %v1757_v6 = vld [vmem:[%s11452_s0 + $0x48] sm:$0xff] }
 0x348   : > { %8350 = vmatprep.subr.mxu0 %v8918_v1 }
 0x349   : > { %8351 = vmatpush3.msra.mxu0 %v7503_v7  ;;  %v1756_v7 = vld [vmem:[%s11452_s0 + $0x40] sm:$0xff] }
 0x34a   : > { %8352 = vmatprep.subr.mxu0 %v8918_v1 }
 0x34b   : > { %8353 = vmatpush3.msra.mxu0 %v7502_v8  ;;  %v1755_v8 = vld [vmem:[%s11452_s0 + $0x38] sm:$0xff] }
 0x34c   : > { %8354 = vmatprep.subr.mxu0 %v8918_v1 }
 0x34d   : > { %8355 = vmatpush3.msra.mxu0 %v7501_v14  ;;  %v1754_v14 = vld [vmem:[%s11452_s0 + $0x30] sm:$0xff] }
 0x34e   : > { %8356 = vmatprep.subr.mxu0 %v8918_v1 }
 0x34f   : > { %8357 = vmatpush3.msra.mxu0 %v7500_v16  ;;  %v1753_v16 = vld [vmem:[%s11452_s0 + $0x28] sm:$0xff] }
 0x350   : > { %8358 = vmatprep.subr.mxu0 %v8918_v1 }
 0x351   : > { %8359 = vmatpush3.msra.mxu0 %v7499_v17  ;;  %v1752_v17 = vld [vmem:[%s11452_s0 + $0x20] sm:$0xff] }
 0x352   : > { %8360 = vmatprep.subr.mxu0 %v8918_v1 }
 0x353   : > { %8361 = vmatpush3.msra.mxu0 %v7498_v18  ;;  %v1751_v18 = vld [vmem:[%s11452_s0 + $0x18] sm:$0xff] }
 0x354   : > { %8362 = vmatprep.subr.mxu0 %v8918_v1 }
 0x355   : > { %8363 = vmatpush3.msra.mxu0 %v7497_v19  ;;  %v1750_v19 = vld [vmem:[%s11452_s0 + $0x10] sm:$0xff] }
 0x356   : > { %8364 = vmatprep.subr.mxu0 %v8918_v1 }
 0x357   : > { %8365 = vmatpush3.msra.mxu0 %v7496_v21  ;;  %v1749_v21 = vld [vmem:[%s11452_s0 + $0x8] sm:$0xff] }
 0x358   : > { %8366 = vmatprep.subr.mxu0 %v8918_v1 }
 0x359   : > { %8367 = vmatpush3.msra.mxu0 %v7495_v22  ;;  %v1748_v22 = vld [vmem:[%s11452_s0] sm:$0xff] }
 0x35a   : > { %8368 = vmatprep.subr.mxu0 %v8918_v1 }
 0x35b   : > { %8369 = vmatpush3.msra.mxu0 %v7494_v23  ;;  %v7490_v23 = vld [vmem:[%s11452_s0 + $0x88] sm:$0xff] }
 0x35c   : > { %8370 = vmatprep.subr.mxu0 %v8918_v1 }
 0x35d   : > { %8371 = vmatpush3.msra.mxu0 %v7493_v24  ;;  %v7489_v24 = vld [vmem:[%s11452_s0 + $0x80] sm:$0xff] }
 0x35e   : > { %8372 = vmatprep.subr.mxu0 %v8918_v1 }
 0x35f   : > { %8373 = vmatpush3.msra.mxu0 %v7492_v25  ;;  %v7521_v25 = vld [vmem:[%s11452_s0 + $0x178] sm:$0xff] }
 0x360   : > { %8374 = vmatprep.subr.mxu0 %v8918_v1 }
 0x361   : > { %8375 = vmatpush3.msra.mxu0 %v7491_v26 }
 0x362   : > { %8376 = vmatprep.subr.mxu0 %v8918_v1 }
 0x363   : > { %8377 = vmatpush3.msra.mxu0 %v7490_v23 }
 0x364   : > { %8378 = vmatprep.subr.mxu0 %v8918_v1 }
 0x365   : > { %8379 = vmatpush3.msra.mxu0 %v7489_v24 }
 0x366   : > { %8418 = vmatprep.subr.mxu0 %v8918_v1 }
 0x405   : > { %v7914_v29 = vpop.f32.mrf.mxu1  ;;  %v7949_v30 = vpop.f32.mrf.mxu0 }
 0x407   : > { %v7915_v31 = vpop.f32.mrf.mxu1  ;;  %v7950_v34 = vpop.f32.mrf.mxu0 }
 0x408   : > { %v7916_v33 = vadd.f32 %v7915_v31, %v7914_v29  ;;  %v7951_v35 = vadd.f32 %v7950_v34, %v7949_v30  ;;  %v7520_v29 = vld [vmem:[%s11452_s0 + $0x170] sm:$0xff]  ;;  %v7519_v34 = vld [vmem:[%s11452_s0 + $0x168] sm:$0xff] }
 0x40a   : > { %v9582_v39 = vmax.f32 %v7916_v33, %v7951_v35  ;;  %v7518_v35 = vld [vmem:[%s11452_s0 + $0x160] sm:$0xff] }
 0x40c   : > { %8339 = vmatpush3.msra.mxu1 %v9582_v39 }
 0x40d   : > { %8341 = vmatmul.mubr.msk.f32.vlgmr.msra.gmra.mxu1 %vm1675_vm7, %v9056_v9  ;;  %8343 = vmatprep.subr.mxu1 %v8918_v1 }
 0x40e   : > { %8344 = vmatpush3.msra.mxu1 %v9582_v39  ;;  %8345 = vmatprep.mubr.msk.f32.mxu1 %vm11437_vm4, %v8918_v1 }
 0x40f   : > { %8383 = vmatprep.subr.mxu1 %v8918_v1 }
 0x411   : > { %8346 = vmatmul.mubr.msk.f32.vlgmr.msra.gmra.mxu1 %vm1675_vm7, %v9065_v11 }
 0x412   : > { %8384 = vmatpush3.msra.mxu1 %v1763_v57  ;;  %8415 = vmatprep.mubr.msk.f32.mxu1 %vm11437_vm4, %v8918_v1  ;;  %v7517_v57 = vld [vmem:[%s11452_s0 + $0x158] sm:$0xff] }
 0x413   : > { %8385 = vmatprep.subr.mxu1 %v8918_v1 }
 0x414   : > { %8386 = vmatpush3.msra.mxu1 %v1762_v59  ;;  %v7515_v59 = vld [vmem:[%s11452_s0 + $0x148] sm:$0xff] }
 0x415   : > { %8387 = vmatprep.subr.mxu1 %v8918_v1 }
 0x416   : > { %8388 = vmatpush3.msra.mxu1 %v1761_v61  ;;  %v7514_v61 = vld [vmem:[%s11452_s0 + $0x140] sm:$0xff] }
 0x417   : > { %8389 = vmatprep.subr.mxu1 %v8918_v1 }
 0x418   : > { %8390 = vmatpush3.msra.mxu1 %v1760_v63  ;;  %v7513_v63 = vld [vmem:[%s11452_s0 + $0x138] sm:$0xff] }
 0x419   : > { %8391 = vmatprep.subr.mxu1 %v8918_v1 }
 0x41a   : > { %8392 = vmatpush3.msra.mxu1 %v1759_v0  ;;  %v7512_v0 = vld [vmem:[%s11452_s0 + $0x130] sm:$0xff] }
 0x41b   : > { %8393 = vmatprep.subr.mxu1 %v8918_v1 }
 0x41c   : > { %8394 = vmatpush3.msra.mxu1 %v1758_v4  ;;  %v7511_v4 = vld [vmem:[%s11452_s0 + $0x128] sm:$0xff] }
 0x41d   : > { %8395 = vmatprep.subr.mxu1 %v8918_v1 }
 0x41e   : > { %8396 = vmatpush3.msra.mxu1 %v1757_v6  ;;  %v7510_v6 = vld [vmem:[%s11452_s0 + $0x120] sm:$0xff] }
 0x41f   : > { %8397 = vmatprep.subr.mxu1 %v8918_v1 }
 0x420   : > { %8398 = vmatpush3.msra.mxu1 %v1756_v7  ;;  %v7509_v7 = vld [vmem:[%s11452_s0 + $0x118] sm:$0xff] }
 0x421   : > { %8399 = vmatprep.subr.mxu1 %v8918_v1 }
 0x422   : > { %8400 = vmatpush3.msra.mxu1 %v1755_v8  ;;  %v7508_v8 = vld [vmem:[%s11452_s0 + $0x110] sm:$0xff] }
 0x423   : > { %8401 = vmatprep.subr.mxu1 %v8918_v1 }
 0x424   : > { %8402 = vmatpush3.msra.mxu1 %v1754_v14  ;;  %v7507_v14 = vld [vmem:[%s11452_s0 + $0x108] sm:$0xff] }
 0x425   : > { %8403 = vmatprep.subr.mxu1 %v8918_v1 }
 0x426   : > { %8404 = vmatpush3.msra.mxu1 %v1753_v16  ;;  %v7506_v16 = vld [vmem:[%s11452_s0 + $0x100] sm:$0xff] }
 0x427   : > { %8405 = vmatprep.subr.mxu1 %v8918_v1 }
 0x428   : > { %8406 = vmatpush3.msra.mxu1 %v1752_v17 }
 0x429   : > { %8407 = vmatprep.subr.mxu1 %v8918_v1 }
 0x42a   : > { %8408 = vmatpush3.msra.mxu1 %v1751_v18 }
 0x42b   : > { %8409 = vmatprep.subr.mxu1 %v8918_v1 }
 0x42c   : > { %8410 = vmatpush3.msra.mxu1 %v1750_v19 }
 0x42d   : > { %8411 = vmatprep.subr.mxu1 %v8918_v1 }
 0x42e   : > { %8412 = vmatpush3.msra.mxu1 %v1749_v21 }
 0x42f   : > { %8413 = vmatprep.subr.mxu1 %v8918_v1 }
 0x430   : > { %8414 = vmatpush3.msra.mxu1 %v1748_v22 }
 0x431   : > { %8423 = vmatprep.subr.mxu1 %v8918_v1 }
 0x4cd   : > { %v1744_v26 = vpop.f32.mrf.mxu1 }
 0x4ce   : > { %8416 = vmatmul.mubr.f32.vlgmr.msra.gmra.mxu1 %v1744_v26  ;;  %v7522_v26 = vld [vmem:[%s11409_s5] ss:$0 sm:$0xff] }
 0x4cf   : > { %v8342_v30 = vpop.f32.mrf.mxu1  ;;  %8424 = vmatpush3.msra.mxu1 %v7521_v25  ;;  %8455 = vmatprep.mubr.msk.f32.mxu1 %vm11437_vm4, %v8918_v1 }
 0x4d0   : > { %8425 = vmatprep.subr.mxu1 %v8918_v1 }
 0x4d1   : > { %v1832_v31 = vpop.f32.mrf.mxu1  ;;  %8426 = vmatpush3.msra.mxu1 %v7520_v29 }
 0x4d2   : > { %8381 = vmatmul.mubr.f32.vlgmr.msra.gmra.mxu0 %v1832_v31  ;;  %8427 = vmatprep.subr.mxu1 %v8918_v1 }
 0x4d3   : > { %8419 = vmatpush3.msra.mxu0 %v9582_v39  ;;  %v8347_v33 = vpop.f32.mrf.mxu1  ;;  %8420 = vmatprep.mubr.msk.f32.mxu0 %vm11437_vm4, %v8918_v1  ;;  %v7516_v39 = vld [vmem:[%s11452_s0 + $0x150] sm:$0xff] }
 0x4d4   : > { %8428 = vmatpush3.msra.mxu1 %v7519_v34  ;;  %8458 = vmatprep.subr.mxu0 %v8918_v1 }
 0x4d5   : > { %8429 = vmatprep.subr.mxu1 %v8918_v1 }
 0x4d6   : > { %8421 = vmatmul.mubr.msk.f32.vlgmr.msra.gmra.mxu0 %vm1675_vm7, %v9112_v27  ;;  %8430 = vmatpush3.msra.mxu1 %v7518_v35 }
 0x4d7   : > { %8431 = vmatprep.subr.mxu1 %v8918_v1  ;;  %8460 = vmatprep.mubr.msk.f32.mxu0 %vm11437_vm4, %v8918_v1 }
 0x4d8   : > { %8432 = vmatpush3.msra.mxu1 %v7517_v57 }
 0x4d9   : > { %8433 = vmatprep.subr.mxu1 %v8918_v1 }
 0x4da   : > { %8434 = vmatpush3.msra.mxu1 %v7516_v39 }
 0x4db   : > { %8435 = vmatprep.subr.mxu1 %v8918_v1 }
 0x4dc   : > { %8436 = vmatpush3.msra.mxu1 %v7515_v59  ;;  %v2531_v59 = vld [vmem:[%s11410_s6 + $0x18] sm:$0xff] }
 0x4dd   : > { %8437 = vmatprep.subr.mxu1 %v8918_v1 }
 0x4de   : > { %8438 = vmatpush3.msra.mxu1 %v7514_v61  ;;  %v2530_v61 = vld [vmem:[%s11410_s6 + $0x10] sm:$0xff] }
 0x4df   : > { %8439 = vmatprep.subr.mxu1 %v8918_v1 }
 0x4e0   : > { %8440 = vmatpush3.msra.mxu1 %v7513_v63  ;;  %v2529_v63 = vld [vmem:[%s11410_s6 + $0x8] sm:$0xff] }
 0x4e1   : > { %8441 = vmatprep.subr.mxu1 %v8918_v1 }
 0x4e2   : > { %8442 = vmatpush3.msra.mxu1 %v7512_v0 }
 0x4e3   : > { %8443 = vmatprep.subr.mxu1 %v8918_v1 }
 0x4e4   : > { %8444 = vmatpush3.msra.mxu1 %v7511_v4 }
 0x4e5   : > { %8445 = vmatprep.subr.mxu1 %v8918_v1 }
 0x4e6   : > { %8446 = vmatpush3.msra.mxu1 %v7510_v6 }
 0x4e7   : > { %8447 = vmatprep.subr.mxu1 %v8918_v1 }
 0x4e8   : > { %8448 = vmatpush3.msra.mxu1 %v7509_v7 }
 0x4e9   : > { %8449 = vmatprep.subr.mxu1 %v8918_v1 }
 0x4ea   : > { %8450 = vmatpush3.msra.mxu1 %v7508_v8 }
 0x4eb   : > { %8451 = vmatprep.subr.mxu1 %v8918_v1 }
 0x4ec   : > { %8452 = vmatpush3.msra.mxu1 %v7507_v14  ;;  %v7550_v14 = vld [vmem:[%s11410_s6 + $0x38] sm:$0xff] }
 0x4ed   : > { %8453 = vmatprep.subr.mxu1 %v8918_v1 }
 0x4ee   : > { %8454 = vmatpush3.msra.mxu1 %v7506_v16  ;;  %v7549_v16 = vld [vmem:[%s11410_s6 + $0x30] sm:$0xff] }
 0x4ef   : > { %8506 = vmatprep.subr.mxu1 %v8918_v1 }
 0x58e   : > { %v1989_v17 = vpop.f32.mrf.mxu1 }
 0x590   : > { %v8417_v18 = vpop.f32.mrf.mxu1 }
 0x591   : > { %v7548_v18 = vld [vmem:[%s11410_s6 + $0x28] sm:$0xff] }
 0x592   : > { %v1919_v19 = vpop.f32.mrf.mxu0 }
 0x593   : > { %v1990_v21 = vadd.f32 %v1989_v17, %v1919_v19  ;;  %v2528_v17 = vld [vmem:[%s11410_s6] sm:$0xff] }
 0x594   : > { %v8382_v22 = vpop.f32.mrf.mxu0  ;;  %v7547_v19 = vld [vmem:[%s11410_s6 + $0x20] sm:$0xff] }
 0x596   : > { %v2061_v23 = vpop.f32.mrf.mxu0 }
 0x597   : > { %8456 = vmatmul.mubr.f32.vlgmr.msra.gmra.mxu1 %v2061_v23 }
 0x598   : > { %v8422_v24 = vpop.f32.mrf.mxu0  ;;  %8508 = vmatprep.mubr.msk.f32.mxu1 %vm11437_vm4, %v8918_v1 }
 0x657   : > { %v2148_v25 = vpop.f32.mrf.mxu1 }
 0x658   : > { %v2152_v29 = vadd.f32 %v2148_v25, %v1990_v21  ;;  %v7558_v25 = vld [vmem:[%s11410_s6 + $0x58] sm:$0xff] }
 0x659   : > { %v8457_v30 = vpop.f32.mrf.mxu1 }
 0x65a   : > { %v2160_v31 = vadd.f32 %v7522_v26, %v2152_v29  ;;  %v7557_v26 = vld [vmem:[%s11410_s6 + $0x50] sm:$0xff]  ;;  %v7556_v29 = vld [vmem:[%s11410_s6 + $0x48] sm:$0xff]  ;;  %v7555_v30 = vld [vmem:[%s11410_s6 + $0x40] sm:$0xff] }
 0x65c   : > { %8459 = vmatpush3.msra.mxu0 %v2160_v31 }
 0x65d   : > { %8461 = vmatmul.mubr.msk.f32.vlgmr.msra.gmra.mxu0 %vm1675_vm7, %v9317_v36  ;;  %8463 = vmatprep.subr.mxu0 %v8918_v1 }
 0x65e   : > { %8464 = vmatpush3.msra.mxu0 %v2160_v31  ;;  %8465 = vmatprep.mubr.msk.f32.mxu0 %vm11437_vm4, %v8918_v1 }
 0x65f   : > { %8468 = vmatprep.subr.mxu0 %v8918_v1 }
 0x661   : > { %8466 = vmatmul.mubr.msk.f32.vlgmr.msra.gmra.mxu0 %vm1675_vm7, %v9331_v38 }
 0x662   : > { %8469 = vmatpush3.msk.msra.mxu0 %vm1412_vm9, %v8919_v44  ;;  %8484 = vmatprep.mubr.msk.f32.mxu0 %vm11437_vm4, %v8918_v1  ;;  %vm11440_vm9 = vcmask 523264  }
 0x663   : > { %8470 = vmatprep.subr.mxu0 %v8918_v1 }
 0x664   : > { %8471 = vmatpush3.msk.msra.mxu0 %vm1411_vm11, %v8919_v44  ;;  %vm11453_vm11 = vcmp.eq.s32.totalorder %v9426_v47, %v9320_v37 }
 0x665   : > { %8472 = vmatprep.subr.mxu0 %v8918_v1 }
 0x666   : > { %8473 = vmatpush3.msk.msra.mxu0 %vm1410_vm13, %v8919_v44  ;;  %vm11454_vm13 = vcmp.eq.s32.totalorder %v9450_v51, %v9320_v37 }
 0x667   : > { %8474 = vmatprep.subr.mxu0 %v8918_v1 }
 0x668   : > { %8475 = vmatpush3.msk.msra.mxu0 %vm1409_vm5, %v8919_v44  ;;  %vm11455_vm5 = vmmov %vm11453_vm11 }
 0x669   : > { %8476 = vmatprep.subr.mxu0 %v8918_v1 }
 0x66a   : > { %8477 = vmatpush3.msk.msra.mxu0 %vm1408_vm1, %v8919_v44 }
 0x66b   : > { %8478 = vmatprep.subr.mxu0 %v8918_v1 }
 0x66c   : > { %8479 = vmatpush3.msk.msra.mxu0 %vm11432_vm10, %v8919_v44 }
 0x66d   : > { %8480 = vmatprep.subr.mxu0 %v8918_v1 }
 0x66e   : > { %8481 = vmatpush3.msk.msra.mxu0 %vm11433_vm15, %v8919_v44 }
 0x66f   : > { %8482 = vmatprep.subr.mxu0 %v8918_v1 }
 0x670   : > { %8483 = vmatpush3.msk.msra.mxu0 %vm1405_vm14, %v8919_v44 }
 0x671   : > { %8487 = vmatprep.subr.mxu0 %v8918_v1 }
 0x71d   : > { %v2229_v34 = vpop.f32.mrf.mxu0 }
 0x71f   : > { %v8462_v33 = vpop.f32.mrf.mxu0 }
 0x721   : > { %v2301_v35 = vpop.f32.mrf.mxu0 }
 0x722   : > { %v2305_v57 = vmax.f32 %v2229_v34, %v2301_v35 }
 0x723   : > { %v8467_v39 = vpop.f32.mrf.mxu0 }
 0x724   : > { %8485 = vmatmul.mubr.msk.f32.vlgmr.msra.gmra.mxu0 %vm11440_vm9, %v2305_v57 }
 0x725   : > { %8488 = vmatpush3.msk.msra.mxu0 %vm1477_vm8, %v8919_v44  ;;  %8503 = vmatprep.mubr.msk.f32.mxu0 %vm11437_vm4, %v8918_v1  ;;  %vm11434_vm8 = vcmask 1043456  }
 0x726   : > { %8489 = vmatprep.subr.mxu0 %v8918_v1 }
 0x727   : > { %8490 = vmatpush3.msk.msra.mxu0 %vm1476_vm12, %v8919_v44  ;;  %vm2451_vm12 = vcmask 31744  }
 0x728   : > { %8491 = vmatprep.subr.mxu0 %v8918_v1 }
 0x729   : > { %8492 = vmatpush3.msk.msra.mxu0 %vm1475_vm2, %v8919_v44  ;;  %vm11439_vm2 = vcmask 261120  }
 0x72a   : > { %8493 = vmatprep.subr.mxu0 %v8918_v1 }
 0x72b   : > { %8494 = vmatpush3.msk.msra.mxu0 %vm1474_vm6, %v8919_v44  ;;  %vm11456_vm6 = vmmov %vm11454_vm13 }
 0x72c   : > { %8495 = vmatprep.subr.mxu0 %v8918_v1 }
 0x72d   : > { %8496 = vmatpush3.msk.msra.mxu0 %vm11453_vm11, %v8919_v44  ;;  %vm3207_vm11 = vcmask 15360  }
 0x72e   : > { %8497 = vmatprep.subr.mxu0 %v8918_v1 }
 0x72f   : > { %8498 = vmatpush3.msk.msra.mxu0 %vm11454_vm13, %v8919_v44  ;;  %vm11457_vm13 = vcmask 130048  }
 0x730   : > { %8499 = vmatprep.subr.mxu0 %v8918_v1 }
 0x731   : > { %8500 = vmatpush3.msk.msra.mxu0 %vm11435_vm0, %v8919_v44 }
 0x732   : > { %8501 = vmatprep.subr.mxu0 %v8918_v1 }
 0x733   : > { %8502 = vmatpush3.msk.msra.mxu0 %vm1470_vm3, %v8919_v44 }
 0x734   : > { %8504 = vmatmul.mubr.msk.f32.vlgmr.msra.gmra.mxu0 %vm11440_vm9, %v2305_v57  ;;  %8527 = vmatprep.subr.mxu0 %v8918_v1 }
 0x735   : > { %8535 = vmatprep.mubr.msk.f32.mxu0 %vm11437_vm4, %v8918_v1  ;;  %8528 = vmatpush3.msra.mxu0 %v2531_v59 }
 0x736   : > { %8529 = vmatprep.subr.mxu0 %v8918_v1 }
 0x737   : > { %8530 = vmatpush3.msra.mxu0 %v2530_v61 }
 0x738   : > { %8531 = vmatprep.subr.mxu0 %v8918_v1 }
 0x739   : > { %8532 = vmatpush3.msra.mxu0 %v2529_v63  ;;  %v7560_v63 = vld [vmem:[%s11411_s7] ss:$0 sm:$0xff] }
 0x73a   : > { %8533 = vmatprep.subr.mxu0 %v8918_v1 }
 0x73b   : > { %8534 = vmatpush3.msra.mxu0 %v2528_v17 }
 0x73c   : > { %8543 = vmatprep.subr.mxu0 %v8918_v1 }
 0x7e4   : > { %v2376_v0 = vpop.f32.mrf.mxu0 }
 0x7e6   : > { %v8486_v4 = vpop.f32.mrf.mxu0 }
 0x7f4   : > { %v2446_v6 = vpop.f32.mrf.mxu0 }
 0x7f5   : > { %v2450_v7 = vmax.f32 %v2376_v0, %v2446_v6 }
 0x7f6   : > { %v8505_v8 = vpop.f32.mrf.mxu0 }
 0x7f7   : > { %8507 = vmatpush3.msk.msra.mxu1 %vm11434_vm8, %v2450_v7 }
 0x7f8   : > { %8509 = vmatmul.mubr.msk.f32.vlgmr.msra.gmra.mxu1 %vm2451_vm12, %v9056_v9  ;;  %8511 = vmatprep.subr.mxu1 %v8918_v1 }
 0x7f9   : > { %8512 = vmatpush3.msk.msra.mxu1 %vm11434_vm8, %v2450_v7  ;;  %8513 = vmatprep.mubr.msk.f32.mxu1 %vm11437_vm4, %v8918_v1 }
 0x7fa   : > { %8516 = vmatprep.subr.mxu1 %v8918_v1 }
 0x7fc   : > { %8514 = vmatmul.mubr.msk.f32.vlgmr.msra.gmra.mxu1 %vm2451_vm12, %v9065_v11 }
 0x7fd   : > { %8517 = vmatpush3.msra.mxu1 %v7550_v14  ;;  %8524 = vmatprep.mubr.msk.f32.mxu1 %vm11437_vm4, %v8918_v1 }
 0x7fe   : > { %8518 = vmatprep.subr.mxu1 %v8918_v1 }
 0x7ff   : > { %8519 = vmatpush3.msra.mxu1 %v7549_v16 }
 0x800   : > { %8520 = vmatprep.subr.mxu1 %v8918_v1 }
 0x801   : > { %8521 = vmatpush3.msra.mxu1 %v7548_v18 }
 0x802   : > { %8522 = vmatprep.subr.mxu1 %v8918_v1 }
 0x803   : > { %8523 = vmatpush3.msra.mxu1 %v7547_v19 }
 0x804   : > { %8538 = vmatprep.subr.mxu1 %v8918_v1 }
 0x8b8   : > { %v2524_v21 = vpop.f32.mrf.mxu1 }
 0x8b9   : > { %8536 = vmatmul.mubr.msk.f32.vlgmr.msra.gmra.mxu0 %vm11439_vm2, %v2524_v21 }
 0x8ba   : > { %v8510_v22 = vpop.f32.mrf.mxu1  ;;  %8551 = vmatprep.mubr.msk.f32.mxu0 %vm11437_vm4, %v8918_v1  ;;  %8544 = vmatpush3.msra.mxu0 %v7558_v25  ;;  %v3284_v25 = vld [vmem:[%s11412_s8] sm:$0xff] }
 0x8bb   : > { %8545 = vmatprep.subr.mxu0 %v8918_v1  ;;  %v7580_v22 = vld [vmem:[%s11412_s8 + $0x18] sm:$0xff] }
 0x8bc   : > { %v2600_v23 = vpop.f32.mrf.mxu1  ;;  %8546 = vmatpush3.msra.mxu0 %v7557_v26 }
 0x8bd   : > { %8525 = vmatmul.mubr.msk.f32.vlgmr.msra.gmra.mxu1 %vm11439_vm2, %v2600_v23  ;;  %8547 = vmatprep.subr.mxu0 %v8918_v1  ;;  %v3285_v23 = vld [vmem:[%s11412_s8 + $0x8] sm:$0xff] }
 0x8be   : > { %8539 = vmatpush3.msk.msra.mxu1 %vm11434_vm8, %v2450_v7  ;;  %v8515_v24 = vpop.f32.mrf.mxu1  ;;  %8540 = vmatprep.mubr.msk.f32.mxu1 %vm11437_vm4, %v8918_v1 }
 0x8bf   : > { %8554 = vmatprep.subr.mxu1 %v8918_v1  ;;  %8548 = vmatpush3.msra.mxu0 %v7556_v29  ;;  %v7579_v24 = vld [vmem:[%s11412_s8 + $0x10] sm:$0xff] }
 0x8c0   : > { %8549 = vmatprep.subr.mxu0 %v8918_v1 }
 0x8c1   : > { %8541 = vmatmul.mubr.msk.f32.vlgmr.msra.gmra.mxu1 %vm2451_vm12, %v9112_v27  ;;  %8550 = vmatpush3.msra.mxu0 %v7555_v30 }
 0x8c2   : > { %8556 = vmatprep.mubr.msk.f32.mxu1 %vm11437_vm4, %v8918_v1  ;;  %8564 = vmatprep.subr.mxu0 %v8918_v1 }
 0x979   : > { %v2752_v31 = vpop.f32.mrf.mxu0 }
 0x97b   : > { %v8537_v34 = vpop.f32.mrf.mxu0 }
 0x97c   : > { %v7586_v34 = vld [vmem:[%s11412_s8 + $0x28] sm:$0xff] }
 0x97d   : > { %v2679_v33 = vpop.f32.mrf.mxu1 }
 0x97e   : > { %v2753_v35 = vadd.f32 %v2752_v31, %v2679_v33  ;;  %v7585_v33 = vld [vmem:[%s11412_s8 + $0x20] sm:$0xff] }
 0x97f   : > { %v8526_v57 = vpop.f32.mrf.mxu1 }
 0x981   : > { %v2824_v39 = vpop.f32.mrf.mxu1 }
 0x982   : > { %8552 = vmatmul.mubr.msk.f32.vlgmr.msra.gmra.mxu0 %vm11439_vm2, %v2824_v39 }
 0x983   : > { %v8542_v59 = vpop.f32.mrf.mxu1  ;;  %8565 = vmatpush3.msk.msra.mxu0 %vm1408_vm1, %v8919_v44  ;;  %8572 = vmatprep.mubr.msk.f32.mxu0 %vm11437_vm4, %v8918_v1  ;;  %vm11436_vm1 = vcmask 1041408  }
 0x984   : > { %8566 = vmatprep.subr.mxu0 %v8918_v1 }
 0x985   : > { %8567 = vmatpush3.msk.msra.mxu0 %vm11432_vm10, %v8919_v44 }
 0x986   : > { %8568 = vmatprep.subr.mxu0 %v8918_v1 }
 0x987   : > { %8569 = vmatpush3.msk.msra.mxu0 %vm11433_vm15, %v8919_v44 }
 0x988   : > { %8570 = vmatprep.subr.mxu0 %v8918_v1 }
 0x989   : > { %8571 = vmatpush3.msk.msra.mxu0 %vm1405_vm14, %v8919_v44 }
 0x98a   : > { %8586 = vmatprep.subr.mxu0 %v8918_v1 }
 0xa42   : > { %v2902_v61 = vpop.f32.mrf.mxu0 }
 0xa43   : > { %v2906_v0 = vadd.f32 %v2902_v61, %v2753_v35 }
 0xa44   : > { %v8553_v4 = vpop.f32.mrf.mxu0 }
 0xa45   : > { %v2914_v6 = vadd.f32 %v7560_v63, %v2906_v0 }
 0xa47   : > { %8555 = vmatpush3.msk.msra.mxu1 %vm11434_vm8, %v2914_v6 }
 0xa48   : > { %8557 = vmatmul.mubr.msk.f32.vlgmr.msra.gmra.mxu1 %vm2451_vm12, %v9317_v36  ;;  %8559 = vmatprep.subr.mxu1 %v8918_v1 }
 0xa49   : > { %8560 = vmatpush3.msk.msra.mxu1 %vm11434_vm8, %v2914_v6  ;;  %8561 = vmatprep.mubr.msk.f32.mxu1 %vm11437_vm4, %v8918_v1  ;;  %v7588_v6 = vld [vmem:[%s11413_s9] ss:$0 sm:$0xff] }
 0xa4a   : > { %8575 = vmatprep.subr.mxu1 %v8918_v1 }
 0xa4c   : > { %8562 = vmatmul.mubr.msk.f32.vlgmr.msra.gmra.mxu1 %vm2451_vm12, %v9331_v38 }
 0xa4d   : > { %8576 = vmatpush3.msk.msra.mxu1 %vm11455_vm5, %v8919_v44  ;;  %8583 = vmatprep.mubr.msk.f32.mxu1 %vm11437_vm4, %v8918_v1  ;;  %vm11458_vm5 = vmmov %vm11457_vm13 }
 0xa4e   : > { %8577 = vmatprep.subr.mxu1 %v8918_v1 }
 0xa4f   : > { %8578 = vmatpush3.msk.msra.mxu1 %vm11456_vm6, %v8919_v44  ;;  %vm11459_vm6 = vmmov %vm11458_vm5 }
 0xa50   : > { %8579 = vmatprep.subr.mxu1 %v8918_v1 }
 0xa51   : > { %8580 = vmatpush3.msk.msra.mxu1 %vm11435_vm0, %v8919_v44 }
 0xa52   : > { %8581 = vmatprep.subr.mxu1 %v8918_v1 }
 0xa53   : > { %8582 = vmatpush3.msk.msra.mxu1 %vm1470_vm3, %v8919_v44 }
 0xa54   : > { %8591 = vmatprep.subr.mxu1 %v8918_v1 }
 0xb08   : > { %v2986_v36 = vpop.f32.mrf.mxu1 }
 0xb0a   : > { %v8558_v38 = vpop.f32.mrf.mxu1 }
 0xb0c   : > { %v3058_v7 = vpop.f32.mrf.mxu1 }
 0xb0d   : > { %v3062_v8 = vmax.f32 %v2986_v36, %v3058_v7 }
 0xb0e   : > { %v8563_v14 = vpop.f32.mrf.mxu1 }
 0xb0f   : > { %8573 = vmatmul.mubr.msk.f32.vlgmr.msra.gmra.mxu0 %vm11439_vm2, %v3062_v8  ;;  %8584 = vmatmul.mubr.msk.f32.vlgmr.msra.gmra.mxu1 %vm11439_vm2, %v3062_v8  ;;  %v7594_v8 = vld [vmem:[%s11414_s10 + $0x18] sm:$0xff]  ;;  %v3738_v14 = vld [vmem:[%s11414_s10 + $0x8] sm:$0xff] }
 0xb10   : > { %8588 = vmatprep.mubr.msk.f32.mxu0 %vm11437_vm4, %v8918_v1  ;;  %8593 = vmatprep.mubr.msk.f32.mxu1 %vm11437_vm4, %v8918_v1 }
 0xbcf   : > { %v3132_v16 = vpop.f32.mrf.mxu0  ;;  %v3202_v17 = vpop.f32.mrf.mxu1 }
 0xbd0   : > { %v3206_v18 = vmax.f32 %v3132_v16, %v3202_v17  ;;  %v7593_v16 = vld [vmem:[%s11414_s10 + $0x10] sm:$0xff]  ;;  %v3737_v17 = vld [vmem:[%s11414_s10] sm:$0xff] }
 0xbd1   : > { %v8574_v19 = vpop.f32.mrf.mxu0  ;;  %v8585_v21 = vpop.f32.mrf.mxu1 }
 0xbd2   : > { %8587 = vmatpush3.msk.msra.mxu0 %vm11436_vm1, %v3206_v18  ;;  %8592 = vmatpush3.msk.msra.mxu1 %vm11436_vm1, %v3206_v18 }
 0xbd3   : > { %8589 = vmatmul.mubr.msk.f32.vlgmr.msra.gmra.mxu0 %vm3207_vm11, %v9056_v9  ;;  %8594 = vmatmul.mubr.msk.f32.vlgmr.msra.gmra.mxu1 %vm3207_vm11, %v9065_v11 }
 0xbd4   : > { %8596 = vmatprep.subr.mxu0 %v8918_v1  ;;  %8603 = vmatprep.subr.mxu1 %v8918_v1 }
 0xbd5   : > { %8597 = vmatpush3.msra.mxu0 %v7580_v22  ;;  %8604 = vmatpush3.msra.mxu1 %v3285_v23  ;;  %v7600_v23 = vld [vmem:[%s11414_s10 + $0x28] sm:$0xff] }
 0xbd6   : > { %8598 = vmatprep.subr.mxu0 %v8918_v1  ;;  %8605 = vmatprep.subr.mxu1 %v8918_v1 }
 0xbd7   : > { %8599 = vmatpush3.msra.mxu0 %v7579_v24  ;;  %8600 = vmatprep.mubr.msk.f32.mxu0 %vm11437_vm4, %v8918_v1  ;;  %v7599_v24 = vld [vmem:[%s11414_s10 + $0x20] sm:$0xff] }
 0xbd8   : > { %8607 = vmatprep.mubr.msk.f32.mxu1 %vm11437_vm4, %v8918_v1  ;;  %8610 = vmatprep.subr.mxu0 %v8918_v1 }
 0xbd9   : > { %8606 = vmatpush3.msra.mxu1 %v3284_v25  ;;  %v4123_v25 = vld [vmem:[%s654_s29] sm:$0x3]  ;;  %s667_s29 = scalar_lea.vmem %s11424_s20, %s10081_s3 }
 0xbda   : > { %8615 = vmatprep.subr.mxu1 %v8918_v1  ;;  %4125 = vrot.lane.b32.xlu0 %v4123_v25, %s8921_s30  ;;  %v7615_v25 = vld [vmem:[%s11416_s12 + $0x38] sm:$0xff] }
 0xc93   : > { %v3280_v26 = vpop.f32.mrf.mxu0  ;;  %v3354_v29 = vpop.f32.mrf.mxu1 }
 0xc94   : > { %8601 = vmatmul.mubr.msk.f32.vlgmr.msra.gmra.mxu0 %vm11457_vm13, %v3354_v29  ;;  %8608 = vmatmul.mubr.msk.f32.vlgmr.msra.gmra.mxu1 %vm11458_vm5, %v3280_v26  ;;  %vm11460_vm13 = vmmov %vm11458_vm5 }
 0xc95   : > { %8611 = vmatpush3.msk.msra.mxu0 %vm11436_vm1, %v3206_v18  ;;  %v8595_v30 = vpop.f32.mrf.mxu1  ;;  %8612 = vmatprep.mubr.msk.f32.mxu0 %vm11437_vm4, %v8918_v1  ;;  %v8590_v31 = vpop.f32.mrf.mxu0 }
 0xc96   : > { %8619 = vmatprep.mubr.msk.f32.mxu1 %vm11437_vm4, %v8918_v1  ;;  %8622 = vmatprep.subr.mxu0 %v8918_v1 }
 0xc97   : > { %8616 = vmatpush3.msra.mxu1 %v7586_v34 }
 0xc98   : > { %8613 = vmatmul.mubr.msk.f32.vlgmr.msra.gmra.mxu0 %vm3207_vm11, %v9112_v27  ;;  %8617 = vmatprep.subr.mxu1 %v8918_v1 }
 0xc99   : > { %8624 = vmatprep.mubr.msk.f32.mxu0 %vm11437_vm4, %v8918_v1  ;;  %8618 = vmatpush3.msra.mxu1 %v7585_v33 }
 0xc9a   : > { %8627 = vmatprep.subr.mxu1 %v8918_v1 }
 0xd54   : > { %v3430_v35 = vpop.f32.mrf.mxu0  ;;  %v3503_v57 = vpop.f32.mrf.mxu1 }
 0xd55   : > { %v3504_v39 = vadd.f32 %v3503_v57, %v3430_v35  ;;  %v10092_v57 = vmul.u32 2, %v9046_v5 }
 0xd56   : > { %v8602_v59 = vpop.f32.mrf.mxu0  ;;  %v8609_v61 = vpop.f32.mrf.mxu1 }
 0xd57   : > { %v11463_v59 = vmov 0 }
 0xd58   : > { %v3575_v63 = vpop.f32.mrf.mxu0 }
 0xd59   : > { %8620 = vmatmul.mubr.msk.f32.vlgmr.msra.gmra.mxu1 %vm11459_vm6, %v3575_v63  ;;  %vm11462_vm6 = vmmov %vm11458_vm5  ;;  %v7602_v63 = vld [vmem:[%s11415_s11] ss:$0 sm:$0xff] }
 0xd5a   : > { %v8614_v0 = vpop.f32.mrf.mxu0  ;;  %8629 = vmatprep.mubr.msk.f32.mxu1 %vm11437_vm4, %v8918_v1 }
 0xe19   : > { %v3651_v4 = vpop.f32.mrf.mxu1 }
 0xe1a   : > { %v3655_v36 = vadd.f32 %v3651_v4, %v3504_v39  ;;  %v10097_v39 = vadd.s32 1, %v10092_v57 }
 0xe1b   : > { %v8621_v38 = vpop.f32.mrf.mxu1 }
 0xe1c   : > { %v3663_v7 = vadd.f32 %v7588_v6, %v3655_v36 }
 0xe1e   : > { %8623 = vmatpush3.msk.msra.mxu0 %vm11436_vm1, %v3663_v7  ;;  %8628 = vmatpush3.msk.msra.mxu1 %vm11436_vm1, %v3663_v7 }
 0xe1f   : > { %8625 = vmatmul.mubr.msk.f32.vlgmr.msra.gmra.mxu0 %vm3207_vm11, %v9056_v9  ;;  %8630 = vmatmul.mubr.msk.f32.vlgmr.msra.gmra.mxu1 %vm3207_vm11, %v9065_v11 }
 0xe20   : > { %8632 = vmatprep.subr.mxu0 %v8918_v1  ;;  %8639 = vmatprep.subr.mxu1 %v8918_v1 }
 0xe21   : > { %8633 = vmatpush3.msra.mxu0 %v7594_v8  ;;  %8640 = vmatpush3.msra.mxu1 %v3738_v14  ;;  %v4126_v8 = vpop.permute.xlu0 %4125 }
 0xe22   : > { %8634 = vmatprep.subr.mxu0 %v8918_v1  ;;  %8641 = vmatprep.subr.mxu1 %v8918_v1 }
 0xe23   : > { %8635 = vmatpush3.msra.mxu0 %v7593_v16  ;;  %8636 = vmatprep.mubr.msk.f32.mxu0 %vm11437_vm4, %v8918_v1 }
 0xe24   : > { %8643 = vmatprep.mubr.msk.f32.mxu1 %vm11437_vm4, %v8918_v1  ;;  %8646 = vmatprep.subr.mxu0 %v8918_v1 }
 0xe25   : > { %8642 = vmatpush3.msra.mxu1 %v3737_v17 }
 0xe26   : > { %8651 = vmatprep.subr.mxu1 %v8918_v1 }
 0xedf   : > { %v3733_v18 = vpop.f32.mrf.mxu0  ;;  %v3805_v19 = vpop.f32.mrf.mxu1 }
 0xee0   : > { %8637 = vmatmul.mubr.msk.f32.vlgmr.msra.gmra.mxu0 %vm11460_vm13, %v3805_v19  ;;  %8644 = vmatmul.mubr.msk.f32.vlgmr.msra.gmra.mxu1 %vm11458_vm5, %v3733_v18  ;;  %vm4137_vm13 = vcmp.eq.s32.totalorder %v9041_v3, %v10092_v57  ;;  %vm4139_vm5 = vcmp.eq.s32.totalorder %v9041_v3, %v10097_v39 }
 0xee1   : > { %8647 = vmatpush3.msk.msra.mxu0 %vm11436_vm1, %v3663_v7  ;;  %v8631_v21 = vpop.f32.mrf.mxu1  ;;  %8648 = vmatprep.mubr.msk.f32.mxu0 %vm11437_vm4, %v8918_v1  ;;  %v8626_v22 = vpop.f32.mrf.mxu0  ;;  %vm10101_vm10 = vmor %vm4137_vm13, %vm4139_vm5  ;;  %vm11465_vm13 = vcmp.eq.s32.totalorder %v9041_v3, %v9311_v32  ;;  %vm11466_vm5 = vcmp.eq.s32.totalorder %v9041_v3, %v9301_v20  ;;  %v11467_v7 = vmov 0 }
 0xee2   : > { %8655 = vmatprep.mubr.msk.f32.mxu1 %vm11437_vm4, %v8918_v1  ;;  %8658 = vmatprep.subr.mxu0 %v8918_v1  ;;  %v11464_v59 = vsel %vm10101_vm10, 4294967295, %v11463_v59  ;;  %vm10123_vm15 = vmor %vm11466_vm5, %vm11465_vm13  ;;  %vm11469_vm13 = vcmask 130048  }
 0xee3   : > { %8652 = vmatpush3.msra.mxu1 %v7600_v23  ;;  %v11468_v7 = vsel %vm10123_vm15, 4294967295, %v11467_v7  ;;  %vm4134_vm5 = vmor %vm1405_vm14, %vm1470_vm3 }
 0xee4   : > { %8649 = vmatmul.mubr.msk.f32.vlgmr.msra.gmra.mxu0 %vm3207_vm11, %v9112_v27  ;;  %8653 = vmatprep.subr.mxu1 %v8918_v1  ;;  %v10146_v21 = vsel %vm4134_vm5, 1.0, %v8918_v1 }
 0xee5   : > { %8662 = vmatprep.mubr.msk.f32.mxu0 %vm11437_vm4, %v8918_v1  ;;  %8654 = vmatpush3.msra.mxu1 %v7599_v24 }
 0xee6   : > { %8665 = vmatprep.subr.mxu1 %v8918_v1  ;;  %8659 = vmatpush3.msk.msra.mxu0 %vm10101_vm10, %v8919_v44 }
 0xee7   : > { %8660 = vmatprep.subr.mxu0 %v8918_v1 }
 0xee8   : > { %8661 = vmatpush3.msk.msra.mxu0 %vm10123_vm15, %v8919_v44 }
 0xee9   : > { %8670 = vmatprep.subr.mxu0 %v8918_v1 }
 0xfa0   : > { %v3881_v26 = vpop.f32.mrf.mxu0  ;;  %v3954_v29 = vpop.f32.mrf.mxu1 }
 0xfa1   : > { %v3955_v30 = vadd.f32 %v3954_v29, %v3881_v26  ;;  %v4369_v26 = vld [vmem:[%s11416_s12 + $0x18] sm:$0xff] }
 0xfa2   : > { %v8638_v31 = vpop.f32.mrf.mxu0  ;;  %v8645_v34 = vpop.f32.mrf.mxu1 }
 0xfa3   : > { %v4368_v31 = vld [vmem:[%s11416_s12 + $0x10] sm:$0xff]  ;;  %v7613_v34 = vld [vmem:[%s11416_s12 + $0x28] sm:$0xff] }
 0xfa4   : > { %v4024_v33 = vpop.f32.mrf.mxu0 }
 0xfa5   : > { %8656 = vmatmul.mubr.msk.f32.vlgmr.msra.gmra.mxu1 %vm11462_vm6, %v4024_v33  ;;  %vm4113_vm6 = vcmask 123904   ;;  %v4367_v33 = vld [vmem:[%s11416_s12 + $0x8] sm:$0xff] }
 0xfa6   : > { %v8650_v35 = vpop.f32.mrf.mxu0  ;;  %8667 = vmatprep.mubr.msk.f32.mxu1 %vm11437_vm4, %v8918_v1 }
 0xfa7   : > { %v7612_v35 = vld [vmem:[%s11416_s12 + $0x20] sm:$0xff] }
0x1065   : > { %v4100_v61 = vpop.f32.mrf.mxu1 }
0x1066   : > { %v4104_v0 = vadd.f32 %v4100_v61, %v3955_v30  ;;  %v7614_v30 = vld [vmem:[%s11416_s12 + $0x30] sm:$0xff]  ;;  %v4366_v61 = vld [vmem:[%s11416_s12] sm:$0xff] }
0x1067   : > { %v8657_v4 = vpop.f32.mrf.mxu1 }
0x1068   : > { %v4112_v6 = vadd.f32 %v7602_v63, %v4104_v0  ;;  %v7623_v4 = vld [vmem:[%s11416_s12 + $0x58] sm:$0xff] }
0x106a   : > { %v4120_v36 = vmul.f32 0.5, %v4112_v6  ;;  %4116 = vrot.lane.b32.xlu1 %v4112_v6, %s8922_s26  ;;  %4114 = vst.msk [vmem:[%s663_s25] sm:$0x3] %vm4113_vm6, %v4112_v6  ;;  %s659_s25 = scalar_lea.vmem %s11422_s18, %s8882_s23 }
0x106c   : > { %v4121_v38 = vmul.f32 1.442695, %v4120_v36 }
0x106e   : > { %8896 = vpow2.f32 %v4121_v38  ;;  %v7622_v38 = vld [vmem:[%s11416_s12 + $0x50] sm:$0xff] }
0x107b   : > { %v8897_v14 = vpop.eup %8896 }
0x107c   : > { %v4128_v16 = vmul.f32 %v8897_v14, %v4126_v8  ;;  %v7621_v8 = vld [vmem:[%s11416_s12 + $0x48] sm:$0xff]  ;;  %v7620_v14 = vld [vmem:[%s11416_s12 + $0x40] sm:$0xff] }
0x107e   : > { %4130 = vrot.lane.b32.xlu0 %v4128_v16, %s8922_s26  ;;  %v10226_v16 = vmul.u32 2, %v9426_v47 }
0x1080   : > { %vm4751_vm14 = vcmp.eq.s32.totalorder %v9041_v3, %v10226_v16 }
0x10dc   : > { %v4117_v17 = vpop.permute.xlu1 %4116 }
0x10dd   : > { %4119 = vst.msk [vmem:[%s667_s29] sm:$0x3] %vm4113_vm6, %v4117_v17  ;;  %v10232_v17 = vadd.s32 1, %v10226_v16 }
0x10df   : > { %vm4755_vm3 = vcmp.eq.s32.totalorder %v9041_v3, %v10232_v17 }
0x10f0   : > { %v4131_v18 = vpop.permute.xlu0 %4130 }
0x10f1   : > { %v4133_v19 = vadd.f32 %v4131_v18, %v4112_v6 }
0x10f3   : > { %8663 = vmatmul.mubr.msk.f32.vlgmr.msra.gmra.mxu0 %vm11469_vm13, %v4133_v19 }
0x10f4   : > { %8672 = vmatprep.mubr.msk.f32.mxu0 %vm11437_vm4, %v8918_v1 }
0x11b3   : > { %v4213_v22 = vpop.f32.mrf.mxu0 }
0x11b4   : > { %8666 = vmatpush3.msk.msra.mxu1 %vm11436_vm1, %v4213_v22 }
0x11b5   : > { %v8664_v23 = vpop.f32.mrf.mxu0  ;;  %8668 = vmatmul.mubr.msk.f32.vlgmr.msra.gmra.mxu1 %vm3207_vm11, %v10146_v21  ;;  %8675 = vmatprep.subr.mxu1 %v8918_v1  ;;  %vm10236_vm11 = vmor %vm4751_vm14, %vm4755_vm3 }
0x11b6   : > { %8677 = vmatprep.mubr.msk.f32.mxu1 %vm11437_vm4, %v8918_v1 }
0x1275   : > { %v4289_v24 = vpop.f32.mrf.mxu1 }
0x1276   : > { %8671 = vmatpush3.msk.msra.mxu0 %vm11434_vm8, %v4289_v24  ;;  %8676 = vmatpush3.msk.msra.mxu1 %vm11434_vm8, %v4289_v24 }
0x1277   : > { %v8669_v29 = vpop.f32.mrf.mxu1  ;;  %8673 = vmatmul.mubr.msk.f32.vlgmr.msra.gmra.mxu0 %vm2451_vm12, %v9056_v9  ;;  %8678 = vmatmul.mubr.msk.f32.vlgmr.msra.gmra.mxu1 %vm2451_vm12, %v9065_v11 }
0x1278   : > { %8680 = vmatprep.subr.mxu0 %v8918_v1  ;;  %8691 = vmatprep.subr.mxu1 %v8918_v1  ;;  %v10248_v29 = vmul.u32 2, %v9450_v51 }
0x1279   : > { %8681 = vmatpush3.msra.mxu0 %v7615_v25  ;;  %8692 = vmatpush3.msra.mxu1 %v4369_v26 }
0x127a   : > { %8682 = vmatprep.subr.mxu0 %v8918_v1  ;;  %8693 = vmatprep.subr.mxu1 %v8918_v1  ;;  %vm4750_vm6 = vcmp.eq.s32.totalorder %v9041_v3, %v10248_v29 }
0x127b   : > { %8683 = vmatpush3.msra.mxu0 %v7614_v30  ;;  %8694 = vmatpush3.msra.mxu1 %v4368_v31  ;;  %v10251_v30 = vadd.s32 1, %v10248_v29  ;;  %v11472_v31 = vmov 0 }
0x127c   : > { %8684 = vmatprep.subr.mxu0 %v8918_v1  ;;  %8695 = vmatprep.subr.mxu1 %v8918_v1 }
0x127d   : > { %8685 = vmatpush3.msra.mxu0 %v7613_v34  ;;  %8696 = vmatpush3.msra.mxu1 %v4367_v33  ;;  %vm4754_vm13 = vcmp.eq.s32.totalorder %v9041_v3, %v10251_v30  ;;  %v7625_v33 = vld [vmem:[%s11417_s13] ss:$0 sm:$0xff] }
0x127e   : > { %8686 = vmatprep.subr.mxu0 %v8918_v1  ;;  %8697 = vmatprep.subr.mxu1 %v8918_v1  ;;  %vm10257_vm5 = vmor %vm4750_vm6, %vm4754_vm13 }
0x127f   : > { %8687 = vmatpush3.msra.mxu0 %v7612_v35  ;;  %8688 = vmatprep.mubr.msk.f32.mxu0 %vm11437_vm4, %v8918_v1  ;;  %v11473_v31 = vsel %vm10257_vm5, 4294967295, %v11472_v31 }
0x1280   : > { %8699 = vmatprep.mubr.msk.f32.mxu1 %vm11437_vm4, %v8918_v1  ;;  %8702 = vmatprep.subr.mxu0 %v8918_v1 }
0x1281   : > { %8698 = vmatpush3.msra.mxu1 %v4366_v61 }
0x1282   : > { %8707 = vmatprep.subr.mxu1 %v8918_v1 }
0x1337   : > { %v4362_v63 = vpop.f32.mrf.mxu0  ;;  %v4436_v0 = vpop.f32.mrf.mxu1 }
0x1338   : > { %8689 = vmatmul.mubr.msk.f32.vlgmr.msra.gmra.mxu0 %vm11439_vm2, %v4436_v0  ;;  %8700 = vmatmul.mubr.msk.f32.vlgmr.msra.gmra.mxu1 %vm11439_vm2, %v4362_v63 }
0x1339   : > { %8703 = vmatpush3.msk.msra.mxu0 %vm11434_vm8, %v4289_v24  ;;  %v8679_v6 = vpop.f32.mrf.mxu1  ;;  %8704 = vmatprep.mubr.msk.f32.mxu0 %vm11437_vm4, %v8918_v1  ;;  %v8674_v36 = vpop.f32.mrf.mxu0 }
0x133a   : > { %8708 = vmatpush3.msra.mxu1 %v7623_v4  ;;  %8715 = vmatprep.mubr.msk.f32.mxu1 %vm11437_vm4, %v8918_v1  ;;  %v4908_v6 = vadd.s32 4294967294, %v9039_v2 }
0x133b   : > { %8709 = vmatprep.subr.mxu1 %v8918_v1  ;;  %8718 = vmatprep.subr.mxu0 %v8918_v1 }
0x133c   : > { %8705 = vmatmul.mubr.msk.f32.vlgmr.msra.gmra.mxu0 %vm2451_vm12, %v9112_v27  ;;  %8710 = vmatpush3.msra.mxu1 %v7622_v38  ;;  %vm4910_vm14 = vcmp.eq.s32.totalorder %v9041_v3, %v4908_v6  ;;  %v4909_v38 = vadd.s32 4294967294, %v9046_v5  ;;  %v5004_v6 = vld [vmem:[%s11418_s14 + $0x48] sm:$0xff] }
0x133d   : > { %8726 = vmatprep.mubr.msk.f32.mxu0 %vm11437_vm4, %v8918_v1  ;;  %8711 = vmatprep.subr.mxu1 %v8918_v1  ;;  %v4912_v36 = vsel %vm4910_vm14, 1.0, %v8918_v1 }
0x133e   : > { %8712 = vmatpush3.msra.mxu1 %v7621_v8  ;;  %8719 = vmatpush3.msk.msra.mxu0 %vm10236_vm11, %v8919_v44  ;;  %vm4911_vm3 = vcmp.eq.s32.totalorder %v9041_v3, %v4909_v38  ;;  %v5003_v38 = vld [vmem:[%s11418_s14 + $0x40] sm:$0xff] }
0x133f   : > { %8713 = vmatprep.subr.mxu1 %v8918_v1  ;;  %8720 = vmatprep.subr.mxu0 %v8918_v1 }
0x1340   : > { %8714 = vmatpush3.msra.mxu1 %v7620_v14  ;;  %8721 = vmatpush3.msk.msra.mxu0 %vm10257_vm5, %v8919_v44  ;;  %v4913_v14 = vsel %vm4911_vm3, 1.0, %v8918_v1 }
0x1341   : > { %8729 = vmatprep.subr.mxu1 %v8918_v1  ;;  %8722 = vmatprep.subr.mxu0 %v8918_v1 }
0x1342   : > { %8723 = vmatpush3.msk.msra.mxu0 %vm10101_vm10, %v8919_v44 }
0x1343   : > { %8724 = vmatprep.subr.mxu0 %v8918_v1 }
0x1344   : > { %8725 = vmatpush3.msk.msra.mxu0 %vm10123_vm15, %v8919_v44 }
0x13f8   : > { %v4514_v47 = vpop.f32.mrf.mxu0  ;;  %v4587_v19 = vpop.f32.mrf.mxu1 }
0x13f9   : > { %v4588_v22 = vadd.f32 %v4587_v19, %v4514_v47  ;;  %v7652_v47 = vld [vmem:[%s11418_s14 + $0xf8] sm:$0xff] }
0x13fa   : > { %v8690_v23 = vpop.f32.mrf.mxu0  ;;  %v8701_v24 = vpop.f32.mrf.mxu1  ;;  %v5010_v19 = vld [vmem:[%s11418_s14 + $0x78] sm:$0xff] }
0x13fb   : > { %v7651_v23 = vld [vmem:[%s11418_s14 + $0xf0] sm:$0xff] }
0x13fc   : > { %v4657_v25 = vpop.f32.mrf.mxu0  ;;  %v5009_v24 = vld [vmem:[%s11418_s14 + $0x70] sm:$0xff] }
0x13fd   : > { %8716 = vmatmul.mubr.msk.f32.vlgmr.msra.gmra.mxu1 %vm11439_vm2, %v4657_v25  ;;  %v7650_v25 = vld [vmem:[%s11418_s14 + $0xe8] sm:$0xff] }
0x13fe   : > { %v8706_v26 = vpop.f32.mrf.mxu0  ;;  %8731 = vmatprep.mubr.msk.f32.mxu1 %vm11437_vm4, %v8918_v1 }
0x13ff   : > { %v5008_v26 = vld [vmem:[%s11418_s14 + $0x68] sm:$0xff] }
0x14bd   : > { %v4735_v34 = vpop.f32.mrf.mxu1 }
0x14be   : > { %v4739_v35 = vadd.f32 %v4735_v34, %v4588_v22  ;;  %v7649_v34 = vld [vmem:[%s11418_s14 + $0xe0] sm:$0xff] }
0x14bf   : > { %v8717_v61 = vpop.f32.mrf.mxu1 }
0x14c0   : > { %v4747_v63 = vadd.f32 %v7625_v33, %v4739_v35  ;;  %v5007_v33 = vld [vmem:[%s11418_s14 + $0x60] sm:$0xff]  ;;  %v7648_v35 = vld [vmem:[%s11418_s14 + $0xd8] sm:$0xff] }
0x14c1   : > { %v5006_v61 = vld [vmem:[%s11418_s14 + $0x58] sm:$0xff] }
0x14c2   : > { %8727 = vmatmul.mubr.msk.f32.vlgmr.msra.gmra.mxu0 %vm11439_vm2, %v4747_v63  ;;  %v7647_v63 = vld [vmem:[%s11418_s14 + $0xd0] sm:$0xff] }
0x14c3   : > { %8736 = vmatprep.mubr.msk.f32.mxu0 %vm1675_vm7, %v4912_v36  ;;  %v7645_v36 = vld [vmem:[%s11418_s14 + $0xc0] sm:$0xff] }
0x1582   : > { %v4829_v0 = vpop.f32.mrf.mxu0 }
0x1583   : > { %8730 = vmatpush3.msk.msra.mxu1 %vm11434_vm8, %v4829_v0  ;;  %v5005_v0 = vld [vmem:[%s11418_s14 + $0x50] sm:$0xff] }
0x1584   : > { %v8728_v4 = vpop.f32.mrf.mxu0  ;;  %8732 = vmatmul.mubr.msk.f32.vlgmr.msra.gmra.mxu1 %vm2451_vm12, %v10146_v21 }
0x1585   : > { %8741 = vmatprep.mubr.msk.f32.mxu1 %vm1675_vm7, %v9056_v9  ;;  %v7646_v4 = vld [vmem:[%s11418_s14 + $0xc8] sm:$0xff] }
0x1644   : > { %v10287_v8 = vpop.f32.mrf.mxu1 }
0x1645   : > { %8734 = vmatprep.subr.mxu0 %v10287_v8  ;;  %8739 = vmatprep.subr.mxu1 %v10287_v8 }
0x1646   : > { %v8733_v22 = vpop.f32.mrf.mxu1  ;;  %8735 = vmatpush3.msra.mxu0 %v10287_v8  ;;  %8740 = vmatpush3.msra.mxu1 %v10287_v8 }
0x1647   : > { %8737 = vmatmul.mubr.msk.f32.vlgmr.msra.gmra.mxu0 %vm1675_vm7, %v4913_v14  ;;  %8742 = vmatmul.mubr.msk.f32.vlgmr.msra.gmra.mxu1 %vm1675_vm7, %v9062_v10  ;;  %v7644_v14 = vld [vmem:[%s11418_s14 + $0xb8] sm:$0xff]  ;;  %v5001_v22 = vld [vmem:[%s11418_s14 + $0x30] sm:$0xff] }
0x1648   : > { %5127 = vmatprep.subr.mxu0 %v7652_v47  ;;  %5210 = vmatprep.subr.mxu1 %v5010_v19  ;;  %v5002_v47 = vld [vmem:[%s11418_s14 + $0x38] sm:$0xff]  ;;  %v7643_v19 = vld [vmem:[%s11418_s14 + $0xb0] sm:$0xff] }
0x1649   : > { %5128 = vmatpush1.msra.mxu0 %v7651_v23  ;;  %5211 = vmatpush1.msra.mxu1 %v5009_v24  ;;  %v7642_v23 = vld [vmem:[%s11418_s14 + $0xa8] sm:$0xff] }
0x164a   : > { %5129 = vmatprep.subr.mxu0 %v7650_v25  ;;  %5212 = vmatprep.subr.mxu1 %v5008_v26  ;;  %v5000_v24 = vld [vmem:[%s11418_s14 + $0x28] sm:$0xff]  ;;  %v7641_v25 = vld [vmem:[%s11418_s14 + $0xa0] sm:$0xff] }
0x164b   : > { %5130 = vmatpush1.msra.mxu0 %v7649_v34  ;;  %5213 = vmatpush1.msra.mxu1 %v5007_v33  ;;  %v4999_v26 = vld [vmem:[%s11418_s14 + $0x20] sm:$0xff]  ;;  %v7640_v34 = vld [vmem:[%s11418_s14 + $0x98] sm:$0xff] }
0x164c   : > { %5131 = vmatprep.subr.mxu0 %v7648_v35  ;;  %5214 = vmatprep.subr.mxu1 %v5006_v61  ;;  %v4998_v33 = vld [vmem:[%s11418_s14 + $0x18] sm:$0xff]  ;;  %v7639_v35 = vld [vmem:[%s11418_s14 + $0x90] sm:$0xff]  ;;  %v7638_v61 = vld [vmem:[%s11418_s14 + $0x88] sm:$0xff] }
0x164d   : > { %5132 = vmatpush1.msra.mxu0 %v7647_v63  ;;  %5215 = vmatpush1.msra.mxu1 %v5005_v0  ;;  %v7637_v63 = vld [vmem:[%s11418_s14 + $0x80] sm:$0xff]  ;;  %v4997_v0 = vld [vmem:[%s11418_s14 + $0x10] sm:$0xff] }
0x164e   : > { %5133 = vmatprep.subr.mxu0 %v7646_v4  ;;  %5216 = vmatprep.subr.mxu1 %v5004_v6  ;;  %v4996_v4 = vld [vmem:[%s11418_s14 + $0x8] sm:$0xff]  ;;  %v4995_v6 = vld [vmem:[%s11418_s14] sm:$0xff] }
0x164f   : > { %5134 = vmatpush1.msra.mxu0 %v7645_v36  ;;  %5217 = vmatpush1.msra.mxu1 %v5003_v38  ;;  %v7674_v36 = vld [vmem:[%s11418_s14 + $0x178] sm:$0xff] }
0x1650   : > { %5135 = vmatprep.subr.mxu0 %v7644_v14  ;;  %5218 = vmatprep.subr.mxu1 %v5002_v47 }
0x1651   : > { %5136 = vmatpush1.msra.mxu0 %v7643_v19  ;;  %5219 = vmatpush1.msra.mxu1 %v5001_v22  ;;  %v7673_v22 = vld [vmem:[%s11418_s14 + $0x170] sm:$0xff] }
0x1652   : > { %5137 = vmatprep.subr.mxu0 %v7642_v23  ;;  %5220 = vmatprep.subr.mxu1 %v5000_v24  ;;  %v7672_v23 = vld [vmem:[%s11418_s14 + $0x168] sm:$0xff]  ;;  %v7671_v24 = vld [vmem:[%s11418_s14 + $0x160] sm:$0xff] }
0x1653   : > { %5138 = vmatpush1.msra.mxu0 %v7641_v25  ;;  %5221 = vmatpush1.msra.mxu1 %v4999_v26  ;;  %v7670_v25 = vld [vmem:[%s11418_s14 + $0x158] sm:$0xff]  ;;  %v7668_v26 = vld [vmem:[%s11418_s14 + $0x148] sm:$0xff] }
0x1654   : > { %5139 = vmatprep.subr.mxu0 %v7640_v34  ;;  %5222 = vmatprep.subr.mxu1 %v4998_v33  ;;  %v7667_v34 = vld [vmem:[%s11418_s14 + $0x140] sm:$0xff]  ;;  %v7666_v33 = vld [vmem:[%s11418_s14 + $0x138] sm:$0xff] }
0x1655   : > { %5140 = vmatpush1.msra.mxu0 %v7639_v35  ;;  %5175 = vmatprep.mubr.f32.mxu0 %v8918_v1  ;;  %v7665_v35 = vld [vmem:[%s11418_s14 + $0x130] sm:$0xff] }
0x1656   : > { %5141 = vmatprep.subr.mxu0 %v7638_v61  ;;  %5258 = vmatprep.mubr.f32.mxu1 %v8918_v1  ;;  %v7664_v61 = vld [vmem:[%s11418_s14 + $0x128] sm:$0xff] }
0x1657   : > { %5142 = vmatpush1.msra.mxu0 %v7637_v63  ;;  %5223 = vmatpush1.msra.mxu1 %v4997_v0  ;;  %v7663_v63 = vld [vmem:[%s11418_s14 + $0x120] sm:$0xff]  ;;  %v7662_v0 = vld [vmem:[%s11418_s14 + $0x118] sm:$0xff] }
0x1658   : > { %8744 = vmatprep.subr.mxu0 %v10287_v8  ;;  %5224 = vmatprep.subr.mxu1 %v4996_v4  ;;  %v7661_v4 = vld [vmem:[%s11418_s14 + $0x110] sm:$0xff] }
0x1659   : > { %5225 = vmatpush1.msra.mxu1 %v4995_v6  ;;  %v7660_v6 = vld [vmem:[%s11418_s14 + $0x108] sm:$0xff] }
0x165a   : > { %5387 = vmatprep.subr.mxu1 %v7674_v36  ;;  %v7659_v36 = vld [vmem:[%s11418_s14 + $0x100] sm:$0xff] }
0x1707   : > { %v8738_v38 = vpop.f32.mrf.mxu0  ;;  %v8743_v14 = vpop.f32.mrf.mxu1 }
0x1709   : > { %v4986_v47 = vpop.f32.mrf.mxu0  ;;  %v5079_v19 = vpop.f32.mrf.mxu1 }
0x170a   : > { %7653 = vmatmul.mubr.msk.f32.vlgmr.msra.gmra.mxu0 %vm11440_vm9, %v5079_v19  ;;  %7655 = vmatmul.mubr.msk.f32.vlgmr.msra.gmra.mxu1 %vm11440_vm9, %v4986_v47  ;;  %v10462_v47 = vadd.s32 256, %v9041_v3  ;;  %v5484_v19 = vmul.u32 2, %v9165_v43  ;;  %v11474_v43 = vmov 0 }
0x170b   : > { %8745 = vmatpush3.msra.mxu0 %v10287_v8  ;;  %5181 = vmatprep.mubr.f32.mxu0 %v8918_v1  ;;  %v7669_v8 = vld [vmem:[%s11418_s14 + $0x150] sm:$0xff] }
0x170c   : > { %5264 = vmatprep.mubr.f32.mxu1 %v8918_v1  ;;  %5388 = vmatpush1.msra.mxu1 %v7673_v22  ;;  %v5483_v22 = vmul.u32 2, %v9180_v46  ;;  %vm5528_vm2 = vcmp.eq.s32.totalorder %v9041_v3, %v5484_v19 }
0x170d   : > { %5389 = vmatprep.subr.mxu1 %v7672_v23 }
0x170e   : > { %7654 = vmatmul.mubr.msk.f32.gmra.mxu0 %vm11440_vm9, %v8743_v14  ;;  %7656 = vmatmul.mubr.msk.f32.gmra.mxu1 %vm11440_vm9, %v8738_v38  ;;  %v10458_v38 = vadd.s32 128, %v9041_v3  ;;  %v5485_v14 = vmul.u32 2, %v9155_v41  ;;  %v5555_v41 = vadd.s32 1, %v5483_v22 }
0x170f   : > { %8746 = vmatprep.mubr.msk.f32.mxu0 %vm1675_vm7, %v9065_v11  ;;  %5390 = vmatpush1.msra.mxu1 %v7671_v24  ;;  %v5556_v24 = vadd.s32 1, %v5484_v19 }
0x1710   : > { %5391 = vmatprep.subr.mxu1 %v7670_v25  ;;  %5435 = vmatprep.mubr.f32.mxu1 %v8918_v1  ;;  %v5557_v23 = vadd.s32 1, %v5485_v14  ;;  %vm5531_vm12 = vcmp.eq.s32.totalorder %v9041_v3, %v5485_v14  ;;  %v5482_v25 = vmul.u32 2, %v9187_v48  ;;  %vm5533_vm14 = vcmp.eq.s32.totalorder %v10462_v47, %v5485_v14 }
0x1711   : > { %5392 = vmatpush1.msra.mxu1 %v7669_v8  ;;  %vm5529_vm0 = vcmp.eq.s32.totalorder %v10458_v38, %v5484_v19  ;;  %vm5601_vm1 = vcmp.eq.s32.totalorder %v10458_v38, %v5556_v24  ;;  %vm5600_vm9 = vcmp.eq.s32.totalorder %v9041_v3, %v5556_v24  ;;  %vm5526_vm5 = vcmp.eq.s32.totalorder %v10458_v38, %v5483_v22 }
0x1712   : > { %8747 = vmatmul.mubr.msk.f32.vlgmr.msra.gmra.mxu0 %vm1675_vm7, %v9074_v12  ;;  %5393 = vmatprep.subr.mxu1 %v7668_v26  ;;  %vm5532_vm7 = vcmp.eq.s32.totalorder %v10458_v38, %v5485_v14  ;;  %vm5604_vm6 = vcmp.eq.s32.totalorder %v10458_v38, %v5557_v23  ;;  %vm5603_vm13 = vcmp.eq.s32.totalorder %v9041_v3, %v5557_v23  ;;  %v5554_v46 = vadd.s32 1, %v5482_v25  ;;  %vm5657_vm10 = vmor %vm5529_vm0, %vm5601_vm1 }
0x1713   : > { %5394 = vmatpush1.msra.mxu1 %v7667_v34  ;;  %vm5605_vm3 = vcmp.eq.s32.totalorder %v10462_v47, %v5557_v23  ;;  %vm5660_vm8 = vmor %vm5532_vm7, %vm5604_vm6  ;;  %vm5530_vm7 = vcmp.eq.s32.totalorder %v10462_v47, %v5484_v19  ;;  %vm5602_vm6 = vcmp.eq.s32.totalorder %v10462_v47, %v5556_v24  ;;  %v5481_v48 = vmul.u32 2, %v9204_v50 }
0x1714   : > { %5395 = vmatprep.subr.mxu1 %v7666_v33  ;;  %7677 = vmatprep.subr.msk.mxu0 %vm5660_vm8, %v8919_v44  ;;  %vm5659_vm4 = vmor %vm5531_vm12, %vm5603_vm13  ;;  %vm5598_vm8 = vcmp.eq.s32.totalorder %v10458_v38, %v5555_v41  ;;  %vm5525_vm13 = vcmp.eq.s32.totalorder %v9041_v3, %v5483_v22  ;;  %v5480_v8 = vmul.u32 2, %v9211_v52  ;;  %v11476_v26 = vmov 0 }
0x1715   : > { %5396 = vmatpush1.msra.mxu1 %v7665_v35  ;;  %7678 = vmatpush1.msk.msra.mxu0 %vm5659_vm4, %v8919_v44  ;;  %vm10479_vm15 = vmor %vm5533_vm14, %vm5605_vm3  ;;  %vm5597_vm4 = vcmp.eq.s32.totalorder %v9041_v3, %v5555_v41  ;;  %vm5527_vm0 = vcmp.eq.s32.totalorder %v10462_v47, %v5483_v22  ;;  %vm5599_vm1 = vcmp.eq.s32.totalorder %v10462_v47, %v5555_v41  ;;  %v5553_v34 = vadd.s32 1, %v5481_v48 }
0x1716   : > { %5397 = vmatprep.subr.mxu1 %v7664_v61  ;;  %v11475_v43 = vsel %vm10479_vm15, 4294967295, %v11474_v43  ;;  %7679 = vmatprep.subr.msk.mxu0 %vm5657_vm10, %v8919_v44  ;;  %vm5656_vm12 = vmor %vm5528_vm2, %vm5600_vm9  ;;  %vm5523_vm9 = vcmp.eq.s32.totalorder %v10458_v38, %v5482_v25  ;;  %vm5595_vm2 = vcmp.eq.s32.totalorder %v10458_v38, %v5554_v46  ;;  %vm5522_vm15 = vcmp.eq.s32.totalorder %v9041_v3, %v5482_v25 }
0x1717   : > { %5398 = vmatpush1.msra.mxu1 %v7663_v63  ;;  %7680 = vmatpush1.msk.msra.mxu0 %vm5656_vm12, %v8919_v44  ;;  %vm10493_vm14 = vmor %vm5530_vm7, %vm5602_vm6  ;;  %vm5594_vm7 = vcmp.eq.s32.totalorder %v9041_v3, %v5554_v46  ;;  %v5479_v50 = vmul.u32 2, %v9225_v54  ;;  %v11478_v52 = vmov 0  ;;  %v5552_v33 = vadd.s32 1, %v5480_v8 }
0x1718   : > { %5399 = vmatprep.subr.mxu1 %v7662_v0  ;;  %v11477_v26 = vsel %vm10493_vm14, 4294967295, %v11476_v26  ;;  %vm5654_vm10 = vmor %vm5526_vm5, %vm5598_vm8  ;;  %vm5524_vm5 = vcmp.eq.s32.totalorder %v10462_v47, %v5482_v25  ;;  %vm5596_vm8 = vcmp.eq.s32.totalorder %v10462_v47, %v5554_v46  ;;  %vm5519_vm14 = vcmp.eq.s32.totalorder %v9041_v3, %v5481_v48 }
0x1719   : > { %5400 = vmatpush1.msra.mxu1 %v7661_v4  ;;  %7681 = vmatprep.subr.msk.mxu0 %vm5654_vm10, %v8919_v44  ;;  %vm5653_vm3 = vmor %vm5525_vm13, %vm5597_vm4  ;;  %vm5520_vm13 = vcmp.eq.s32.totalorder %v10458_v38, %v5481_v48  ;;  %vm5592_vm4 = vcmp.eq.s32.totalorder %v10458_v38, %v5553_v34  ;;  %v5478_v54 = vmul.u32 2, %v9240_v56  ;;  %v11480_v35 = vmov 0 }
0x171a   : > { %5401 = vmatprep.subr.mxu1 %v7660_v6  ;;  %7682 = vmatpush1.msk.msra.mxu0 %vm5653_vm3, %v8919_v44  ;;  %vm10506_vm6 = vmor %vm5527_vm0, %vm5599_vm1  ;;  %vm5591_vm0 = vcmp.eq.s32.totalorder %v9041_v3, %v5553_v34  ;;  %v5551_v61 = vadd.s32 1, %v5479_v50  ;;  %v5477_v56 = vmul.u32 2, %v9247_v58  ;;  %v11482_v63 = vmov 0 }
0x171b   : > { %5402 = vmatpush1.msra.mxu1 %v7659_v36  ;;  %v11479_v52 = vsel %vm10506_vm6, 4294967295, %v11478_v52  ;;  %vm5651_vm12 = vmor %vm5523_vm9, %vm5595_vm2  ;;  %vm5521_vm9 = vcmp.eq.s32.totalorder %v10462_v47, %v5481_v48  ;;  %vm5593_vm2 = vcmp.eq.s32.totalorder %v10462_v47, %v5553_v34  ;;  %vm5516_vm6 = vcmp.eq.s32.totalorder %v9041_v3, %v5480_v8 }
0x171c   : > { %5813 = vmatprep.subr.mxu1 %v8918_v1  ;;  %7683 = vmatprep.subr.msk.mxu0 %vm5651_vm12, %v8919_v44  ;;  %vm5650_vm10 = vmor %vm5522_vm15, %vm5594_vm7  ;;  %vm5517_vm15 = vcmp.eq.s32.totalorder %v10458_v38, %v5480_v8  ;;  %vm5589_vm7 = vcmp.eq.s32.totalorder %v10458_v38, %v5552_v33  ;;  %v5550_v0 = vadd.s32 1, %v5478_v54  ;;  %v5476_v58 = vmul.u32 2, %v9261_v60 }
0x171d   : > { %7684 = vmatpush1.msk.msra.mxu0 %vm5650_vm10, %v8919_v44  ;;  %vm10519_vm1 = vmor %vm5524_vm5, %vm5596_vm8  ;;  %vm5588_vm5 = vcmp.eq.s32.totalorder %v9041_v3, %v5552_v33  ;;  %v11484_v4 = vmov 0  ;;  %v5549_v6 = vadd.s32 1, %v5477_v56  ;;  %v5475_v60 = vmul.u32 2, %v9279_v62 }
0x171e   : > { %v11481_v35 = vsel %vm10519_vm1, 4294967295, %v11480_v35  ;;  %vm5648_vm3 = vmor %vm5520_vm13, %vm5592_vm4  ;;  %vm5518_vm13 = vcmp.eq.s32.totalorder %v10462_v47, %v5480_v8  ;;  %vm5590_vm4 = vcmp.eq.s32.totalorder %v10462_v47, %v5552_v33  ;;  %vm5513_vm1 = vcmp.eq.s32.totalorder %v9041_v3, %v5479_v50 }
0x171f   : > { %7685 = vmatprep.subr.msk.mxu0 %vm5648_vm3, %v8919_v44  ;;  %vm5647_vm12 = vmor %vm5519_vm14, %vm5591_vm0  ;;  %vm5514_vm14 = vcmp.eq.s32.totalorder %v10458_v38, %v5479_v50  ;;  %vm5586_vm0 = vcmp.eq.s32.totalorder %v10458_v38, %v5551_v61  ;;  %v11486_v36 = vmov 0  ;;  %v5548_v14 = vadd.s32 1, %v5476_v58 }
0x1720   : > { %7686 = vmatpush1.msk.msra.mxu0 %vm5647_vm12, %v8919_v44  ;;  %vm10532_vm8 = vmor %vm5521_vm9, %vm5593_vm2  ;;  %vm5585_vm9 = vcmp.eq.s32.totalorder %v9041_v3, %v5551_v61  ;;  %v5474_v62 = vmul.u32 2, %v9412_v42  ;;  %v11488_v19 = vmov 0  ;;  %v5547_v22 = vadd.s32 1, %v5475_v60 }
0x1721   : > { %v11483_v63 = vsel %vm10532_vm8, 4294967295, %v11482_v63  ;;  %vm5645_vm10 = vmor %vm5517_vm15, %vm5589_vm7  ;;  %vm5515_vm15 = vcmp.eq.s32.totalorder %v10462_v47, %v5479_v50  ;;  %vm5587_vm7 = vcmp.eq.s32.totalorder %v10462_v47, %v5551_v61  ;;  %vm5510_vm8 = vcmp.eq.s32.totalorder %v9041_v3, %v5478_v54 }
0x1722   : > { %7687 = vmatprep.subr.msk.mxu0 %vm5645_vm10, %v8919_v44  ;;  %vm5644_vm3 = vmor %vm5516_vm6, %vm5588_vm5  ;;  %vm5511_vm6 = vcmp.eq.s32.totalorder %v10458_v38, %v5478_v54  ;;  %vm5583_vm5 = vcmp.eq.s32.totalorder %v10458_v38, %v5550_v0  ;;  %v11490_v42 = vmov 0  ;;  %v5546_v23 = vadd.s32 1, %v5474_v62 }
0x1723   : > { %7688 = vmatpush1.msk.msra.mxu0 %vm5644_vm3, %v8919_v44  ;;  %vm10545_vm2 = vmor %vm5518_vm13, %vm5590_vm4  ;;  %vm5582_vm13 = vcmp.eq.s32.totalorder %v9041_v3, %v5550_v0  ;;  %v11492_v24 = vmov 0 }
0x1724   : > { %v11485_v4 = vsel %vm10545_vm2, 4294967295, %v11484_v4  ;;  %vm5642_vm12 = vmor %vm5514_vm14, %vm5586_vm0  ;;  %vm5512_vm14 = vcmp.eq.s32.totalorder %v10462_v47, %v5478_v54  ;;  %vm5584_vm0 = vcmp.eq.s32.totalorder %v10462_v47, %v5550_v0  ;;  %vm5507_vm2 = vcmp.eq.s32.totalorder %v9041_v3, %v5477_v56 }
0x1725   : > { %7689 = vmatprep.subr.msk.mxu0 %vm5642_vm12, %v8919_v44  ;;  %vm5641_vm10 = vmor %vm5513_vm1, %vm5585_vm9  ;;  %vm5508_vm1 = vcmp.eq.s32.totalorder %v10458_v38, %v5477_v56  ;;  %vm5580_vm9 = vcmp.eq.s32.totalorder %v10458_v38, %v5549_v6 }
0x1726   : > { %7690 = vmatpush1.msk.msra.mxu0 %vm5641_vm10, %v8919_v44  ;;  %vm10558_vm4 = vmor %vm5515_vm15, %vm5587_vm7  ;;  %vm5579_vm15 = vcmp.eq.s32.totalorder %v9041_v3, %v5549_v6 }
0x1727   : > { %v11487_v36 = vsel %vm10558_vm4, 4294967295, %v11486_v36  ;;  %vm5639_vm3 = vmor %vm5511_vm6, %vm5583_vm5  ;;  %vm5509_vm6 = vcmp.eq.s32.totalorder %v10462_v47, %v5477_v56  ;;  %vm5581_vm5 = vcmp.eq.s32.totalorder %v10462_v47, %v5549_v6  ;;  %vm5504_vm4 = vcmp.eq.s32.totalorder %v9041_v3, %v5476_v58 }
0x1728   : > { %7691 = vmatprep.subr.msk.mxu0 %vm5639_vm3, %v8919_v44  ;;  %vm5638_vm12 = vmor %vm5510_vm8, %vm5582_vm13  ;;  %vm5505_vm8 = vcmp.eq.s32.totalorder %v10458_v38, %v5476_v58  ;;  %vm5577_vm13 = vcmp.eq.s32.totalorder %v10458_v38, %v5548_v14 }
0x1729   : > { %7692 = vmatpush1.msk.msra.mxu0 %vm5638_vm12, %v8919_v44  ;;  %vm10571_vm7 = vmor %vm5512_vm14, %vm5584_vm0  ;;  %vm5576_vm14 = vcmp.eq.s32.totalorder %v9041_v3, %v5548_v14  ;;  %vm5506_vm12 = vcmp.eq.s32.totalorder %v10462_v47, %v5476_v58 }
0x172a   : > { %v11489_v19 = vsel %vm10571_vm7, 4294967295, %v11488_v19  ;;  %vm5636_vm10 = vmor %vm5508_vm1, %vm5580_vm9  ;;  %vm5578_vm1 = vcmp.eq.s32.totalorder %v10462_v47, %v5548_v14  ;;  %vm5502_vm7 = vcmp.eq.s32.totalorder %v10458_v38, %v5475_v60 }
0x172b   : > { %7693 = vmatprep.subr.msk.mxu0 %vm5636_vm10, %v8919_v44  ;;  %vm5635_vm3 = vmor %vm5507_vm2, %vm5579_vm15  ;;  %vm5574_vm2 = vcmp.eq.s32.totalorder %v10458_v38, %v5547_v22  ;;  %vm5501_vm10 = vcmp.eq.s32.totalorder %v9041_v3, %v5475_v60 }
0x172c   : > { %7694 = vmatpush1.msk.msra.mxu0 %vm5635_vm3, %v8919_v44  ;;  %vm10583_vm0 = vmor %vm5509_vm6, %vm5581_vm5  ;;  %vm5573_vm6 = vcmp.eq.s32.totalorder %v9041_v3, %v5547_v22  ;;  %vm5503_vm3 = vcmp.eq.s32.totalorder %v10462_v47, %v5475_v60 }
0x172d   : > { %v11491_v42 = vsel %vm10583_vm0, 4294967295, %v11490_v42  ;;  %vm5633_vm9 = vmor %vm5505_vm8, %vm5577_vm13  ;;  %vm5575_vm8 = vcmp.eq.s32.totalorder %v10462_v47, %v5547_v22  ;;  %vm5499_vm0 = vcmp.eq.s32.totalorder %v10458_v38, %v5474_v62 }
0x172e   : > { %7695 = vmatprep.subr.msk.mxu0 %vm5633_vm9, %v8919_v44  ;;  %vm5632_vm15 = vmor %vm5504_vm4, %vm5576_vm14  ;;  %vm5571_vm9 = vcmp.eq.s32.totalorder %v10458_v38, %v5546_v23  ;;  %vm5498_vm14 = vcmp.eq.s32.totalorder %v9041_v3, %v5474_v62 }
0x172f   : > { %7696 = vmatpush1.msk.msra.mxu0 %vm5632_vm15, %v8919_v44  ;;  %vm10595_vm5 = vmor %vm5506_vm12, %vm5578_vm1  ;;  %vm5570_vm15 = vcmp.eq.s32.totalorder %v9041_v3, %v5546_v23  ;;  %vm5500_vm1 = vcmp.eq.s32.totalorder %v10462_v47, %v5474_v62 }
0x1730   : > { %v11493_v24 = vsel %vm10595_vm5, 4294967295, %v11492_v24  ;;  %vm5630_vm13 = vmor %vm5502_vm7, %vm5574_vm2  ;;  %vm5572_vm7 = vcmp.eq.s32.totalorder %v10462_v47, %v5546_v23  ;;  %vm5496_vm5 = vcmp.eq.s32.totalorder %v10458_v38, %v10226_v16 }
0x1731   : > { %7697 = vmatprep.subr.msk.mxu0 %vm5630_vm13, %v8919_v44  ;;  %vm5629_vm4 = vmor %vm5501_vm10, %vm5573_vm6  ;;  %vm5568_vm10 = vcmp.eq.s32.totalorder %v10458_v38, %v10232_v17 }
0x1732   : > { %7698 = vmatpush1.msk.msra.mxu0 %vm5629_vm4, %v8919_v44  ;;  %vm10607_vm12 = vmor %vm5503_vm3, %vm5575_vm8  ;;  %vm5494_vm8 = vcmp.eq.s32.totalorder %v10458_v38, %v10248_v29  ;;  %vm5564_vm4 = vcmp.eq.s32.totalorder %v10458_v38, %v10097_v39 }
0x1733   : > { %vm5627_vm2 = vmor %vm5499_vm0, %vm5571_vm9  ;;  %vm5566_vm0 = vcmp.eq.s32.totalorder %v10458_v38, %v10251_v30  ;;  %vm5492_vm9 = vcmp.eq.s32.totalorder %v10458_v38, %v10092_v57 }
0x1734   : > { %7699 = vmatprep.subr.msk.mxu0 %vm5627_vm2, %v8919_v44  ;;  %vm5626_vm6 = vmor %vm5498_vm14, %vm5570_vm15  ;;  %vm5490_vm15 = vcmp.eq.s32.totalorder %v10458_v38, %v9301_v20  ;;  %vm11499_vm2 = vnez %v11464_v59  ;;  %v5487_v59 = vmul.u32 2, %v9465_v53 }
0x1735   : > { %7700 = vmatpush1.msk.msra.mxu0 %vm5626_vm6, %v8919_v44  ;;  %vm10619_vm3 = vmor %vm5500_vm1, %vm5572_vm7  ;;  %vm11498_vm1 = vnez %v11473_v31  ;;  %vm11501_vm6 = vcmask 523264  }
0x1736   : > { %vm5624_vm13 = vmor %vm5496_vm5, %vm5568_vm10  ;;  %vm5562_vm5 = vcmp.eq.s32.totalorder %v10458_v38, %v9311_v32  ;;  %vm11500_vm10 = vnez %v11468_v7 }
0x1737   : > { %7701 = vmatprep.subr.msk.mxu0 %vm5624_vm13, %v8919_v44  ;;  %vm5622_vm14 = vmor %vm5494_vm8, %vm5566_vm0  ;;  %vm11502_vm8 = vnez %v11475_v43  ;;  %vm11503_vm0 = vnez %v11477_v26 }
0x1738   : > { %7702 = vmatpush1.msk.msra.mxu0 %vm10236_vm11, %v8919_v44  ;;  %vm5620_vm7 = vmor %vm5492_vm9, %vm5564_vm4  ;;  %vm11505_vm9 = vnez %v11479_v52  ;;  %vm11506_vm4 = vnez %v11481_v35 }
0x1739   : > { %7703 = vmatprep.subr.msk.mxu0 %vm5622_vm14, %v8919_v44  ;;  %vm5618_vm11 = vmor %vm5490_vm15, %vm5562_vm5  ;;  %vm11507_vm14 = vnez %v11483_v63  ;;  %vm11508_vm15 = vnez %v11485_v4  ;;  %vm11509_vm5 = vnez %v11487_v36 }
0x173a   : > { %7704 = vmatpush1.msk.msra.mxu0 %vm11498_vm1, %v8919_v44  ;;  %vm11504_vm13 = vmmov %vm11501_vm6  ;;  %vm11510_vm1 = vnez %v11489_v19 }
0x173b   : > { %7705 = vmatprep.subr.msk.mxu0 %vm5620_vm7, %v8919_v44  ;;  %vm11511_vm7 = vnez %v11491_v42 }
0x173c   : > { %7706 = vmatpush1.msk.msra.mxu0 %vm11499_vm2, %v8919_v44  ;;  %vm11512_vm2 = vnez %v11493_v24 }
0x173d   : > { %7707 = vmatprep.subr.msk.mxu0 %vm5618_vm11, %v8919_v44  ;;  %vm5497_vm11 = vcmp.eq.s32.totalorder %v10462_v47, %v10226_v16 }
0x173e   : > { %7708 = vmatpush1.msk.msra.mxu0 %vm11500_vm10, %v8919_v44  ;;  %vm5569_vm10 = vcmp.eq.s32.totalorder %v10462_v47, %v10232_v17 }
0x17ca   : > { %v10651_v18 = vpop.f32.mrf.mxu0 }
0x17cc   : > { %v10653_v46 = vpop.f32.mrf.mxu0 }
0x17ce   : > { %v10655_v31 = vpop.f32.mrf.mxu0 }
0x17d0   : > { %v10657_v48 = vpop.f32.mrf.mxu0 }
0x17d2   : > { %v8748_v8 = vpop.f32.mrf.mxu0 }
0x17d4   : > { %v5339_v34 = vpop.f32.mrf.mxu0 }
0x17d5   : > { %7675 = vmatmul.mubr.msk.f32.vlgmr.msra.gmra.mxu1 %vm11501_vm6, %v5339_v34  ;;  %vm5495_vm6 = vcmp.eq.s32.totalorder %v10462_v47, %v10248_v29  ;;  %v5452_v29 = vld [vmem:[%s11419_s15] sm:$0x3] }
0x17d6   : > { %5441 = vmatprep.mubr.f32.mxu1 %v8918_v1  ;;  %7719 = vmatpush1.msk.msra.mxu1 %vm11502_vm8, %v8919_v44  ;;  %vm5567_vm8 = vcmp.eq.s32.totalorder %v10462_v47, %v10251_v30  ;;  %v5461_v43 = vrot.slane %v5452_v29, %v1210_v13 }
0x17d7   : > { %5815 = vmatprep.subr.mxu1 %v8918_v1 }
0x17d8   : > { %7720 = vmatpush1.msk.msra.mxu1 %vm11503_vm0, %v8919_v44  ;;  %vm5625_vm0 = vmor %vm5497_vm11, %vm5569_vm10 }
0x17d9   : > { %7676 = vmatmul.mubr.msk.f32.gmra.mxu1 %vm11504_vm13, %v8748_v8  ;;  %5817 = vmatprep.subr.mxu1 %v8918_v1  ;;  %vm5493_vm13 = vcmp.eq.s32.totalorder %v10462_v47, %v10092_v57  ;;  %v6069_v8 = vadd.s32 4294967295, %v9450_v51 }
0x17da   : > { %7721 = vmatpush1.msk.msra.mxu1 %vm11505_vm9, %v8919_v44  ;;  %vm5565_vm9 = vcmp.eq.s32.totalorder %v10462_v47, %v10097_v39 }
0x17db   : > { %5819 = vmatprep.subr.mxu1 %v8918_v1 }
0x17dc   : > { %7722 = vmatpush1.msk.msra.mxu1 %vm11506_vm4, %v8919_v44  ;;  %vm5491_vm4 = vcmp.eq.s32.totalorder %v10462_v47, %v9301_v20  ;;  %v5489_v20 = vmul.u32 2, %v9417_v45  ;;  %v5559_v45 = vadd.s32 1, %v5487_v59 }
0x17dd   : > { %5821 = vmatprep.subr.mxu1 %v8918_v1 }
0x17de   : > { %7723 = vmatpush1.msk.msra.mxu1 %vm11507_vm14, %v8919_v44  ;;  %vm5563_vm14 = vcmp.eq.s32.totalorder %v10462_v47, %v9311_v32  ;;  %v5561_v57 = vadd.s32 1, %v5489_v20  ;;  %v5488_v32 = vmul.u32 2, %v9441_v49  ;;  %vm5545_vm10 = vcmp.eq.s32.totalorder %v10462_v47, %v5489_v20 }
0x17df   : > { %5823 = vmatprep.subr.mxu1 %v8918_v1  ;;  %v5486_v49 = vmul.u32 2, %v9486_v55  ;;  %v5260_v55 = vpop.f32.mrf.mxu1 }
0x17e0   : > { %7724 = vmatpush1.msk.msra.mxu1 %vm11508_vm15, %v8919_v44  ;;  %vm5619_vm15 = vmor %vm5491_vm4, %vm5563_vm14  ;;  %v5560_v39 = vadd.s32 1, %v5488_v32  ;;  %vm5615_vm11 = vcmp.eq.s32.totalorder %v9041_v3, %v5561_v57  ;;  %vm5542_vm14 = vcmp.eq.s32.totalorder %v10462_v47, %v5488_v32  ;;  %v5261_v30 = vadd.f32 %v5260_v55, %v10651_v18  ;;  %v7779_v55 = vld [vmem:[%s11420_s16 + $0x198] sm:$0xff] }
0x17e1   : > { %5825 = vmatprep.subr.mxu1 %v8918_v1  ;;  %v5558_v53 = vadd.s32 1, %v5486_v49  ;;  %v5262_v7 = vpop.f32.mrf.mxu1 }
0x17e2   : > { %7725 = vmatpush1.msk.msra.mxu1 %vm11509_vm5, %v8919_v44  ;;  %vm5544_vm5 = vcmp.eq.s32.totalorder %v10458_v38, %v5489_v20  ;;  %vm5612_vm4 = vcmp.eq.s32.totalorder %v9041_v3, %v5560_v39 }
0x17e3   : > { %5827 = vmatprep.subr.mxu1 %v8918_v1  ;;  %v5266_v16 = vpop.f32.mrf.mxu1 }
0x17e4   : > { %7726 = vmatpush1.msk.msra.mxu1 %vm11510_vm1, %v8919_v44  ;;  %vm5616_vm1 = vcmp.eq.s32.totalorder %v10458_v38, %v5561_v57  ;;  %v5267_v33 = vadd.f32 %v5266_v16, %v10655_v31  ;;  %v7778_v16 = vld [vmem:[%s11420_s16 + $0x190] sm:$0xff] }
0x17e5   : > { %5829 = vmatprep.subr.mxu1 %v8918_v1  ;;  %v5268_v17 = vpop.f32.mrf.mxu1 }
0x17e6   : > { %7727 = vmatpush1.msk.msra.mxu1 %vm11511_vm7, %v8919_v44  ;;  %vm5672_vm7 = vmor %vm5544_vm5, %vm5616_vm1  ;;  %vm5538_vm5 = vcmp.eq.s32.totalorder %v10458_v38, %v5487_v59  ;;  %vm5610_vm1 = vcmp.eq.s32.totalorder %v10458_v38, %v5559_v45  ;;  %v5269_v35 = vadd.f32 %v5268_v17, %v10657_v48  ;;  %v7793_v17 = vld [vmem:[%s11420_s16 + $0x208] sm:$0xff] }
0x17e7   : > { %5831 = vmatprep.subr.mxu1 %v8918_v1  ;;  %7709 = vmatprep.subr.msk.mxu0 %vm5672_vm7, %v8919_v44 }
0x17e8   : > { %7728 = vmatpush1.msk.msra.mxu1 %vm11512_vm2, %v8919_v44  ;;  %vm5543_vm2 = vcmp.eq.s32.totalorder %v9041_v3, %v5489_v20  ;;  %v7807_v20 = vld [vmem:[%s11420_s16 + $0x278] sm:$0xff] }
0x17e9   : > { %5833 = vmatprep.subr.mxu1 %v8918_v1 }
0x17ea   : > { %7729 = vmatpush1.msk.msra.mxu1 %vm10607_vm12, %v8919_v44  ;;  %vm5623_vm12 = vmor %vm5495_vm6, %vm5567_vm8  ;;  %vm5617_vm6 = vcmp.eq.s32.totalorder %v10462_v47, %v5561_v57 }
0x17eb   : > { %5835 = vmatprep.subr.mxu1 %v8918_v1  ;;  %vm5671_vm8 = vmor %vm5543_vm2, %vm5615_vm11  ;;  %vm5537_vm2 = vcmp.eq.s32.totalorder %v9041_v3, %v5487_v59  ;;  %vm5609_vm11 = vcmp.eq.s32.totalorder %v9041_v3, %v5559_v45 }
0x17ec   : > { %7730 = vmatpush1.msk.msra.mxu1 %vm10619_vm3, %v8919_v44  ;;  %vm5621_vm3 = vmor %vm5493_vm13, %vm5565_vm9  ;;  %vm5613_vm13 = vcmp.eq.s32.totalorder %v10458_v38, %v5560_v39  ;;  %7710 = vmatpush2.msk.msra.mxu0 %vm5671_vm8, %v8919_v44  ;;  %vm5611_vm8 = vcmp.eq.s32.totalorder %v10462_v47, %v5559_v45  ;;  %v7781_v45 = vld [vmem:[%s11420_s16 + $0x1a8] sm:$0xff] }
0x17ed   : > { %5837 = vmatprep.subr.mxu1 %v8918_v1  ;;  %vm5673_vm9 = vmor %vm5545_vm10, %vm5617_vm6  ;;  %vm5539_vm6 = vcmp.eq.s32.totalorder %v10462_v47, %v5487_v59  ;;  %v7782_v59 = vld [vmem:[%s11420_s16 + $0x1b0] sm:$0xff] }
0x17ee   : > { %7731 = vmatpush1.msk.msra.mxu1 %vm5625_vm0, %v8919_v44  ;;  %vm5541_vm0 = vcmp.eq.s32.totalorder %v10458_v38, %v5488_v32 }
0x17ef   : > { %5839 = vmatprep.subr.mxu1 %v8918_v1 }
0x17f0   : > { %7732 = vmatpush1.msk.msra.mxu1 %vm5623_vm12, %v8919_v44  ;;  %vm5540_vm12 = vcmp.eq.s32.totalorder %v9041_v3, %v5488_v32  ;;  %v7783_v32 = vld [vmem:[%s11420_s16 + $0x1b8] sm:$0xff] }
0x17f1   : > { %5841 = vmatprep.subr.mxu1 %v8918_v1  ;;  %vm5668_vm7 = vmor %vm5540_vm12, %vm5612_vm4  ;;  %vm5534_vm4 = vcmp.eq.s32.totalorder %v9041_v3, %v5486_v49 }
0x17f2   : > { %7733 = vmatpush1.msk.msra.mxu1 %vm5621_vm3, %v8919_v44  ;;  %vm5669_vm3 = vmor %vm5541_vm0, %vm5613_vm13  ;;  %vm5535_vm13 = vcmp.eq.s32.totalorder %v10458_v38, %v5486_v49 }
0x17f3   : > { %5843 = vmatprep.subr.mxu1 %v8918_v1  ;;  %7711 = vmatprep.subr.msk.mxu0 %vm5669_vm3, %v8919_v44  ;;  %vm5666_vm0 = vmor %vm5538_vm5, %vm5610_vm1  ;;  %vm5608_vm5 = vcmp.eq.s32.totalorder %v10462_v47, %v5558_v53 }
0x17f4   : > { %7734 = vmatpush1.msk.msra.mxu1 %vm5619_vm15, %v8919_v44  ;;  %vm5614_vm15 = vcmp.eq.s32.totalorder %v10462_v47, %v5560_v39  ;;  %7712 = vmatpush2.msk.msra.mxu0 %vm5668_vm7, %v8919_v44  ;;  %vm5665_vm12 = vmor %vm5537_vm2, %vm5609_vm11  ;;  %vm11513_vm11 = vcmask 261120   ;;  %v7798_v39 = vld [vmem:[%s11420_s16 + $0x230] sm:$0xff] }
0x17f5   : > { %5869 = vmatprep.subr.mxu1 %v8918_v1  ;;  %vm5670_vm10 = vmor %vm5542_vm14, %vm5614_vm15  ;;  %7713 = vmatprep.subr.msk.mxu0 %vm5666_vm0, %v8919_v44  ;;  %vm5606_vm14 = vcmp.eq.s32.totalorder %v9041_v3, %v5558_v53  ;;  %vm5536_vm15 = vcmp.eq.s32.totalorder %v10462_v47, %v5486_v49  ;;  %v5263_v47 = vadd.f32 %v5262_v7, %v10653_v46  ;;  %vm11517_vm0 = vmmov 0   ;;  %v7796_v49 = vld [vmem:[%s11420_s16 + $0x220] sm:$0xff]  ;;  %v7794_v7 = vld [vmem:[%s11420_s16 + $0x210] sm:$0xff] }
0x17f6   : > { %7735 = vmatpush2.msk.msra.mxu1 %vm5673_vm9, %v8919_v44  ;;  %vm5607_vm9 = vcmp.eq.s32.totalorder %v10458_v38, %v5558_v53  ;;  %7714 = vmatpush2.msk.msra.mxu0 %vm5665_vm12, %v8919_v44  ;;  %vm5667_vm3 = vmor %vm5539_vm6, %vm5611_vm8  ;;  %vm11519_vm12 = vcmp.eq.s32.totalorder %v9046_v5, %v9320_v37  ;;  %v7780_v53 = vld [vmem:[%s11420_s16 + $0x1a0] sm:$0xff] }
0x17f7   : > { %5871 = vmatprep.subr.mxu1 %v8918_v1  ;;  %vm5663_vm1 = vmor %vm5535_vm13, %vm5607_vm9  ;;  %vm11518_vm13 = vcmask 1041408   ;;  %vm5888_vm9 = vcmask 80896  }
0x17f8   : > { %7736 = vmatpush2.msk.msra.mxu1 %vm5670_vm10, %v8919_v44  ;;  %7715 = vmatprep.subr.msk.mxu0 %vm5663_vm1, %v8919_v44  ;;  %vm5662_vm7 = vmor %vm5534_vm4, %vm5606_vm14  ;;  %vm11520_vm4 = vcmp.eq.s32.totalorder %v9046_v5, %v9152_v40  ;;  %vm11524_vm1 = vcmp.eq.s32.totalorder %v9450_v51, %v9152_v40 }
0x17f9   : > { %5873 = vmatprep.subr.mxu1 %v8918_v1  ;;  %7716 = vmatpush2.msk.msra.mxu0 %vm5662_vm7, %v8919_v44  ;;  %vm5664_vm2 = vmor %vm5536_vm15, %vm5608_vm5  ;;  %vm11523_vm5 = vcmp.eq.s32.totalorder %v9450_v51, %v9320_v37 }
0x17fa   : > { %7737 = vmatpush2.msk.msra.mxu1 %vm5667_vm3, %v8919_v44  ;;  %vm11514_vm10 = vmmov %vm11513_vm11 }
0x17fb   : > { %5875 = vmatprep.subr.mxu1 %v8918_v1  ;;  %vm11515_vm6 = vmmov %vm11514_vm10 }
0x17fc   : > { %7738 = vmatpush2.msk.msra.mxu1 %vm5664_vm2, %v8919_v44  ;;  %v5457_v44 = vrot.slane %v5452_v29, %v1206_v15  ;;  %vm11516_vm8 = vmmov %vm11515_vm6  ;;  %vm11525_vm2 = vcmask 1043456   ;;  %v7805_v29 = vld [vmem:[%s11420_s16 + $0x268] sm:$0xff] }
0x17fd   : > { %8749 = vmatprep.subr.mxu1 %v8918_v1  ;;  %vm5468_vm14 = vmor %vm11520_vm4, %vm11519_vm12  ;;  %vm6292_vm4 = vcmp.eq.s32.totalorder %v9041_v3, %v9450_v51 }
0x17fe   : > { %vm11521_vm3 = vmmov %vm11518_vm13  ;;  %v5470_v22 = vsel %vm5468_vm14, 1.0, %v8918_v1  ;;  %v6293_v57 = vsel %vm6292_vm4, 1.0, %v8918_v1  ;;  %vm11531_vm14 = vcmask 523264  }
0x17ff   : > { %vm11522_vm15 = vmmov %vm11521_vm3 }
0x1800   : > { %vm5469_vm7 = vmor %vm11524_vm1, %vm11523_vm5 }
0x1801   : > { %v5471_v5 = vsel %vm5469_vm7, 1.0, %v8918_v1  ;;  %vm11530_vm12 = vmmov %vm11525_vm2 }
0x1802   : > { %vm11535_vm1 = vmmov %vm11525_vm2 }
0x1803   : > { %vm11536_vm7 = vmmov %vm11535_vm1 }
0x1895   : > { %v5437_v38 = vpop.f32.mrf.mxu1 }
0x1896   : > { %v5448_v26 = vadd.f32 %v5437_v38, %v5261_v30  ;;  %v7777_v30 = vld [vmem:[%s11420_s16 + $0x188] sm:$0xff]  ;;  %v7792_v38 = vld [vmem:[%s11420_s16 + $0x200] sm:$0xff] }
0x1897   : > { %v5439_v50 = vpop.f32.mrf.mxu1 }
0x1898   : > { %v5449_v52 = vadd.f32 %v5439_v50, %v5263_v47  ;;  %v5464_v56 = vadd.f32 %v5457_v44, %v5448_v26  ;;  %v7804_v47 = vld [vmem:[%s11420_s16 + $0x260] sm:$0xff]  ;;  %v7791_v26 = vld [vmem:[%s11420_s16 + $0x1f8] sm:$0xff] }
0x1899   : > { %v5443_v54 = vpop.f32.mrf.mxu1  ;;  %v7775_v50 = vld [vmem:[%s11420_s16 + $0x178] sm:$0xff] }
0x189a   : > { %v5465_v61 = vadd.f32 %v5461_v43, %v5449_v52  ;;  %v5450_v63 = vadd.f32 %v5443_v54, %v5267_v33  ;;  %v7790_v52 = vld [vmem:[%s11420_s16 + $0x1f0] sm:$0xff] }
0x189b   : > { %v5445_v0 = vpop.f32.mrf.mxu1  ;;  %v7802_v33 = vld [vmem:[%s11420_s16 + $0x250] sm:$0xff] }
0x189c   : > { %v5451_v58 = vadd.f32 %v5445_v0, %v5269_v35  ;;  %7717 = vmatprep.mubr.msk.f32.mxu0 %vm11513_vm11, %v5465_v61  ;;  %7739 = vmatprep.mubr.msk.f32.mxu1 %vm11514_vm10, %v5465_v61  ;;  %v5466_v13 = vadd.f32 %v5457_v44, %v5450_v63  ;;  %vm6072_vm11 = vcmask 162816   ;;  %vm11526_vm10 = vmmov %vm11525_vm2  ;;  %v7803_v44 = vld [vmem:[%s11420_s16 + $0x258] sm:$0xff]  ;;  %v7774_v54 = vld [vmem:[%s11420_s16 + $0x170] sm:$0xff] }
0x189d   : > { %5801 = vmatmul.mubr.f32.vlgmr.msra.gmra.mxu0 %v5464_v56  ;;  %5878 = vmatmul.mubr.f32.vlgmr.msra.gmra.mxu1 %v5464_v56  ;;  %v7789_v35 = vld [vmem:[%s11420_s16 + $0x1e8] sm:$0xff]  ;;  %v7788_v63 = vld [vmem:[%s11420_s16 + $0x1e0] sm:$0xff] }
0x189e   : > { %v5467_v2 = vadd.f32 %v5461_v43, %v5451_v58  ;;  %v7776_v43 = vld [vmem:[%s11420_s16 + $0x180] sm:$0xff]  ;;  %v7801_v61 = vld [vmem:[%s11420_s16 + $0x248] sm:$0xff] }
0x189f   : > { %v7773_v56 = vld [vmem:[%s11420_s16 + $0x168] sm:$0xff]  ;;  %v7800_v0 = vld [vmem:[%s11420_s16 + $0x240] sm:$0xff] }
0x18a0   : > { %7718 = vmatprep.mubr.msk.f32.mxu0 %vm11515_vm6, %v5467_v2  ;;  %7740 = vmatprep.mubr.msk.f32.mxu1 %vm11516_vm8, %v5467_v2  ;;  %vm11527_vm6 = vmmov %vm11525_vm2  ;;  %v7772_v58 = vld [vmem:[%s11420_s16 + $0x160] sm:$0xff]  ;;  %v6283_v2 = vld [vmem:[%s11420_s16 + $0xf8] sm:$0xff] }
0x18a1   : > { %5807 = vmatmul.mubr.f32.gmra.mxu0 %v5466_v13  ;;  %5883 = vmatmul.mubr.f32.gmra.mxu1 %v5466_v13  ;;  %vm11528_vm8 = vmmov %vm11525_vm2  ;;  %v7787_v13 = vld [vmem:[%s11420_s16 + $0x1d8] sm:$0xff] }
0x18a2   : > { %8753 = vmatprep.mubr.msk.f32.mxu1 %vm11517_vm0, %v8918_v1  ;;  %5970 = vmatprep.mubr.f32.mxu0 %v8918_v1 }
0x195d   : > { %v5802_v15 = vpop.f32.mrf.mxu0  ;;  %v5879_v4 = vpop.f32.mrf.mxu1 }
0x195f   : > { %v5804_v6 = vpop.f32.mrf.mxu0  ;;  %v5881_v60 = vpop.f32.mrf.mxu1 }
0x1960   : > { %v7785_v60 = vld [vmem:[%s11420_s16 + $0x1c8] sm:$0xff] }
0x1961   : > { %v5808_v36 = vpop.f32.mrf.mxu0  ;;  %v5884_v14 = vpop.f32.mrf.mxu1 }
0x1962   : > { %8750 = vmatpush3.msk.msra.mxu1 %vm11518_vm13, %v5884_v14  ;;  %vm6070_vm13 = vcmp.eq.s32.totalorder %v9041_v3, %v6069_v8  ;;  %v7784_v14 = vld [vmem:[%s11420_s16 + $0x1c0] sm:$0xff] }
0x1963   : > { %v5810_v62 = vpop.f32.mrf.mxu0  ;;  %v5886_v19 = vpop.f32.mrf.mxu1  ;;  %8751 = vmatprep.subr.mxu1 %v8918_v1  ;;  %v6071_v34 = vsel %vm6070_vm13, 1.0, %v8918_v1 }
0x1964   : > { %7741 = vmatprep.subr.msk.mxu0 %vm11521_vm3, %v5810_v62  ;;  %8752 = vmatpush3.msra.mxu1 %v5879_v4  ;;  %v7786_v4 = vld [vmem:[%s11420_s16 + $0x1d0] sm:$0xff]  ;;  %v7768_v62 = vld [vmem:[%s11420_s16 + $0x140] sm:$0xff]  ;;  %vm11532_vm3 = vmmov %vm11531_vm14 }
0x1965   : > { %7742 = vmatpush1.msk.msra.mxu0 %vm11522_vm15, %v5808_v36  ;;  %8754 = vmatmul.mubr.msk.f32.vlgmr.msra.gmra.mxu1 %vm5888_vm9, %v10146_v21  ;;  %v7769_v36 = vld [vmem:[%s11420_s16 + $0x148] sm:$0xff]  ;;  %vm11533_vm15 = vmmov %vm11532_vm3 }
0x1966   : > { %5936 = vmatprep.subr.mxu0 %v5804_v6  ;;  %8756 = vmatprep.mubr.msk.f32.mxu1 %vm11517_vm0, %v8918_v1  ;;  %v7770_v6 = vld [vmem:[%s11420_s16 + $0x150] sm:$0xff]  ;;  %vm11534_vm5 = vmmov %vm11532_vm3 }
0x1967   : > { %5937 = vmatpush1.msra.mxu0 %v5802_v15  ;;  %8762 = vmatprep.subr.mxu1 %v8918_v1  ;;  %v7771_v15 = vld [vmem:[%s11420_s16 + $0x158] sm:$0xff] }
0x1968   : > { %7743 = vmatmul.mubr.msk.f32.vlgmr.msra.gmra.mxu0 %vm5888_vm9, %v10146_v21 }
0x1969   : > { %8757 = vmatmul.mubr.msk.f32.gmra.mxu1 %vm5888_vm9, %v5470_v22  ;;  %5976 = vmatprep.mubr.f32.mxu0 %v8918_v1 }
0x196a   : > { %8759 = vmatprep.mubr.msk.f32.mxu1 %vm11517_vm0, %v8918_v1 }
0x196c   : > { %7744 = vmatmul.mubr.msk.f32.gmra.mxu0 %vm5888_vm9, %v5470_v22 }
0x196d   : > { %8760 = vmatmul.mubr.msk.f32.gmra.mxu1 %vm5888_vm9, %v5471_v5  ;;  %5982 = vmatprep.mubr.f32.mxu0 %v8918_v1 }
0x196e   : > { %8768 = vmatprep.mubr.msk.f32.mxu1 %vm11517_vm0, %v8918_v1 }
0x1970   : > { %7745 = vmatmul.mubr.msk.f32.gmra.mxu0 %vm5888_vm9, %v5471_v5  ;;  %vm11529_vm9 = vmmov %vm11525_vm2 }
0x1971   : > { %6153 = vmatprep.mubr.f32.mxu0 %v8918_v1 }
0x1a25   : > { %v10832_v40 = vpop.f32.mrf.mxu1 }
0x1a27   : > { %v8755_v37 = vpop.f32.mrf.mxu1 }
0x1a28   : > { %v10834_v21 = vpop.f32.mrf.mxu0 }
0x1a29   : > { %v10836_v42 = vpop.f32.mrf.mxu1 }
0x1a2a   : > { %v10838_v23 = vpop.f32.mrf.mxu0 }
0x1a2b   : > { %v8758_v24 = vpop.f32.mrf.mxu1 }
0x1a2c   : > { %v10840_v25 = vpop.f32.mrf.mxu0 }
0x1a2d   : > { %v10842_v41 = vpop.f32.mrf.mxu1 }
0x1a2e   : > { %v10844_v18 = vpop.f32.mrf.mxu0  ;;  %8763 = vmatpush3.msk.msra.mxu1 %vm11525_vm2, %v10842_v41  ;;  %vm11537_vm2 = vmmov %vm11532_vm3 }
0x1a2f   : > { %v8761_v46 = vpop.f32.mrf.mxu1  ;;  %8764 = vmatprep.subr.mxu1 %v8918_v1  ;;  %vm11540_vm13 = vmmov %vm11537_vm2 }
0x1a30   : > { %v10849_v31 = vpop.f32.mrf.mxu0  ;;  %8765 = vmatpush3.msra.mxu1 %v10836_v42 }
0x1a31   : > { %8766 = vmatprep.subr.mxu1 %v8918_v1 }
0x1a32   : > { %v10853_v48 = vpop.f32.mrf.mxu0  ;;  %8767 = vmatpush3.msra.mxu1 %v10832_v40 }
0x1a33   : > { %7750 = vmatprep.subr.msk.mxu0 %vm11526_vm10, %v10853_v48  ;;  %8769 = vmatmul.mubr.msk.f32.vlgmr.msra.gmra.mxu1 %vm6072_vm11, %v9056_v9  ;;  %vm11538_vm10 = vmmov %vm11537_vm2 }
0x1a34   : > { %8777 = vmatprep.subr.mxu1 %v8918_v1  ;;  %7751 = vmatpush1.msk.msra.mxu0 %vm11527_vm6, %v10849_v31  ;;  %vm11539_vm6 = vmmov %vm11535_vm1 }
0x1a35   : > { %8778 = vmatpush3.msk.msra.mxu1 %vm11528_vm8, %v10842_v41  ;;  %6117 = vmatprep.subr.mxu0 %v10844_v18 }
0x1a36   : > { %8779 = vmatprep.subr.mxu1 %v8918_v1  ;;  %6118 = vmatpush1.msra.mxu0 %v10840_v25 }
0x1a37   : > { %8771 = vmatprep.mubr.msk.f32.mxu1 %vm11517_vm0, %v8918_v1  ;;  %8780 = vmatpush3.msra.mxu1 %v10836_v42 }
0x1a38   : > { %6119 = vmatprep.subr.mxu0 %v10838_v23  ;;  %8772 = vmatmul.mubr.msk.f32.gmra.mxu1 %vm6072_vm11, %v9062_v10 }
0x1a39   : > { %8781 = vmatprep.subr.mxu1 %v8918_v1  ;;  %6120 = vmatpush1.msra.mxu0 %v10834_v21 }
0x1a3a   : > { %8782 = vmatpush3.msra.mxu1 %v10832_v40  ;;  %7752 = vmatmul.mubr.msk.f32.vlgmr.msra.gmra.mxu0 %vm6072_vm11, %v9056_v9  ;;  %v7799_v9 = vld [vmem:[%s11420_s16 + $0x238] sm:$0xff] }
0x1a3b   : > { %7759 = vmatprep.subr.msk.mxu0 %vm11529_vm9, %v10853_v48  ;;  %8774 = vmatprep.mubr.msk.f32.mxu1 %vm11517_vm0, %v8918_v1  ;;  %vm11541_vm9 = vmmov %vm11537_vm2 }
0x1a3c   : > { %7760 = vmatpush1.msk.msra.mxu0 %vm11530_vm12, %v10849_v31  ;;  %8775 = vmatmul.mubr.msk.f32.gmra.mxu1 %vm6072_vm11, %v6071_v34  ;;  %vm11542_vm12 = vmmov %vm11537_vm2 }
0x1a3d   : > { %6329 = vmatprep.subr.mxu0 %v10844_v18  ;;  %6159 = vmatprep.mubr.f32.mxu0 %v8918_v1 }
0x1a3e   : > { %6330 = vmatpush1.msra.mxu0 %v10840_v25  ;;  %8783 = vmatprep.mubr.msk.f32.mxu1 %vm11517_vm0, %v8918_v1 }
0x1a3f   : > { %7753 = vmatmul.mubr.msk.f32.gmra.mxu0 %vm6072_vm11, %v9062_v10  ;;  %6331 = vmatprep.subr.mxu0 %v10838_v23  ;;  %v7806_v10 = vld [vmem:[%s11420_s16 + $0x270] sm:$0xff] }
0x1a40   : > { %6332 = vmatpush1.msra.mxu0 %v10834_v21  ;;  %8784 = vmatmul.mubr.msk.f32.vlgmr.msra.gmra.mxu1 %vm6072_vm11, %v9065_v11 }
0x1a41   : > { %6165 = vmatprep.mubr.f32.mxu0 %v8918_v1  ;;  %8786 = vmatprep.mubr.msk.f32.mxu1 %vm11517_vm0, %v8918_v1 }
0x1a42   : > { %8155 = vmatprep.subr.mxu0 %v7799_v9  ;;  %8792 = vmatprep.subr.mxu1 %v8918_v1 }
0x1a43   : > { %7754 = vmatmul.mubr.msk.f32.gmra.mxu0 %vm6072_vm11, %v6071_v34  ;;  %8793 = vmatpush3.msra.mxu1 %v7807_v20  ;;  %v6267_v20 = vld [vmem:[%s11420_s16 + $0x78] sm:$0xff] }
0x1a44   : > { %8787 = vmatmul.mubr.msk.f32.gmra.mxu1 %vm6072_vm11, %v9074_v12  ;;  %6365 = vmatprep.mubr.f32.mxu0 %v8918_v1 }
0x1a45   : > { %8789 = vmatprep.mubr.msk.f32.mxu1 %vm11517_vm0, %v8918_v1  ;;  %8794 = vmatprep.subr.mxu1 %v8918_v1 }
0x1a46   : > { %8795 = vmatpush3.msra.mxu1 %v7806_v10 }
0x1a47   : > { %7761 = vmatmul.mubr.msk.f32.vlgmr.msra.gmra.mxu0 %vm6072_vm11, %v9065_v11  ;;  %8796 = vmatprep.subr.mxu1 %v8918_v1  ;;  %v7797_v11 = vld [vmem:[%s11420_s16 + $0x228] sm:$0xff] }
0x1a48   : > { %8790 = vmatmul.mubr.msk.f32.gmra.mxu1 %vm6072_vm11, %v6293_v57  ;;  %6371 = vmatprep.mubr.f32.mxu0 %v8918_v1 }
0x1a49   : > { %8156 = vmatpush3.msra.mxu0 %v7783_v32  ;;  %8808 = vmatprep.mubr.msk.f32.mxu1 %vm11517_vm0, %v8918_v1 }
0x1a4a   : > { %8157 = vmatprep.subr.mxu0 %v7798_v39  ;;  %8797 = vmatpush3.msra.mxu1 %v7805_v29  ;;  %v6266_v39 = vld [vmem:[%s11420_s16 + $0x70] sm:$0xff] }
0x1a4b   : > { %7762 = vmatmul.mubr.msk.f32.gmra.mxu0 %vm6072_vm11, %v9074_v12  ;;  %v7795_v12 = vld [vmem:[%s11420_s16 + $0x218] sm:$0xff]  ;;  %8798 = vmatprep.subr.mxu1 %v8918_v1 }
0x1a4c   : > { %6377 = vmatprep.mubr.f32.mxu0 %v8918_v1  ;;  %8158 = vmatpush3.msra.mxu0 %v7782_v59 }
0x1a4d   : > { %8159 = vmatprep.subr.mxu0 %v7797_v11  ;;  %8799 = vmatpush3.msra.mxu1 %v7804_v47  ;;  %v6281_v11 = vld [vmem:[%s11420_s16 + $0xe8] sm:$0xff]  ;;  %v6278_v47 = vld [vmem:[%s11420_s16 + $0xd0] sm:$0xff] }
0x1a4e   : > { %8160 = vmatpush3.msra.mxu0 %v7781_v45  ;;  %8800 = vmatprep.subr.mxu1 %v8918_v1 }
0x1a4f   : > { %7763 = vmatmul.mubr.msk.f32.gmra.mxu0 %vm6072_vm11, %v6293_v57  ;;  %8161 = vmatprep.subr.mxu0 %v7796_v49  ;;  %v6282_v57 = vld [vmem:[%s11420_s16 + $0xf0] sm:$0xff]  ;;  %v6265_v49 = vld [vmem:[%s11420_s16 + $0x68] sm:$0xff] }
0x1a50   : > { %8162 = vmatpush3.msra.mxu0 %v7780_v53  ;;  %8801 = vmatpush3.msra.mxu1 %v7803_v44  ;;  %v6262_v44 = vld [vmem:[%s11420_s16 + $0x50] sm:$0xff] }
0x1a51   : > { %8163 = vmatprep.subr.mxu0 %v7795_v12  ;;  %8802 = vmatprep.subr.mxu1 %v8918_v1  ;;  %v6280_v12 = vld [vmem:[%s11420_s16 + $0xe0] sm:$0xff] }
0x1a52   : > { %8164 = vmatpush3.msra.mxu0 %v7779_v55  ;;  %8803 = vmatpush3.msra.mxu1 %v7802_v33  ;;  %v6290_v33 = vld [vmem:[%s11420_s16 + $0x130] sm:$0xff] }
0x1a53   : > { %8165 = vmatprep.subr.mxu0 %v7794_v7  ;;  %8804 = vmatprep.subr.mxu1 %v8918_v1  ;;  %v6264_v7 = vld [vmem:[%s11420_s16 + $0x60] sm:$0xff] }
0x1a54   : > { %8166 = vmatpush3.msra.mxu0 %v7778_v16  ;;  %8805 = vmatpush3.msra.mxu1 %v7801_v61  ;;  %v6276_v61 = vld [vmem:[%s11420_s16 + $0xc0] sm:$0xff] }
0x1a55   : > { %8167 = vmatprep.subr.mxu0 %v7793_v17  ;;  %8806 = vmatprep.subr.mxu1 %v8918_v1  ;;  %v6279_v17 = vld [vmem:[%s11420_s16 + $0xd8] sm:$0xff] }
0x1a56   : > { %8168 = vmatpush3.msra.mxu0 %v7777_v30  ;;  %8807 = vmatpush3.msra.mxu1 %v7800_v0  ;;  %v6263_v30 = vld [vmem:[%s11420_s16 + $0x58] sm:$0xff]  ;;  %v6260_v0 = vld [vmem:[%s11420_s16 + $0x40] sm:$0xff] }
0x1a57   : > { %8169 = vmatprep.subr.mxu0 %v7792_v38  ;;  %8207 = vmatprep.subr.mxu1 %v6283_v2  ;;  %v6288_v2 = vld [vmem:[%s11420_s16 + $0x120] sm:$0xff] }
0x1a58   : > { %8170 = vmatpush3.msra.mxu0 %v7776_v43 }
0x1a59   : > { %8171 = vmatprep.subr.mxu0 %v7791_v26  ;;  %v6291_v26 = vld [vmem:[%s11420_s16 + $0x138] sm:$0xff] }
0x1a5a   : > { %8172 = vmatpush3.msra.mxu0 %v7775_v50 }
0x1a5b   : > { %8173 = vmatprep.subr.mxu0 %v7790_v52  ;;  %v6277_v52 = vld [vmem:[%s11420_s16 + $0xc8] sm:$0xff] }
0x1a5c   : > { %8174 = vmatpush3.msra.mxu0 %v7774_v54 }
0x1a5d   : > { %8175 = vmatprep.subr.mxu0 %v7789_v35  ;;  %v6261_v35 = vld [vmem:[%s11420_s16 + $0x48] sm:$0xff] }
0x1a5e   : > { %8176 = vmatpush3.msra.mxu0 %v7773_v56  ;;  %v6289_v56 = vld [vmem:[%s11420_s16 + $0x128] sm:$0xff] }
0x1a5f   : > { %8177 = vmatprep.subr.mxu0 %v7788_v63 }
0x1a60   : > { %8178 = vmatpush3.msra.mxu0 %v7772_v58  ;;  %v6275_v58 = vld [vmem:[%s11420_s16 + $0xb8] sm:$0xff] }
0x1a61   : > { %8179 = vmatprep.subr.mxu0 %v7787_v13 }
0x1a62   : > { %8180 = vmatpush3.msra.mxu0 %v7771_v15  ;;  %v6259_v15 = vld [vmem:[%s11420_s16 + $0x38] sm:$0xff] }
0x1a63   : > { %8181 = vmatprep.subr.mxu0 %v7786_v4  ;;  %v6274_v4 = vld [vmem:[%s11420_s16 + $0xb0] sm:$0xff] }
0x1a64   : > { %8182 = vmatpush3.msra.mxu0 %v7770_v6  ;;  %v6287_v6 = vld [vmem:[%s11420_s16 + $0x118] sm:$0xff] }
0x1a65   : > { %8183 = vmatprep.subr.mxu0 %v7785_v60  ;;  %v6258_v60 = vld [vmem:[%s11420_s16 + $0x30] sm:$0xff] }
0x1a66   : > { %8184 = vmatpush3.msra.mxu0 %v7769_v36 }
0x1a67   : > { %8185 = vmatprep.subr.mxu0 %v7784_v14  ;;  %v6273_v14 = vld [vmem:[%s11420_s16 + $0xa8] sm:$0xff] }
0x1a68   : > { %8186 = vmatpush3.msra.mxu0 %v7768_v62  ;;  %v6286_v62 = vld [vmem:[%s11420_s16 + $0x110] sm:$0xff] }
0x1a69   : > { %8817 = vmatprep.subr.mxu0 %v8918_v1 }
0x1af3   : > { %v11054_v19 = vpop.f32.mrf.mxu1 }
0x1af5   : > { %v8770_v22 = vpop.f32.mrf.mxu1 }
0x1af6   : > { %v6257_v22 = vld [vmem:[%s11420_s16 + $0x28] sm:$0xff] }
0x1af8   : > { %v11056_v5 = vpop.f32.mrf.mxu1 }
0x1afa   : > { %v11058_v37 = vpop.f32.mrf.mxu0  ;;  %v8773_v24 = vpop.f32.mrf.mxu1 }
0x1afb   : > { %v6272_v24 = vld [vmem:[%s11420_s16 + $0xa0] sm:$0xff] }
0x1afc   : > { %v6157_v46 = vpop.f32.mrf.mxu0  ;;  %v11060_v8 = vpop.f32.mrf.mxu1 }
0x1afe   : > { %v8776_v34 = vpop.f32.mrf.mxu1 }
0x1aff   : > { %v11062_v9 = vpop.f32.mrf.mxu0  ;;  %v6256_v34 = vld [vmem:[%s11420_s16 + $0x20] sm:$0xff] }
0x1b00   : > { %v6450_v10 = vpop.f32.mrf.mxu1 }
0x1b01   : > { %v11070_v32 = vpop.f32.mrf.mxu0  ;;  %8809 = vmatmul.mubr.msk.f32.vlgmr.msra.gmra.mxu1 %vm11531_vm14, %v6450_v10  ;;  %v6284_v10 = vld [vmem:[%s11420_s16 + $0x100] sm:$0xff] }
0x1b02   : > { %8208 = vmatpush3.msra.mxu1 %v6267_v20  ;;  %v8785_v59 = vpop.f32.mrf.mxu1  ;;  %8811 = vmatprep.mubr.msk.f32.mxu1 %vm11517_vm0, %v8918_v1  ;;  %v6271_v20 = vld [vmem:[%s11420_s16 + $0x98] sm:$0xff] }
0x1b03   : > { %v11081_v45 = vpop.f32.mrf.mxu0  ;;  %8209 = vmatprep.subr.mxu1 %v6282_v57  ;;  %v6255_v57 = vld [vmem:[%s11420_s16 + $0x18] sm:$0xff]  ;;  %v6254_v59 = vld [vmem:[%s11420_s16 + $0x10] sm:$0xff] }
0x1b04   : > { %8210 = vmatpush3.msra.mxu1 %v6266_v39  ;;  %v6455_v53 = vpop.f32.mrf.mxu1  ;;  %v6270_v39 = vld [vmem:[%s11420_s16 + $0x90] sm:$0xff] }
0x1b05   : > { %v11089_v55 = vpop.f32.mrf.mxu0  ;;  %8211 = vmatprep.subr.mxu1 %v6281_v11  ;;  %8812 = vmatmul.mubr.msk.f32.gmra.mxu1 %vm11532_vm3, %v6455_v53  ;;  %v6269_v11 = vld [vmem:[%s11420_s16 + $0x88] sm:$0xff]  ;;  %v7846_v53 = vld [vmem:[%s11420_s16 + $0x338] sm:$0xff] }
0x1b06   : > { %8212 = vmatpush3.msra.mxu1 %v6265_v49  ;;  %v8788_v16 = vpop.f32.mrf.mxu1  ;;  %8814 = vmatprep.mubr.msk.f32.mxu1 %vm11517_vm0, %v8918_v1  ;;  %v6253_v49 = vld [vmem:[%s11420_s16 + $0x8] sm:$0xff] }
0x1b07   : > { %v6367_v29 = vpop.f32.mrf.mxu0  ;;  %8213 = vmatprep.subr.mxu1 %v6280_v12  ;;  %v7830_v12 = vld [vmem:[%s11420_s16 + $0x2b8] sm:$0xff]  ;;  %v7844_v16 = vld [vmem:[%s11420_s16 + $0x328] sm:$0xff] }
0x1b08   : > { %8214 = vmatpush3.msra.mxu1 %v6264_v7  ;;  %v6460_v38 = vpop.f32.mrf.mxu1  ;;  %v7829_v7 = vld [vmem:[%s11420_s16 + $0x2b0] sm:$0xff] }
0x1b09   : > { %v6369_v43 = vpop.f32.mrf.mxu0  ;;  %8215 = vmatprep.subr.mxu1 %v6279_v17  ;;  %8815 = vmatmul.mubr.msk.f32.gmra.mxu1 %vm11533_vm15, %v6460_v38  ;;  %v7828_v17 = vld [vmem:[%s11420_s16 + $0x2a8] sm:$0xff]  ;;  %v7827_v38 = vld [vmem:[%s11420_s16 + $0x2a0] sm:$0xff] }
0x1b0a   : > { %6578 = vmatprep.mubr.f32.mxu0 %v6369_v43  ;;  %8216 = vmatpush3.msra.mxu1 %v6263_v30  ;;  %v8791_v50 = vpop.f32.mrf.mxu1  ;;  %v7843_v30 = vld [vmem:[%s11420_s16 + $0x320] sm:$0xff]  ;;  %v7842_v43 = vld [vmem:[%s11420_s16 + $0x318] sm:$0xff] }
0x1b0b   : > { %6579 = vmatmul.mubr.f32.vlgmr.msra.gmra.mxu0 %v6367_v29  ;;  %8217 = vmatprep.subr.mxu1 %v6278_v47  ;;  %v6373_v54 = vpop.f32.mrf.mxu0  ;;  %v7862_v29 = vld [vmem:[%s11420_s16 + $0x3b8] sm:$0xff]  ;;  %v7861_v47 = vld [vmem:[%s11420_s16 + $0x3b0] sm:$0xff] }
0x1b0c   : > { %6747 = vmatprep.mubr.f32.mxu1 %v6157_v46  ;;  %8818 = vmatpush3.msra.mxu0 %v6291_v26  ;;  %v6285_v46 = vld [vmem:[%s11420_s16 + $0x108] sm:$0xff]  ;;  %v7826_v26 = vld [vmem:[%s11420_s16 + $0x298] sm:$0xff]  ;;  %v7841_v50 = vld [vmem:[%s11420_s16 + $0x310] sm:$0xff] }
0x1b0d   : > { %8218 = vmatpush3.msra.mxu1 %v6262_v44  ;;  %8819 = vmatprep.subr.mxu0 %v8918_v1  ;;  %v6375_v63 = vpop.f32.mrf.mxu0  ;;  %v7860_v44 = vld [vmem:[%s11420_s16 + $0x3a8] sm:$0xff] }
0x1b0e   : > { %8219 = vmatprep.subr.mxu1 %v6277_v52  ;;  %8820 = vmatpush3.msra.mxu0 %v6290_v33  ;;  %v7825_v52 = vld [vmem:[%s11420_s16 + $0x290] sm:$0xff]  ;;  %v7859_v33 = vld [vmem:[%s11420_s16 + $0x3a0] sm:$0xff] }
0x1b0f   : > { %8220 = vmatpush3.msra.mxu1 %v6261_v35  ;;  %8821 = vmatprep.subr.mxu0 %v8918_v1  ;;  %v6379_v13 = vpop.f32.mrf.mxu0  ;;  %v7824_v35 = vld [vmem:[%s11420_s16 + $0x288] sm:$0xff] }
0x1b10   : > { %8221 = vmatprep.subr.mxu1 %v6276_v61  ;;  %8822 = vmatpush3.msra.mxu0 %v6289_v56  ;;  %v7858_v61 = vld [vmem:[%s11420_s16 + $0x398] sm:$0xff]  ;;  %v7839_v56 = vld [vmem:[%s11420_s16 + $0x300] sm:$0xff] }
0x1b11   : > { %8222 = vmatpush3.msra.mxu1 %v6260_v0  ;;  %8823 = vmatprep.subr.mxu0 %v8918_v1  ;;  %v6381_v36 = vpop.f32.mrf.mxu0  ;;  %v7857_v0 = vld [vmem:[%s11420_s16 + $0x390] sm:$0xff] }
0x1b12   : > { %6583 = vmatprep.mubr.f32.mxu0 %v6375_v63  ;;  %8223 = vmatprep.subr.mxu1 %v6275_v58  ;;  %v7823_v63 = vld [vmem:[%s11420_s16 + $0x280] sm:$0xff]  ;;  %v7856_v58 = vld [vmem:[%s11420_s16 + $0x388] sm:$0xff] }
0x1b13   : > { %8824 = vmatpush3.msra.mxu0 %v6288_v2  ;;  %8224 = vmatpush3.msra.mxu1 %v6259_v15  ;;  %v7855_v2 = vld [vmem:[%s11420_s16 + $0x380] sm:$0xff] }
0x1b14   : > { %6584 = vmatmul.mubr.f32.gmra.mxu0 %v6373_v54  ;;  %8825 = vmatprep.subr.mxu0 %v8918_v1  ;;  %v7840_v54 = vld [vmem:[%s11420_s16 + $0x308] sm:$0xff] }
0x1b15   : > { %8225 = vmatprep.subr.mxu1 %v6274_v4  ;;  %8826 = vmatpush3.msra.mxu0 %v6287_v6 }
0x1b16   : > { %8226 = vmatpush3.msra.mxu1 %v6258_v60  ;;  %8827 = vmatprep.subr.mxu0 %v8918_v1 }
0x1b17   : > { %6588 = vmatprep.mubr.f32.mxu0 %v6381_v36  ;;  %8227 = vmatprep.subr.mxu1 %v6273_v14 }
0x1b18   : > { %8828 = vmatpush3.msra.mxu0 %v6286_v62  ;;  %8228 = vmatpush3.msra.mxu1 %v6257_v22 }
0x1b19   : > { %6589 = vmatmul.mubr.f32.gmra.mxu0 %v6379_v13  ;;  %8829 = vmatprep.subr.mxu0 %v8918_v1 }
0x1b1a   : > { %8229 = vmatprep.subr.mxu1 %v6272_v24  ;;  %8830 = vmatpush3.msra.mxu0 %v6285_v46 }
0x1b1b   : > { %8230 = vmatpush3.msra.mxu1 %v6256_v34  ;;  %8831 = vmatprep.subr.mxu0 %v8918_v1 }
0x1b1c   : > { %8231 = vmatprep.subr.mxu1 %v6271_v20  ;;  %8832 = vmatpush3.msra.mxu0 %v6284_v10 }
0x1b1d   : > { %8833 = vmatprep.mubr.msk.f32.mxu0 %vm11517_vm0, %v8918_v1  ;;  %8232 = vmatpush3.msra.mxu1 %v6255_v57 }
0x1b1e   : > { %8834 = vmatmul.mubr.msk.f32.vlgmr.msra.gmra.mxu0 %vm11534_vm5, %v11054_v19  ;;  %7814 = vmatprep.subr.msk.mxu0 %vm11535_vm1, %v10853_v48  ;;  %v6268_v48 = vld [vmem:[%s11420_s16 + $0x80] sm:$0xff]  ;;  %v7834_v19 = vld [vmem:[%s11420_s16 + $0x2d8] sm:$0xff] }
0x1b1f   : > { %8233 = vmatprep.subr.mxu1 %v6270_v39  ;;  %7815 = vmatpush1.msk.msra.mxu0 %vm11536_vm7, %v10849_v31  ;;  %v6252_v31 = vld [vmem:[%s11420_s16] sm:$0xff] }
0x1b20   : > { %8234 = vmatpush3.msra.mxu1 %v6254_v59  ;;  %6881 = vmatprep.subr.mxu0 %v10844_v18  ;;  %v7850_v18 = vld [vmem:[%s11420_s16 + $0x358] sm:$0xff] }
0x1b21   : > { %8235 = vmatprep.subr.mxu1 %v6269_v11  ;;  %8836 = vmatprep.mubr.msk.f32.mxu0 %vm11517_vm0, %v8918_v1 }
0x1b22   : > { %6882 = vmatpush1.msra.mxu0 %v10840_v25  ;;  %8236 = vmatpush3.msra.mxu1 %v6253_v49  ;;  %v7851_v25 = vld [vmem:[%s11420_s16 + $0x360] sm:$0xff] }
0x1b23   : > { %8837 = vmatmul.mubr.msk.f32.gmra.mxu0 %vm11537_vm2, %v11056_v5  ;;  %6883 = vmatprep.subr.mxu0 %v10838_v23  ;;  %v7836_v23 = vld [vmem:[%s11420_s16 + $0x2e8] sm:$0xff]  ;;  %v7849_v5 = vld [vmem:[%s11420_s16 + $0x350] sm:$0xff] }
0x1b24   : > { %8237 = vmatprep.subr.mxu1 %v6268_v48  ;;  %6884 = vmatpush1.msra.mxu0 %v10834_v21  ;;  %v6843_v21 = vadd.s32 1, %v9450_v51 }
0x1b25   : > { %8238 = vmatpush3.msra.mxu1 %v6252_v31  ;;  %8839 = vmatprep.mubr.msk.f32.mxu0 %vm11517_vm0, %v8918_v1 }
0x1b26   : > { %6748 = vmatmul.mubr.f32.vlgmr.msra.gmra.mxu1 %v11058_v37  ;;  %8842 = vmatprep.subr.mxu1 %v8918_v1  ;;  %vm6844_vm8 = vcmp.eq.s32.totalorder %v9041_v3, %v6843_v21  ;;  %v7854_v3 = vld [vmem:[%s11420_s16 + $0x378] sm:$0xff]  ;;  %v7833_v37 = vld [vmem:[%s11420_s16 + $0x2d0] sm:$0xff] }
0x1b27   : > { %6752 = vmatprep.mubr.f32.mxu1 %v11070_v32  ;;  %8840 = vmatmul.mubr.msk.f32.gmra.mxu0 %vm11538_vm10, %v11060_v8  ;;  %v6845_v51 = vsel %vm6844_vm8, 1.0, %v8918_v1  ;;  %v7848_v8 = vld [vmem:[%s11420_s16 + $0x348] sm:$0xff]  ;;  %v7847_v32 = vld [vmem:[%s11420_s16 + $0x340] sm:$0xff] }
0x1b28   : > { %8843 = vmatpush3.msk.msra.mxu1 %vm11539_vm6, %v10842_v41  ;;  %6917 = vmatprep.mubr.f32.mxu0 %v8918_v1  ;;  %v7835_v41 = vld [vmem:[%s11420_s16 + $0x2e0] sm:$0xff] }
0x1b29   : > { %8844 = vmatprep.subr.mxu1 %v8918_v1  ;;  %8265 = vmatprep.subr.mxu0 %v7854_v3 }
0x1b2a   : > { %8845 = vmatpush3.msra.mxu1 %v10836_v42  ;;  %v7852_v42 = vld [vmem:[%s11420_s16 + $0x368] sm:$0xff] }
0x1b2b   : > { %6753 = vmatmul.mubr.f32.gmra.mxu1 %v11062_v9  ;;  %8846 = vmatprep.subr.mxu1 %v8918_v1  ;;  %v7832_v9 = vld [vmem:[%s11420_s16 + $0x2c8] sm:$0xff] }
0x1b2c   : > { %6757 = vmatprep.mubr.f32.mxu1 %v11089_v55  ;;  %7816 = vmatmul.mubr.msk.f32.vlgmr.msra.gmra.mxu0 %vm6072_vm11, %v9112_v27  ;;  %v7845_v55 = vld [vmem:[%s11420_s16 + $0x330] sm:$0xff] }
0x1b2d   : > { %8847 = vmatpush3.msra.mxu1 %v10832_v40  ;;  %6923 = vmatprep.mubr.f32.mxu0 %v8918_v1  ;;  %v7837_v40 = vld [vmem:[%s11420_s16 + $0x2f0] sm:$0xff] }
0x1b2e   : > { %8857 = vmatprep.subr.mxu1 %v8918_v1 }
0x1b2f   : > { %6758 = vmatmul.mubr.f32.gmra.mxu1 %v11081_v45  ;;  %v7831_v45 = vld [vmem:[%s11420_s16 + $0x2c0] sm:$0xff] }
0x1b30   : > { %7817 = vmatmul.mubr.msk.f32.gmra.mxu0 %vm6072_vm11, %v9120_v28  ;;  %8848 = vmatprep.mubr.msk.f32.mxu1 %vm11517_vm0, %v8918_v1 }
0x1b31   : > { %6929 = vmatprep.mubr.f32.mxu0 %v8918_v1 }
0x1b33   : > { %8849 = vmatmul.mubr.msk.f32.vlgmr.msra.gmra.mxu1 %vm6072_vm11, %v9112_v27  ;;  %v7838_v27 = vld [vmem:[%s11420_s16 + $0x2f8] sm:$0xff] }
0x1b34   : > { %7818 = vmatmul.mubr.msk.f32.gmra.mxu0 %vm6072_vm11, %v6845_v51  ;;  %8851 = vmatprep.mubr.msk.f32.mxu1 %vm11517_vm0, %v8918_v1 }
0x1b35   : > { %8266 = vmatpush3.msra.mxu0 %v7838_v27  ;;  %8858 = vmatpush3.msra.mxu1 %v7862_v29 }
0x1b36   : > { %8859 = vmatprep.subr.mxu1 %v8918_v1 }
0x1b37   : > { %8852 = vmatmul.mubr.msk.f32.gmra.mxu1 %vm6072_vm11, %v9120_v28  ;;  %v7853_v28 = vld [vmem:[%s11420_s16 + $0x370] sm:$0xff] }
0x1b38   : > { %8854 = vmatprep.mubr.msk.f32.mxu1 %vm11517_vm0, %v8918_v1  ;;  %8267 = vmatprep.subr.mxu0 %v7853_v28 }
0x1b39   : > { %8268 = vmatpush3.msra.mxu0 %v7837_v40  ;;  %8860 = vmatpush3.msra.mxu1 %v7861_v47 }
0x1b3a   : > { %8269 = vmatprep.subr.mxu0 %v7852_v42  ;;  %8861 = vmatprep.subr.mxu1 %v8918_v1 }
0x1b3b   : > { %8855 = vmatmul.mubr.msk.f32.gmra.mxu1 %vm6072_vm11, %v6845_v51  ;;  %8270 = vmatpush3.msra.mxu0 %v7836_v23 }
0x1b3c   : > { %8873 = vmatprep.mubr.msk.f32.mxu1 %vm11517_vm0, %v8918_v1  ;;  %8271 = vmatprep.subr.mxu0 %v7851_v25 }
0x1b3d   : > { %8272 = vmatpush3.msra.mxu0 %v7835_v41  ;;  %8862 = vmatpush3.msra.mxu1 %v7860_v44 }
0x1b3e   : > { %8273 = vmatprep.subr.mxu0 %v7850_v18  ;;  %8863 = vmatprep.subr.mxu1 %v8918_v1 }
0x1b3f   : > { %8274 = vmatpush3.msra.mxu0 %v7834_v19  ;;  %8864 = vmatpush3.msra.mxu1 %v7859_v33 }
0x1b40   : > { %8275 = vmatprep.subr.mxu0 %v7849_v5  ;;  %8865 = vmatprep.subr.mxu1 %v8918_v1 }
0x1b41   : > { %8276 = vmatpush3.msra.mxu0 %v7833_v37  ;;  %8866 = vmatpush3.msra.mxu1 %v7858_v61  ;;  %v7866_v61 = vld [vmem:[%s11421_s17] ss:$0 sm:$0xff] }
0x1b42   : > { %8277 = vmatprep.subr.mxu0 %v7848_v8  ;;  %8867 = vmatprep.subr.mxu1 %v8918_v1 }
0x1b43   : > { %8278 = vmatpush3.msra.mxu0 %v7832_v9  ;;  %8868 = vmatpush3.msra.mxu1 %v7857_v0 }
0x1b44   : > { %8279 = vmatprep.subr.mxu0 %v7847_v32  ;;  %8869 = vmatprep.subr.mxu1 %v8918_v1 }
0x1b45   : > { %8280 = vmatpush3.msra.mxu0 %v7831_v45  ;;  %8870 = vmatpush3.msra.mxu1 %v7856_v58 }
0x1b46   : > { %8281 = vmatprep.subr.mxu0 %v7846_v53  ;;  %8871 = vmatprep.subr.mxu1 %v8918_v1 }
0x1b47   : > { %8282 = vmatpush3.msra.mxu0 %v7830_v12  ;;  %8872 = vmatpush3.msra.mxu1 %v7855_v2 }
0x1b48   : > { %8283 = vmatprep.subr.mxu0 %v7845_v55 }
0x1b49   : > { %8284 = vmatpush3.msra.mxu0 %v7829_v7 }
0x1b4a   : > { %8285 = vmatprep.subr.mxu0 %v7844_v16 }
0x1b4b   : > { %8286 = vmatpush3.msra.mxu0 %v7828_v17 }
0x1b4c   : > { %8287 = vmatprep.subr.mxu0 %v7843_v30 }
0x1b4d   : > { %8288 = vmatpush3.msra.mxu0 %v7827_v38 }
0x1b4e   : > { %8289 = vmatprep.subr.mxu0 %v7842_v43 }
0x1b4f   : > { %8290 = vmatpush3.msra.mxu0 %v7826_v26 }
0x1b50   : > { %8291 = vmatprep.subr.mxu0 %v7841_v50 }
0x1b51   : > { %8292 = vmatpush3.msra.mxu0 %v7825_v52 }
0x1b52   : > { %8293 = vmatprep.subr.mxu0 %v7840_v54 }
0x1b53   : > { %8294 = vmatpush3.msra.mxu0 %v7824_v35 }
0x1b54   : > { %8295 = vmatprep.subr.mxu0 %v7839_v56 }
0x1b55   : > { %8296 = vmatpush3.msra.mxu0 %v7823_v63 }
0x1bc1   : > { %v6660_v13 = vpop.f32.mrf.mxu1 }
0x1bc3   : > { %v8810_v15 = vpop.f32.mrf.mxu1 }
0x1bc5   : > { %v6665_v4 = vpop.f32.mrf.mxu1 }
0x1bc7   : > { %v8813_v6 = vpop.f32.mrf.mxu1 }
0x1bc9   : > { %v6670_v60 = vpop.f32.mrf.mxu1 }
0x1bcb   : > { %v8187_v36 = vpop.f32.mrf.mxu0  ;;  %v8816_v14 = vpop.f32.mrf.mxu1 }
0x1bcd   : > { %v8188_v62 = vpop.f32.mrf.mxu0 }
0x1bce   : > { %v8189_v22 = vadd.f32 %v8188_v62, %v8187_v36 }
0x1bd0   : > { %v6661_v24 = vadd.f32 %v8189_v22, %v6660_v13 }
0x1bd4   : > { %v8190_v46 = vpop.f32.mrf.mxu0 }
0x1bd6   : > { %v8191_v34 = vpop.f32.mrf.mxu0 }
0x1bd7   : > { %v8192_v20 = vadd.f32 %v8191_v34, %v8190_v46 }
0x1bd9   : > { %v8193_v10 = vpop.f32.mrf.mxu0  ;;  %v6666_v57 = vadd.f32 %v8192_v20, %v6665_v4 }
0x1bdb   : > { %v8194_v39 = vpop.f32.mrf.mxu0 }
0x1bdc   : > { %v8195_v59 = vadd.f32 %v8194_v39, %v8193_v10 }
0x1bde   : > { %v6829_v11 = vpop.f32.mrf.mxu0  ;;  %v6671_v49 = vadd.f32 %v8195_v59, %v6670_v60 }
0x1be0   : > { %v8835_v48 = vpop.f32.mrf.mxu0 }
0x1be3   : > { %v6834_v31 = vpop.f32.mrf.mxu0 }
0x1be5   : > { %v8838_v21 = vpop.f32.mrf.mxu0 }
0x1be6   : > { %v8239_v51 = vpop.f32.mrf.mxu1 }
0x1be7   : > { %v6839_v3 = vpop.f32.mrf.mxu0 }
0x1be8   : > { %v8240_v27 = vpop.f32.mrf.mxu1 }
0x1be9   : > { %v8241_v28 = vadd.f32 %v8240_v27, %v8239_v51  ;;  %v8841_v40 = vpop.f32.mrf.mxu0 }
0x1beb   : > { %v6750_v42 = vadd.f32 %v8241_v28, %v6661_v24  ;;  %v8242_v23 = vpop.f32.mrf.mxu1 }
0x1bec   : > { %v6919_v25 = vpop.f32.mrf.mxu0 }
0x1bed   : > { %v8243_v41 = vpop.f32.mrf.mxu1  ;;  %v6830_v18 = vadd.f32 %v6829_v11, %v6750_v42 }
0x1bee   : > { %v8244_v19 = vadd.f32 %v8243_v41, %v8242_v23  ;;  %v6921_v5 = vpop.f32.mrf.mxu0 }
0x1bef   : > { %v8245_v37 = vpop.f32.mrf.mxu1  ;;  %7130 = vmatprep.mubr.f32.mxu0 %v6921_v5 }
0x1bf0   : > { %v6755_v8 = vadd.f32 %v8244_v19, %v6666_v57  ;;  %v6925_v9 = vpop.f32.mrf.mxu0  ;;  %7131 = vmatmul.mubr.f32.vlgmr.msra.gmra.mxu0 %v6919_v25 }
0x1bf1   : > { %v8246_v32 = vpop.f32.mrf.mxu1 }
0x1bf2   : > { %v8247_v45 = vadd.f32 %v8246_v32, %v8245_v37  ;;  %v6927_v53 = vpop.f32.mrf.mxu0  ;;  %v6835_v12 = vadd.f32 %v6834_v31, %v6755_v8 }
0x1bf3   : > { %v7002_v55 = vpop.f32.mrf.mxu1  ;;  %7135 = vmatprep.mubr.f32.mxu0 %v6927_v53 }
0x1bf4   : > { %v6760_v7 = vadd.f32 %v8247_v45, %v6671_v49  ;;  %v6931_v16 = vpop.f32.mrf.mxu0  ;;  %7136 = vmatmul.mubr.f32.gmra.mxu0 %v6925_v9  ;;  %8874 = vmatmul.mubr.msk.f32.vlgmr.msra.gmra.mxu1 %vm11540_vm13, %v7002_v55 }
0x1bf5   : > { %v8850_v17 = vpop.f32.mrf.mxu1  ;;  %8876 = vmatprep.mubr.msk.f32.mxu1 %vm11517_vm0, %v8918_v1 }
0x1bf6   : > { %v6933_v29 = vpop.f32.mrf.mxu0  ;;  %v6840_v30 = vadd.f32 %v6839_v3, %v6760_v7 }
0x1bf7   : > { %v7007_v38 = vpop.f32.mrf.mxu1  ;;  %7140 = vmatprep.mubr.f32.mxu0 %v6933_v29 }
0x1bf8   : > { %7141 = vmatmul.mubr.f32.gmra.mxu0 %v6931_v16  ;;  %8877 = vmatmul.mubr.msk.f32.gmra.mxu1 %vm11541_vm9, %v7007_v38 }
0x1bf9   : > { %v8853_v47 = vpop.f32.mrf.mxu1  ;;  %8879 = vmatprep.mubr.msk.f32.mxu1 %vm11517_vm0, %v8918_v1  ;;  %vm7259_vm0 = vcmask 158720  }
0x1bfb   : > { %v7012_v43 = vpop.f32.mrf.mxu1 }
0x1bfc   : > { %8880 = vmatmul.mubr.msk.f32.gmra.mxu1 %vm11542_vm12, %v7012_v43 }
0x1bfd   : > { %v8856_v26 = vpop.f32.mrf.mxu1 }
0x1cb0   : > { %v8297_v44 = vpop.f32.mrf.mxu0 }
0x1cb2   : > { %v8298_v50 = vpop.f32.mrf.mxu0 }
0x1cb3   : > { %v8299_v52 = vadd.f32 %v8298_v50, %v8297_v44 }
0x1cb4   : > { %v8300_v33 = vpop.f32.mrf.mxu0  ;;  %v7212_v54 = vpop.f32.mrf.mxu1 }
0x1cb5   : > { %v7213_v35 = vadd.f32 %v8299_v52, %v7212_v54 }
0x1cb6   : > { %v8301_v56 = vpop.f32.mrf.mxu0  ;;  %v8875_v63 = vpop.f32.mrf.mxu1 }
0x1cb7   : > { %v7226_v0 = vadd.f32 %v7213_v35, %v6830_v18  ;;  %v8302_v58 = vadd.f32 %v8301_v56, %v8300_v33 }
0x1cb8   : > { %v8303_v2 = vpop.f32.mrf.mxu0  ;;  %v7217_v1 = vpop.f32.mrf.mxu1 }
0x1cb9   : > { %v7236_v13 = vadd.f32 %v7866_v61, %v7226_v0  ;;  %v7218_v15 = vadd.f32 %v8302_v58, %v7217_v1 }
0x1cba   : > { %v8304_v4 = vpop.f32.mrf.mxu0  ;;  %v8878_v6 = vpop.f32.mrf.mxu1 }
0x1cbb   : > { %v7239_v60 = vsub.f32 0.0, %v7236_v13  ;;  %v7227_v36 = vadd.f32 %v7218_v15, %v6835_v12  ;;  %v8305_v14 = vadd.f32 %v8304_v4, %v8303_v2 }
0x1cbc   : > { %v7222_v62 = vpop.f32.mrf.mxu1 }
0x1cbd   : > { %v7242_v22 = vmul.f32 1.442695, %v7239_v60  ;;  %v7237_v24 = vadd.f32 %v7866_v61, %v7227_v36  ;;  %v7223_v46 = vadd.f32 %v8305_v14, %v7222_v62 }
0x1cbe   : > { %v8881_v34 = vpop.f32.mrf.mxu1 }
0x1cbf   : > { %8898 = vpow2.f32 %v7242_v22  ;;  %v7240_v20 = vsub.f32 0.0, %v7237_v24  ;;  %v7228_v10 = vadd.f32 %v7223_v46, %v6840_v30 }
0x1cc1   : > { %v7244_v57 = vmul.f32 1.442695, %v7240_v20  ;;  %v7238_v39 = vadd.f32 %v7866_v61, %v7228_v10 }
0x1cc3   : > { %8900 = vpow2.f32 %v7244_v57  ;;  %v7241_v59 = vsub.f32 0.0, %v7238_v39 }
0x1cc5   : > { %v7246_v11 = vmul.f32 1.442695, %v7241_v59 }
0x1cc7   : > { %8902 = vpow2.f32 %v7246_v11 }
0x1ccc   : > { %v8899_v49 = vpop.eup %8898 }
0x1ccd   : > { %v7248_v48 = vadd.f32 1.0, %v8899_v49 }
0x1ccf   : > { %8904 = vrcp.f32 %v7248_v48 }
0x1cd0   : > { %v8901_v31 = vpop.eup %8900 }
0x1cd1   : > { %v7249_v21 = vadd.f32 1.0, %v8901_v31 }
0x1cd3   : > { %8906 = vrcp.f32 %v7249_v21 }
0x1cd4   : > { %v8903_v51 = vpop.eup %8902 }
0x1cd5   : > { %v7250_v3 = vadd.f32 1.0, %v8903_v51 }
0x1cd7   : > { %8908 = vrcp.f32 %v7250_v3 }
0x1cdc   : > { %v8905_v27 = vpop.eup %8904 }
0x1cdd   : > { %7257 = vst.msk [vmem:[%s659_s25] sm:$0xff] %vm6072_vm11, %v8905_v27 }
0x1ce0   : > { %v8907_v28 = vpop.eup %8906 }
0x1ce1   : > { %7258 = vst.msk [vmem:[%s659_s25 + $0x8] sm:$0xff] %vm6072_vm11, %v8907_v28 }
0x1ce4   : > { %v8909_v40 = vpop.eup %8908 }
0x1ce5   : > { %7260 = vst.msk [vmem:[%s659_s25 + $0x10] sm:$0xf] %vm7259_vm0, %v8909_v40 }
0x1ce6 PF: > { %s31_s1 = sadd.s32 1, %s8916_s1  }
0x1ce7   : > { %p28_p4 = scmp.ge.s32.totalorder %s31_s1, 4  }
0x1ce9   :  { %30 = sbr.rel (!%p28_p4) target bundleno = 6 (0x6), region = 165 }

</bundles_post_ra>
